<compile_context>
chip_gen: v6e
topology: v6e:2x2x1
jax: 0.10.0
libtpu: 0.0.40
codegen_flags: <defaults>
</compile_context>

<pallas_src>
import numpy as np

import jax
import jax.numpy as jnp
from jax import lax
from jax.experimental import pallas as pl
from jax.experimental.pallas import tpu as pltpu

START_TAG = "<START>"
STOP_TAG = "<STOP>"
TAG_TO_IX = {"B": 0, "I": 1, "O": 2, START_TAG: 3, STOP_TAG: 4}
K = len(TAG_TO_IX)
START_IX = TAG_TO_IX[START_TAG]
STOP_IX = TAG_TO_IX[STOP_TAG]

VOCAB = 20       # vocab_size
EMBED = 16       # embedding_dim
HIDDEN = 32      # hidden_dim
H = HIDDEN // 2  # per-direction hidden size
T = 8            # sequence length

# Packed-slab row offsets (Python ints; 8-aligned section starts).
EMBW_PAD = ((VOCAB + 7) // 8) * 8          # 24 rows per fused embedding table
WHH_OFF = 4 * EMBW_PAD                     # 96
HC_OFF = WHH_OFF + 4 * (2 * H)             # 224
SLAB32_ROWS = HC_OFF + 2                   # 226
WTF_OFF = ((K + 2 + 7) // 8) * 8           # 8
WTB_OFF = WTF_OFF + 2 * H                  # 40
SLAB5_ROWS = WTB_OFF + 2 * H               # 72


# --------------------------------------------------------------------------
# Fused kernel: embedding -> BiLSTM -> hidden2tag -> Viterbi DP -> backtrack
# --------------------------------------------------------------------------
def bilstm_crf_kernel(sent_ref, slab32_ref, slab5_ref,
                      feats_ref, path_ref, score_ref,
                      xp_buf, hf_buf, hb_buf):
    t_len, n_tag = feats_ref.shape
    two_h = 2 * H

    # ---- embedding gather fused with input projection + bias (hoisted) -----
    sent = sent_ref[...]                                           # (T,1) int32
    vocab_iota = lax.broadcasted_iota(jnp.int32, (1, VOCAB), 1)
    onehot = (sent == vocab_iota).astype(jnp.float32)              # (T,V)
    for g in range(4):                                             # i, f, g, o
        table = slab32_ref[pl.ds(g * EMBW_PAD, VOCAB), :]          # (V,2H)
        xp = jnp.dot(onehot, table, preferred_element_type=jnp.float32)
        xp_buf[pl.ds(g * t_len, t_len), :] = xp                    # (T,2H)

    # ---- recurrent weights (block-diag per gate) + initial state -----------
    whh = [slab32_ref[pl.ds(WHH_OFF + g * two_h, two_h), :] for g in range(4)]
    h = slab32_ref[pl.ds(HC_OFF, 1), :]                            # (1,2H)
    c = slab32_ref[pl.ds(HC_OFF + 1, 1), :]                        # (1,2H)

    lane2h = lax.broadcasted_iota(jnp.int32, (1, two_h), 1)
    fwd_lane = lane2h < H            # lanes [0,H) = forward dir, [H,2H) = bwd

    # ---- fully unrolled bidirectional recurrence (fwd/bwd interleaved) -----
    for s in range(t_len):
        tb = t_len - 1 - s
        acts = []
        for g in range(4):
            # forward lanes take the time-s projection, backward lanes time-tb
            xrow = jnp.where(fwd_lane,
                             xp_buf[pl.ds(g * t_len + s, 1), :],
                             xp_buf[pl.ds(g * t_len + tb, 1), :])  # (1,2H)
            pre = xrow + jnp.dot(h, whh[g],
                                 preferred_element_type=jnp.float32)
            acts.append(jnp.tanh(pre))       # single EUP call per gate
        i_g = 0.5 * acts[0] + 0.5            # sigmoid(z) = 0.5*tanh(z/2)+0.5
        f_g = 0.5 * acts[1] + 0.5            # (0.5 pre-scale folded into the
        g_g = acts[2]                        #  packed i/f/o weights)
        o_g = 0.5 * acts[3] + 0.5
        c = f_g * c + i_g * g_g
        h = o_g * jnp.tanh(c)
        hf_buf[pl.ds(s, 1), :] = h           # forward half valid at time s
        hb_buf[pl.ds(tb, 1), :] = h          # backward half valid at time tb

    # ---- hidden2tag: zero-padded tag weights pick the valid half -----------
    wtf = slab5_ref[pl.ds(WTF_OFF, two_h), :]                      # (2H,K)
    wtb = slab5_ref[pl.ds(WTB_OFF, two_h), :]                      # (2H,K)
    btag = slab5_ref[pl.ds(n_tag + 1, 1), :]                       # (1,K)
    feats = (jnp.dot(hf_buf[...], wtf, preferred_element_type=jnp.float32)
             + jnp.dot(hb_buf[...], wtb, preferred_element_type=jnp.float32)
             + btag)
    feats_ref[...] = feats

    # ---- Viterbi DP (unrolled); backpointers stay live as (1,K) vregs ------
    transT = slab5_ref[pl.ds(0, n_tag), :]                         # [prev,next]
    stop_row = slab5_ref[pl.ds(n_tag, 1), :]                       # (1,K)
    prev_iota = lax.broadcasted_iota(jnp.int32, (n_tag, n_tag), 0)
    next_iota = lax.broadcasted_iota(jnp.int32, (n_tag, n_tag), 1)
    lane_iota = lax.broadcasted_iota(jnp.int32, (1, n_tag), 1)
    sub_iota = lax.broadcasted_iota(jnp.int32, (n_tag, 1), 0)
    diag = prev_iota == next_iota

    fv_col = jnp.where(sub_iota == START_IX, 0.0, -10000.0)        # (K,1)
    bps = []
    fv_row = jnp.zeros((1, n_tag), jnp.float32)
    for t in range(t_len):
        m = fv_col + transT                                        # (K,K)
        best = jnp.max(m, axis=0, keepdims=True)                   # (1,K)
        bp = jnp.min(jnp.where(m == best, prev_iota, n_tag),
                     axis=0, keepdims=True)                        # first argmax
        bps.append(bp)
        # static-address row load, independent of the DP carry -> off chain
        fv_row = best + feats_ref[pl.ds(t, 1), :]
        # row -> column without a transpose: diag mask + lane sum (exact)
        fv_col = jnp.sum(jnp.where(diag, fv_row, 0.0),
                         axis=1, keepdims=True)                    # (K,1)

    term = fv_row + stop_row                                       # (1,K)
    score = jnp.max(term, axis=1, keepdims=True)                   # (1,1)
    best_tag = jnp.min(jnp.where(term == score, lane_iota, n_tag),
                       axis=1, keepdims=True)                      # (1,1) int32
    score_ref[...] = jnp.broadcast_to(score, (1, n_tag))

    # ---- backtrack on-device (no host round trip) --------------------------
    path_ref[pl.ds(t_len - 1, 1), :] = jnp.broadcast_to(best_tag, (1, n_tag))
    cur = best_tag
    for t in range(t_len - 1, 0, -1):
        sel = jnp.where(lane_iota == cur, bps[t], 0)
        cur = jnp.max(sel, axis=1, keepdims=True)                  # (1,1)
        path_ref[pl.ds(t - 1, 1), :] = jnp.broadcast_to(cur, (1, n_tag))


def make_fused_call(t_len):
    vspec = pl.BlockSpec(memory_space=pltpu.MemorySpace.VMEM)
    return pl.pallas_call(
        bilstm_crf_kernel,
        out_shape=(jax.ShapeDtypeStruct((t_len, K), jnp.float32),   # feats
                   jax.ShapeDtypeStruct((t_len, K), jnp.int32),     # path (bcast)
                   jax.ShapeDtypeStruct((1, K), jnp.float32)),      # score (bcast)
        in_specs=[vspec, vspec, vspec],
        out_specs=(vspec, vspec, vspec),
        scratch_shapes=[pltpu.VMEM((4 * t_len, 2 * H), jnp.float32),  # per-gate xp
                        pltpu.VMEM((t_len, 2 * H), jnp.float32),      # h, fwd order
                        pltpu.VMEM((t_len, 2 * H), jnp.float32)],     # h, bwd order
    )


# --------------------------------------------------------------------------
# Parameters (deterministic, synthetic) + one-time packing
# --------------------------------------------------------------------------
def init_params(key):
    ks = jax.random.split(key, 14)
    scale = 1.0 / np.sqrt(H)

    def u(k, shape):
        return jax.random.uniform(k, shape, jnp.float32, -scale, scale)

    p = {}
    p["emb"] = jax.random.normal(ks[0], (VOCAB, EMBED), jnp.float32)
    p["w_ih_f"] = u(ks[1], (4 * H, EMBED)); p["w_hh_f"] = u(ks[2], (4 * H, H))
    p["b_ih_f"] = u(ks[3], (4 * H,));       p["b_hh_f"] = u(ks[4], (4 * H,))
    p["w_ih_b"] = u(ks[5], (4 * H, EMBED)); p["w_hh_b"] = u(ks[6], (4 * H, H))
    p["b_ih_b"] = u(ks[7], (4 * H,));       p["b_hh_b"] = u(ks[8], (4 * H,))
    p["w_tag"] = u(ks[9], (K, HIDDEN));     p["b_tag"] = u(ks[10], (K,))
    trans = jax.random.normal(ks[11], (K, K), jnp.float32)
    trans = trans.at[START_IX, :].set(-10000.0)
    trans = trans.at[:, STOP_IX].set(-10000.0)
    p["transitions"] = trans
    p["h0"] = jax.random.normal(ks[12], (2, H), jnp.float32)   # row0 fwd, row1 bwd
    p["c0"] = jax.random.normal(ks[13], (2, H), jnp.float32)
    return p


def pack_params(p):
    """One-time host-side repack (float64 intermediates, stored as float32).

    32-lane slab: per gate g in (i,f,g,o):
        fused table  (V,2H)  = emb @ [W_ih_f_g^T | W_ih_b_g^T] + [b_f_g | b_b_g]
        block-diag   (2H,2H) = diag(W_hh_f_g^T, W_hh_b_g^T)
      with a 0.5 pre-scale folded into the i/f/o (sigmoid) gates, followed by
      the packed [h0; c0] rows.  K-lane slab: [trans^T | stop | b_tag | pad |
      [Wt_f;0] | [0;Wt_b]].
    """
    f = lambda a: np.asarray(a, np.float64)
    emb = f(p["emb"])
    tables, whhs = [], []
    for g in range(4):
        sl = slice(g * H, (g + 1) * H)
        scale = 1.0 if g == 2 else 0.5          # g-gate keeps tanh, rest sigmoid
        w_cat = np.concatenate([f(p["w_ih_f"])[sl].T, f(p["w_ih_b"])[sl].T], 1)
        b_cat = np.concatenate([f(p["b_ih_f"])[sl] + f(p["b_hh_f"])[sl],
                                f(p["b_ih_b"])[sl] + f(p["b_hh_b"])[sl]])[None]
        tbl = np.zeros((EMBW_PAD, 2 * H), np.float64)
        tbl[:VOCAB] = scale * (emb @ w_cat + b_cat)                # (V,2H)
        tables.append(tbl)
        blk = np.zeros((2 * H, 2 * H), np.float64)
        blk[:H, :H] = f(p["w_hh_f"])[sl].T
        blk[H:, H:] = f(p["w_hh_b"])[sl].T
        whhs.append(scale * blk)
    hc0 = np.stack([np.concatenate([f(p["h0"])[0], f(p["h0"])[1]]),
                    np.concatenate([f(p["c0"])[0], f(p["c0"])[1]])])
    slab32 = np.concatenate(tables + whhs + [hc0], 0).astype(np.float32)
    assert slab32.shape == (SLAB32_ROWS, 2 * H)

    wt, trans = f(p["w_tag"]), f(p["transitions"])
    wtf = np.concatenate([wt[:, :H].T, np.zeros((H, K))], 0)       # (2H,K)
    wtb = np.concatenate([np.zeros((H, K)), wt[:, H:].T], 0)       # (2H,K)
    pad = np.zeros((WTF_OFF - (K + 2), K))
    slab5 = np.concatenate([trans.T, trans[STOP_IX][None], f(p["b_tag"])[None],
                            pad, wtf, wtb], 0).astype(np.float32)
    assert slab5.shape == (SLAB5_ROWS, K)
    return dict(slab32=jnp.asarray(slab32), slab5=jnp.asarray(slab5))


# --------------------------------------------------------------------------
# Whole forward, jitted: feats + best path + path score in one device launch
# --------------------------------------------------------------------------
@jax.jit
def bilstm_crf_forward(packed, sentence):
    t_len = sentence.shape[0]
    sent_col = sentence.reshape(t_len, 1).astype(jnp.int32)
    feats, path_bc, score_bc = make_fused_call(t_len)(
        sent_col, packed["slab32"], packed["slab5"])
    return feats, path_bc[:, 0], score_bc[0, 0]


# --------------------------------------------------------------------------
# Pure numpy references (for correctness check)
# --------------------------------------------------------------------------
def ref_lstm_feats(sentence, p):
    emb = np.asarray(p["emb"])[np.asarray(sentence)]

    def sig(x):
        return 1.0 / (1.0 + np.exp(-x))

    def run_dir(w_ih, w_hh, b_ih, b_hh, h0, c0, reverse):
        w_ih = np.asarray(w_ih); w_hh = np.asarray(w_hh)
        b = np.asarray(b_ih) + np.asarray(b_hh)
        h = np.asarray(h0).copy(); c = np.asarray(c0).copy()
        out = np.zeros((emb.shape[0], H), np.float32)
        order = range(emb.shape[0] - 1, -1, -1) if reverse else range(emb.shape[0])
        for t in order:
            g = w_ih @ emb[t] + w_hh @ h + b
            i = sig(g[:H]); f = sig(g[H:2 * H])
            gg = np.tanh(g[2 * H:3 * H]); o = sig(g[3 * H:])
            c = f * c + i * gg
            h = o * np.tanh(c)
            out[t] = h
        return out

    h0 = np.asarray(p["h0"]); c0 = np.asarray(p["c0"])
    hf = run_dir(p["w_ih_f"], p["w_hh_f"], p["b_ih_f"], p["b_hh_f"], h0[0], c0[0], False)
    hb = run_dir(p["w_ih_b"], p["w_hh_b"], p["b_ih_b"], p["b_hh_b"], h0[1], c0[1], True)
    hcat = np.concatenate([hf, hb], axis=1)
    return hcat @ np.asarray(p["w_tag"]).T + np.asarray(p["b_tag"])


def ref_viterbi(feats, transitions):
    fv = np.full((K,), -10000.0, np.float32)
    fv[START_IX] = 0.0
    backpointers = []
    for t in range(feats.shape[0]):
        bptrs = []
        vvars = []
        for nxt in range(K):
            ntv = fv + transitions[nxt]
            best = int(np.argmax(ntv))
            bptrs.append(best)
            vvars.append(ntv[best])
        fv = np.array(vvars, np.float32) + feats[t]
        backpointers.append(bptrs)
    term = fv + transitions[STOP_IX]
    best = int(np.argmax(term))
    score = float(term[best])
    path = [best]
    for bptrs in reversed(backpointers):
        best = bptrs[best]
        path.append(best)
    start = path.pop()
    assert start == START_IX
    path.reverse()
    return score, path


if __name__ == "__main__":
    key = jax.random.PRNGKey(0)
    pkey, skey = jax.random.split(key)
    params = init_params(pkey)
    packed = pack_params(params)            # one-time parameter preprocessing
    sentence = jax.random.randint(skey, (T,), 0, VOCAB, dtype=jnp.int32)

    feats, path_arr, score_arr = jax.block_until_ready(
        bilstm_crf_forward(packed, sentence))
    path = [int(v) for v in np.asarray(path_arr)]
    score = float(score_arr)

    # LSTM features vs numpy reference.  Tightened from 1e-2: expected error is
    # ~1e-5 (multi-pass f32 MXU + tanh-form sigmoid), and any gate/lane
    # misrouting from the fused packing would show up as O(0.1+) differences.
    feats_ref = ref_lstm_feats(sentence, params)
    np.testing.assert_allclose(np.asarray(feats), feats_ref, atol=5e-3, rtol=5e-3)

    # Viterbi decode + score check on the kernel's own features (exact).
    score_ref, path_ref = ref_viterbi(np.asarray(feats),
                                      np.asarray(params["transitions"]))
    assert path == path_ref, (path, path_ref)
    assert abs(score - score_ref) < 1e-4, (score, score_ref)

    print("KERNEL_OK")
</pallas_src>

<mosaic_0001>
module attributes {stable_mosaic.version = 11 : i64} {
  func.func @bilstm_crf_kernel(%arg0: memref<8x1xi32, #tpu.memory_space<vmem>>, %arg1: memref<226x32xf32, #tpu.memory_space<vmem>>, %arg2: memref<72x5xf32, #tpu.memory_space<vmem>>, %arg3: memref<8x5xf32, #tpu.memory_space<vmem>>, %arg4: memref<8x5xi32, #tpu.memory_space<vmem>>, %arg5: memref<1x5xf32, #tpu.memory_space<vmem>>, %arg6: memref<32x32xf32, #tpu.memory_space<vmem>>, %arg7: memref<8x32xf32, #tpu.memory_space<vmem>>, %arg8: memref<8x32xf32, #tpu.memory_space<vmem>>) attributes {dimension_semantics = [], scalar_prefetch = 0 : i64, scratch_operands = 3 : i64, tpu.core_type = #tpu.core_type<tc>} {
    %c0 = arith.constant 0 : index
    %c0_0 = arith.constant 0 : index
    %0 = vector.load %arg0[%c0, %c0_0] : memref<8x1xi32, #tpu.memory_space<vmem>>, vector<8x1xi32>
    %1 = tpu.iota {dimensions = array<i32: 1>} : vector<1x20xi32>
    %2 = vector.broadcast %0 : vector<8x1xi32> to vector<8x20xi32>
    %3 = vector.broadcast %1 : vector<1x20xi32> to vector<8x20xi32>
    %4 = arith.cmpi eq, %2, %3 : vector<8x20xi32>
    %5 = arith.extui %4 : vector<8x20xi1> to vector<8x20xi32>
    %6 = arith.sitofp %5 : vector<8x20xi32> to vector<8x20xf32>
    %c0_1 = arith.constant 0 : index
    %c0_2 = arith.constant 0 : index
    %7 = vector.load %arg1[%c0_1, %c0_2] : memref<226x32xf32, #tpu.memory_space<vmem>>, vector<20x32xf32>
    %cst = arith.constant dense<0.000000e+00> : vector<8x32xf32>
    %8 = tpu.matmul %6, %7, %cst {dimension_numbers = #tpu.dot_dimension_numbers<[1], [0], [0], [1], [0, 0, 1, 1], [], []>} : vector<8x20xf32>, vector<20x32xf32>, vector<8x32xf32> -> vector<8x32xf32>
    %c0_3 = arith.constant 0 : index
    %c0_4 = arith.constant 0 : index
    %9 = vector.load %arg6[%c0_3, %c0_4] : memref<32x32xf32, #tpu.memory_space<vmem>>, vector<8x32xf32>
    tpu.vector_store %arg6[%c0_3, %c0_4], %8 {strides = array<i32>} : memref<32x32xf32, #tpu.memory_space<vmem>>, vector<8x32xf32>,
    %c24 = arith.constant 24 : index
    %c0_5 = arith.constant 0 : index
    %10 = vector.load %arg1[%c24, %c0_5] : memref<226x32xf32, #tpu.memory_space<vmem>>, vector<20x32xf32>
    %cst_6 = arith.constant dense<0.000000e+00> : vector<8x32xf32>
    %11 = tpu.matmul %6, %10, %cst_6 {dimension_numbers = #tpu.dot_dimension_numbers<[1], [0], [0], [1], [0, 0, 1, 1], [], []>} : vector<8x20xf32>, vector<20x32xf32>, vector<8x32xf32> -> vector<8x32xf32>
    %c8 = arith.constant 8 : index
    %c0_7 = arith.constant 0 : index
    %12 = vector.load %arg6[%c8, %c0_7] : memref<32x32xf32, #tpu.memory_space<vmem>>, vector<8x32xf32>
    tpu.vector_store %arg6[%c8, %c0_7], %11 {strides = array<i32>} : memref<32x32xf32, #tpu.memory_space<vmem>>, vector<8x32xf32>,
    %c48 = arith.constant 48 : index
    %c0_8 = arith.constant 0 : index
    %13 = vector.load %arg1[%c48, %c0_8] : memref<226x32xf32, #tpu.memory_space<vmem>>, vector<20x32xf32>
    %cst_9 = arith.constant dense<0.000000e+00> : vector<8x32xf32>
    %14 = tpu.matmul %6, %13, %cst_9 {dimension_numbers = #tpu.dot_dimension_numbers<[1], [0], [0], [1], [0, 0, 1, 1], [], []>} : vector<8x20xf32>, vector<20x32xf32>, vector<8x32xf32> -> vector<8x32xf32>
    %c16 = arith.constant 16 : index
    %c0_10 = arith.constant 0 : index
    %15 = vector.load %arg6[%c16, %c0_10] : memref<32x32xf32, #tpu.memory_space<vmem>>, vector<8x32xf32>
    tpu.vector_store %arg6[%c16, %c0_10], %14 {strides = array<i32>} : memref<32x32xf32, #tpu.memory_space<vmem>>, vector<8x32xf32>,
    %c72 = arith.constant 72 : index
    %c0_11 = arith.constant 0 : index
    %16 = vector.load %arg1[%c72, %c0_11] : memref<226x32xf32, #tpu.memory_space<vmem>>, vector<20x32xf32>
    %cst_12 = arith.constant dense<0.000000e+00> : vector<8x32xf32>
    %17 = tpu.matmul %6, %16, %cst_12 {dimension_numbers = #tpu.dot_dimension_numbers<[1], [0], [0], [1], [0, 0, 1, 1], [], []>} : vector<8x20xf32>, vector<20x32xf32>, vector<8x32xf32> -> vector<8x32xf32>
    %c24_13 = arith.constant 24 : index
    %c0_14 = arith.constant 0 : index
    %18 = vector.load %arg6[%c24_13, %c0_14] : memref<32x32xf32, #tpu.memory_space<vmem>>, vector<8x32xf32>
    tpu.vector_store %arg6[%c24_13, %c0_14], %17 {strides = array<i32>} : memref<32x32xf32, #tpu.memory_space<vmem>>, vector<8x32xf32>,
    %c96 = arith.constant 96 : index
    %c0_15 = arith.constant 0 : index
    %19 = vector.load %arg1[%c96, %c0_15] : memref<226x32xf32, #tpu.memory_space<vmem>>, vector<32x32xf32>
    %c128 = arith.constant 128 : index
    %c0_16 = arith.constant 0 : index
    %20 = vector.load %arg1[%c128, %c0_16] : memref<226x32xf32, #tpu.memory_space<vmem>>, vector<32x32xf32>
    %c160 = arith.constant 160 : index
    %c0_17 = arith.constant 0 : index
    %21 = vector.load %arg1[%c160, %c0_17] : memref<226x32xf32, #tpu.memory_space<vmem>>, vector<32x32xf32>
    %c192 = arith.constant 192 : index
    %c0_18 = arith.constant 0 : index
    %22 = vector.load %arg1[%c192, %c0_18] : memref<226x32xf32, #tpu.memory_space<vmem>>, vector<32x32xf32>
    %c224 = arith.constant 224 : index
    %c0_19 = arith.constant 0 : index
    %23 = vector.load %arg1[%c224, %c0_19] : memref<226x32xf32, #tpu.memory_space<vmem>>, vector<1x32xf32>
    %c225 = arith.constant 225 : index
    %c0_20 = arith.constant 0 : index
    %24 = vector.load %arg1[%c225, %c0_20] : memref<226x32xf32, #tpu.memory_space<vmem>>, vector<1x32xf32>
    %25 = tpu.iota {dimensions = array<i32: 1>} : vector<1x32xi32>
    %c16_i32 = arith.constant 16 : i32
    %26 = vector.broadcast %c16_i32 : i32 to vector<1x32xi32>
    %27 = arith.cmpi slt, %25, %26 : vector<1x32xi32>
    %c0_21 = arith.constant 0 : index
    %c0_22 = arith.constant 0 : index
    %28 = vector.load %arg6[%c0_21, %c0_22] : memref<32x32xf32, #tpu.memory_space<vmem>>, vector<1x32xf32>
    %c7 = arith.constant 7 : index
    %c0_23 = arith.constant 0 : index
    %29 = vector.load %arg6[%c7, %c0_23] : memref<32x32xf32, #tpu.memory_space<vmem>>, vector<1x32xf32>
    %30 = arith.select %27, %28, %29 : vector<1x32xi1>, vector<1x32xf32>
    %cst_24 = arith.constant dense<0.000000e+00> : vector<1x32xf32>
    %31 = tpu.matmul %23, %19, %cst_24 {dimension_numbers = #tpu.dot_dimension_numbers<[1], [0], [0], [1], [0, 0, 1, 1], [], []>} : vector<1x32xf32>, vector<32x32xf32>, vector<1x32xf32> -> vector<1x32xf32>
    %32 = arith.addf %30, %31 : vector<1x32xf32>
    %33 = math.tanh %32 : vector<1x32xf32>
    %c8_25 = arith.constant 8 : index
    %c0_26 = arith.constant 0 : index
    %34 = vector.load %arg6[%c8_25, %c0_26] : memref<32x32xf32, #tpu.memory_space<vmem>>, vector<1x32xf32>
    %c15 = arith.constant 15 : index
    %c0_27 = arith.constant 0 : index
    %35 = vector.load %arg6[%c15, %c0_27] : memref<32x32xf32, #tpu.memory_space<vmem>>, vector<1x32xf32>
    %36 = arith.select %27, %34, %35 : vector<1x32xi1>, vector<1x32xf32>
    %cst_28 = arith.constant dense<0.000000e+00> : vector<1x32xf32>
    %37 = tpu.matmul %23, %20, %cst_28 {dimension_numbers = #tpu.dot_dimension_numbers<[1], [0], [0], [1], [0, 0, 1, 1], [], []>} : vector<1x32xf32>, vector<32x32xf32>, vector<1x32xf32> -> vector<1x32xf32>
    %38 = arith.addf %36, %37 : vector<1x32xf32>
    %39 = math.tanh %38 : vector<1x32xf32>
    %c16_29 = arith.constant 16 : index
    %c0_30 = arith.constant 0 : index
    %40 = vector.load %arg6[%c16_29, %c0_30] : memref<32x32xf32, #tpu.memory_space<vmem>>, vector<1x32xf32>
    %c23 = arith.constant 23 : index
    %c0_31 = arith.constant 0 : index
    %41 = vector.load %arg6[%c23, %c0_31] : memref<32x32xf32, #tpu.memory_space<vmem>>, vector<1x32xf32>
    %42 = arith.select %27, %40, %41 : vector<1x32xi1>, vector<1x32xf32>
    %cst_32 = arith.constant dense<0.000000e+00> : vector<1x32xf32>
    %43 = tpu.matmul %23, %21, %cst_32 {dimension_numbers = #tpu.dot_dimension_numbers<[1], [0], [0], [1], [0, 0, 1, 1], [], []>} : vector<1x32xf32>, vector<32x32xf32>, vector<1x32xf32> -> vector<1x32xf32>
    %44 = arith.addf %42, %43 : vector<1x32xf32>
    %45 = math.tanh %44 : vector<1x32xf32>
    %c24_33 = arith.constant 24 : index
    %c0_34 = arith.constant 0 : index
    %46 = vector.load %arg6[%c24_33, %c0_34] : memref<32x32xf32, #tpu.memory_space<vmem>>, vector<1x32xf32>
    %c31 = arith.constant 31 : index
    %c0_35 = arith.constant 0 : index
    %47 = vector.load %arg6[%c31, %c0_35] : memref<32x32xf32, #tpu.memory_space<vmem>>, vector<1x32xf32>
    %48 = arith.select %27, %46, %47 : vector<1x32xi1>, vector<1x32xf32>
    %cst_36 = arith.constant dense<0.000000e+00> : vector<1x32xf32>
    %49 = tpu.matmul %23, %22, %cst_36 {dimension_numbers = #tpu.dot_dimension_numbers<[1], [0], [0], [1], [0, 0, 1, 1], [], []>} : vector<1x32xf32>, vector<32x32xf32>, vector<1x32xf32> -> vector<1x32xf32>
    %50 = arith.addf %48, %49 : vector<1x32xf32>
    %51 = math.tanh %50 : vector<1x32xf32>
    %cst_37 = arith.constant 5.000000e-01 : f32
    %52 = vector.broadcast %cst_37 : f32 to vector<1x32xf32>
    %53 = arith.mulf %52, %33 : vector<1x32xf32>
    %cst_38 = arith.constant 5.000000e-01 : f32
    %54 = vector.broadcast %cst_38 : f32 to vector<1x32xf32>
    %55 = arith.addf %53, %54 : vector<1x32xf32>
    %cst_39 = arith.constant 5.000000e-01 : f32
    %56 = vector.broadcast %cst_39 : f32 to vector<1x32xf32>
    %57 = arith.mulf %56, %39 : vector<1x32xf32>
    %cst_40 = arith.constant 5.000000e-01 : f32
    %58 = vector.broadcast %cst_40 : f32 to vector<1x32xf32>
    %59 = arith.addf %57, %58 : vector<1x32xf32>
    %cst_41 = arith.constant 5.000000e-01 : f32
    %60 = vector.broadcast %cst_41 : f32 to vector<1x32xf32>
    %61 = arith.mulf %60, %51 : vector<1x32xf32>
    %cst_42 = arith.constant 5.000000e-01 : f32
    %62 = vector.broadcast %cst_42 : f32 to vector<1x32xf32>
    %63 = arith.addf %61, %62 : vector<1x32xf32>
    %64 = arith.mulf %59, %24 : vector<1x32xf32>
    %65 = arith.mulf %55, %45 : vector<1x32xf32>
    %66 = arith.addf %64, %65 : vector<1x32xf32>
    %67 = math.tanh %66 : vector<1x32xf32>
    %68 = arith.mulf %63, %67 : vector<1x32xf32>
    %c0_43 = arith.constant 0 : index
    %c0_44 = arith.constant 0 : index
    %69 = vector.load %arg7[%c0_43, %c0_44] : memref<8x32xf32, #tpu.memory_space<vmem>>, vector<1x32xf32>
    tpu.vector_store %arg7[%c0_43, %c0_44], %68 {strides = array<i32>} : memref<8x32xf32, #tpu.memory_space<vmem>>, vector<1x32xf32>,
    %c7_45 = arith.constant 7 : index
    %c0_46 = arith.constant 0 : index
    %70 = vector.load %arg8[%c7_45, %c0_46] : memref<8x32xf32, #tpu.memory_space<vmem>>, vector<1x32xf32>
    tpu.vector_store %arg8[%c7_45, %c0_46], %68 {strides = array<i32>} : memref<8x32xf32, #tpu.memory_space<vmem>>, vector<1x32xf32>,
    %c1 = arith.constant 1 : index
    %c0_47 = arith.constant 0 : index
    %71 = vector.load %arg6[%c1, %c0_47] : memref<32x32xf32, #tpu.memory_space<vmem>>, vector<1x32xf32>
    %c6 = arith.constant 6 : index
    %c0_48 = arith.constant 0 : index
    %72 = vector.load %arg6[%c6, %c0_48] : memref<32x32xf32, #tpu.memory_space<vmem>>, vector<1x32xf32>
    %73 = arith.select %27, %71, %72 : vector<1x32xi1>, vector<1x32xf32>
    %cst_49 = arith.constant dense<0.000000e+00> : vector<1x32xf32>
    %74 = tpu.matmul %68, %19, %cst_49 {dimension_numbers = #tpu.dot_dimension_numbers<[1], [0], [0], [1], [0, 0, 1, 1], [], []>} : vector<1x32xf32>, vector<32x32xf32>, vector<1x32xf32> -> vector<1x32xf32>
    %75 = arith.addf %73, %74 : vector<1x32xf32>
    %76 = math.tanh %75 : vector<1x32xf32>
    %c9 = arith.constant 9 : index
    %c0_50 = arith.constant 0 : index
    %77 = vector.load %arg6[%c9, %c0_50] : memref<32x32xf32, #tpu.memory_space<vmem>>, vector<1x32xf32>
    %c14 = arith.constant 14 : index
    %c0_51 = arith.constant 0 : index
    %78 = vector.load %arg6[%c14, %c0_51] : memref<32x32xf32, #tpu.memory_space<vmem>>, vector<1x32xf32>
    %79 = arith.select %27, %77, %78 : vector<1x32xi1>, vector<1x32xf32>
    %cst_52 = arith.constant dense<0.000000e+00> : vector<1x32xf32>
    %80 = tpu.matmul %68, %20, %cst_52 {dimension_numbers = #tpu.dot_dimension_numbers<[1], [0], [0], [1], [0, 0, 1, 1], [], []>} : vector<1x32xf32>, vector<32x32xf32>, vector<1x32xf32> -> vector<1x32xf32>
    %81 = arith.addf %79, %80 : vector<1x32xf32>
    %82 = math.tanh %81 : vector<1x32xf32>
    %c17 = arith.constant 17 : index
    %c0_53 = arith.constant 0 : index
    %83 = vector.load %arg6[%c17, %c0_53] : memref<32x32xf32, #tpu.memory_space<vmem>>, vector<1x32xf32>
    %c22 = arith.constant 22 : index
    %c0_54 = arith.constant 0 : index
    %84 = vector.load %arg6[%c22, %c0_54] : memref<32x32xf32, #tpu.memory_space<vmem>>, vector<1x32xf32>
    %85 = arith.select %27, %83, %84 : vector<1x32xi1>, vector<1x32xf32>
    %cst_55 = arith.constant dense<0.000000e+00> : vector<1x32xf32>
    %86 = tpu.matmul %68, %21, %cst_55 {dimension_numbers = #tpu.dot_dimension_numbers<[1], [0], [0], [1], [0, 0, 1, 1], [], []>} : vector<1x32xf32>, vector<32x32xf32>, vector<1x32xf32> -> vector<1x32xf32>
    %87 = arith.addf %85, %86 : vector<1x32xf32>
    %88 = math.tanh %87 : vector<1x32xf32>
    %c25 = arith.constant 25 : index
    %c0_56 = arith.constant 0 : index
    %89 = vector.load %arg6[%c25, %c0_56] : memref<32x32xf32, #tpu.memory_space<vmem>>, vector<1x32xf32>
    %c30 = arith.constant 30 : index
    %c0_57 = arith.constant 0 : index
    %90 = vector.load %arg6[%c30, %c0_57] : memref<32x32xf32, #tpu.memory_space<vmem>>, vector<1x32xf32>
    %91 = arith.select %27, %89, %90 : vector<1x32xi1>, vector<1x32xf32>
    %cst_58 = arith.constant dense<0.000000e+00> : vector<1x32xf32>
    %92 = tpu.matmul %68, %22, %cst_58 {dimension_numbers = #tpu.dot_dimension_numbers<[1], [0], [0], [1], [0, 0, 1, 1], [], []>} : vector<1x32xf32>, vector<32x32xf32>, vector<1x32xf32> -> vector<1x32xf32>
    %93 = arith.addf %91, %92 : vector<1x32xf32>
    %94 = math.tanh %93 : vector<1x32xf32>
    %cst_59 = arith.constant 5.000000e-01 : f32
    %95 = vector.broadcast %cst_59 : f32 to vector<1x32xf32>
    %96 = arith.mulf %95, %76 : vector<1x32xf32>
    %cst_60 = arith.constant 5.000000e-01 : f32
    %97 = vector.broadcast %cst_60 : f32 to vector<1x32xf32>
    %98 = arith.addf %96, %97 : vector<1x32xf32>
    %cst_61 = arith.constant 5.000000e-01 : f32
    %99 = vector.broadcast %cst_61 : f32 to vector<1x32xf32>
    %100 = arith.mulf %99, %82 : vector<1x32xf32>
    %cst_62 = arith.constant 5.000000e-01 : f32
    %101 = vector.broadcast %cst_62 : f32 to vector<1x32xf32>
    %102 = arith.addf %100, %101 : vector<1x32xf32>
    %cst_63 = arith.constant 5.000000e-01 : f32
    %103 = vector.broadcast %cst_63 : f32 to vector<1x32xf32>
    %104 = arith.mulf %103, %94 : vector<1x32xf32>
    %cst_64 = arith.constant 5.000000e-01 : f32
    %105 = vector.broadcast %cst_64 : f32 to vector<1x32xf32>
    %106 = arith.addf %104, %105 : vector<1x32xf32>
    %107 = arith.mulf %102, %66 : vector<1x32xf32>
    %108 = arith.mulf %98, %88 : vector<1x32xf32>
    %109 = arith.addf %107, %108 : vector<1x32xf32>
    %110 = math.tanh %109 : vector<1x32xf32>
    %111 = arith.mulf %106, %110 : vector<1x32xf32>
    %c1_65 = arith.constant 1 : index
    %c0_66 = arith.constant 0 : index
    %112 = vector.load %arg7[%c1_65, %c0_66] : memref<8x32xf32, #tpu.memory_space<vmem>>, vector<1x32xf32>
    tpu.vector_store %arg7[%c1_65, %c0_66], %111 {strides = array<i32>} : memref<8x32xf32, #tpu.memory_space<vmem>>, vector<1x32xf32>,
    %c6_67 = arith.constant 6 : index
    %c0_68 = arith.constant 0 : index
    %113 = vector.load %arg8[%c6_67, %c0_68] : memref<8x32xf32, #tpu.memory_space<vmem>>, vector<1x32xf32>
    tpu.vector_store %arg8[%c6_67, %c0_68], %111 {strides = array<i32>} : memref<8x32xf32, #tpu.memory_space<vmem>>, vector<1x32xf32>,
    %c2 = arith.constant 2 : index
    %c0_69 = arith.constant 0 : index
    %114 = vector.load %arg6[%c2, %c0_69] : memref<32x32xf32, #tpu.memory_space<vmem>>, vector<1x32xf32>
    %c5 = arith.constant 5 : index
    %c0_70 = arith.constant 0 : index
    %115 = vector.load %arg6[%c5, %c0_70] : memref<32x32xf32, #tpu.memory_space<vmem>>, vector<1x32xf32>
    %116 = arith.select %27, %114, %115 : vector<1x32xi1>, vector<1x32xf32>
    %cst_71 = arith.constant dense<0.000000e+00> : vector<1x32xf32>
    %117 = tpu.matmul %111, %19, %cst_71 {dimension_numbers = #tpu.dot_dimension_numbers<[1], [0], [0], [1], [0, 0, 1, 1], [], []>} : vector<1x32xf32>, vector<32x32xf32>, vector<1x32xf32> -> vector<1x32xf32>
    %118 = arith.addf %116, %117 : vector<1x32xf32>
    %119 = math.tanh %118 : vector<1x32xf32>
    %c10 = arith.constant 10 : index
    %c0_72 = arith.constant 0 : index
    %120 = vector.load %arg6[%c10, %c0_72] : memref<32x32xf32, #tpu.memory_space<vmem>>, vector<1x32xf32>
    %c13 = arith.constant 13 : index
    %c0_73 = arith.constant 0 : index
    %121 = vector.load %arg6[%c13, %c0_73] : memref<32x32xf32, #tpu.memory_space<vmem>>, vector<1x32xf32>
    %122 = arith.select %27, %120, %121 : vector<1x32xi1>, vector<1x32xf32>
    %cst_74 = arith.constant dense<0.000000e+00> : vector<1x32xf32>
    %123 = tpu.matmul %111, %20, %cst_74 {dimension_numbers = #tpu.dot_dimension_numbers<[1], [0], [0], [1], [0, 0, 1, 1], [], []>} : vector<1x32xf32>, vector<32x32xf32>, vector<1x32xf32> -> vector<1x32xf32>
    %124 = arith.addf %122, %123 : vector<1x32xf32>
    %125 = math.tanh %124 : vector<1x32xf32>
    %c18 = arith.constant 18 : index
    %c0_75 = arith.constant 0 : index
    %126 = vector.load %arg6[%c18, %c0_75] : memref<32x32xf32, #tpu.memory_space<vmem>>, vector<1x32xf32>
    %c21 = arith.constant 21 : index
    %c0_76 = arith.constant 0 : index
    %127 = vector.load %arg6[%c21, %c0_76] : memref<32x32xf32, #tpu.memory_space<vmem>>, vector<1x32xf32>
    %128 = arith.select %27, %126, %127 : vector<1x32xi1>, vector<1x32xf32>
    %cst_77 = arith.constant dense<0.000000e+00> : vector<1x32xf32>
    %129 = tpu.matmul %111, %21, %cst_77 {dimension_numbers = #tpu.dot_dimension_numbers<[1], [0], [0], [1], [0, 0, 1, 1], [], []>} : vector<1x32xf32>, vector<32x32xf32>, vector<1x32xf32> -> vector<1x32xf32>
    %130 = arith.addf %128, %129 : vector<1x32xf32>
    %131 = math.tanh %130 : vector<1x32xf32>
    %c26 = arith.constant 26 : index
    %c0_78 = arith.constant 0 : index
    %132 = vector.load %arg6[%c26, %c0_78] : memref<32x32xf32, #tpu.memory_space<vmem>>, vector<1x32xf32>
    %c29 = arith.constant 29 : index
    %c0_79 = arith.constant 0 : index
    %133 = vector.load %arg6[%c29, %c0_79] : memref<32x32xf32, #tpu.memory_space<vmem>>, vector<1x32xf32>
    %134 = arith.select %27, %132, %133 : vector<1x32xi1>, vector<1x32xf32>
    %cst_80 = arith.constant dense<0.000000e+00> : vector<1x32xf32>
    %135 = tpu.matmul %111, %22, %cst_80 {dimension_numbers = #tpu.dot_dimension_numbers<[1], [0], [0], [1], [0, 0, 1, 1], [], []>} : vector<1x32xf32>, vector<32x32xf32>, vector<1x32xf32> -> vector<1x32xf32>
    %136 = arith.addf %134, %135 : vector<1x32xf32>
    %137 = math.tanh %136 : vector<1x32xf32>
    %cst_81 = arith.constant 5.000000e-01 : f32
    %138 = vector.broadcast %cst_81 : f32 to vector<1x32xf32>
    %139 = arith.mulf %138, %119 : vector<1x32xf32>
    %cst_82 = arith.constant 5.000000e-01 : f32
    %140 = vector.broadcast %cst_82 : f32 to vector<1x32xf32>
    %141 = arith.addf %139, %140 : vector<1x32xf32>
    %cst_83 = arith.constant 5.000000e-01 : f32
    %142 = vector.broadcast %cst_83 : f32 to vector<1x32xf32>
    %143 = arith.mulf %142, %125 : vector<1x32xf32>
    %cst_84 = arith.constant 5.000000e-01 : f32
    %144 = vector.broadcast %cst_84 : f32 to vector<1x32xf32>
    %145 = arith.addf %143, %144 : vector<1x32xf32>
    %cst_85 = arith.constant 5.000000e-01 : f32
    %146 = vector.broadcast %cst_85 : f32 to vector<1x32xf32>
    %147 = arith.mulf %146, %137 : vector<1x32xf32>
    %cst_86 = arith.constant 5.000000e-01 : f32
    %148 = vector.broadcast %cst_86 : f32 to vector<1x32xf32>
    %149 = arith.addf %147, %148 : vector<1x32xf32>
    %150 = arith.mulf %145, %109 : vector<1x32xf32>
    %151 = arith.mulf %141, %131 : vector<1x32xf32>
    %152 = arith.addf %150, %151 : vector<1x32xf32>
    %153 = math.tanh %152 : vector<1x32xf32>
    %154 = arith.mulf %149, %153 : vector<1x32xf32>
    %c2_87 = arith.constant 2 : index
    %c0_88 = arith.constant 0 : index
    %155 = vector.load %arg7[%c2_87, %c0_88] : memref<8x32xf32, #tpu.memory_space<vmem>>, vector<1x32xf32>
    tpu.vector_store %arg7[%c2_87, %c0_88], %154 {strides = array<i32>} : memref<8x32xf32, #tpu.memory_space<vmem>>, vector<1x32xf32>,
    %c5_89 = arith.constant 5 : index
    %c0_90 = arith.constant 0 : index
    %156 = vector.load %arg8[%c5_89, %c0_90] : memref<8x32xf32, #tpu.memory_space<vmem>>, vector<1x32xf32>
    tpu.vector_store %arg8[%c5_89, %c0_90], %154 {strides = array<i32>} : memref<8x32xf32, #tpu.memory_space<vmem>>, vector<1x32xf32>,
    %c3 = arith.constant 3 : index
    %c0_91 = arith.constant 0 : index
    %157 = vector.load %arg6[%c3, %c0_91] : memref<32x32xf32, #tpu.memory_space<vmem>>, vector<1x32xf32>
    %c4 = arith.constant 4 : index
    %c0_92 = arith.constant 0 : index
    %158 = vector.load %arg6[%c4, %c0_92] : memref<32x32xf32, #tpu.memory_space<vmem>>, vector<1x32xf32>
    %159 = arith.select %27, %157, %158 : vector<1x32xi1>, vector<1x32xf32>
    %cst_93 = arith.constant dense<0.000000e+00> : vector<1x32xf32>
    %160 = tpu.matmul %154, %19, %cst_93 {dimension_numbers = #tpu.dot_dimension_numbers<[1], [0], [0], [1], [0, 0, 1, 1], [], []>} : vector<1x32xf32>, vector<32x32xf32>, vector<1x32xf32> -> vector<1x32xf32>
    %161 = arith.addf %159, %160 : vector<1x32xf32>
    %162 = math.tanh %161 : vector<1x32xf32>
    %c11 = arith.constant 11 : index
    %c0_94 = arith.constant 0 : index
    %163 = vector.load %arg6[%c11, %c0_94] : memref<32x32xf32, #tpu.memory_space<vmem>>, vector<1x32xf32>
    %c12 = arith.constant 12 : index
    %c0_95 = arith.constant 0 : index
    %164 = vector.load %arg6[%c12, %c0_95] : memref<32x32xf32, #tpu.memory_space<vmem>>, vector<1x32xf32>
    %165 = arith.select %27, %163, %164 : vector<1x32xi1>, vector<1x32xf32>
    %cst_96 = arith.constant dense<0.000000e+00> : vector<1x32xf32>
    %166 = tpu.matmul %154, %20, %cst_96 {dimension_numbers = #tpu.dot_dimension_numbers<[1], [0], [0], [1], [0, 0, 1, 1], [], []>} : vector<1x32xf32>, vector<32x32xf32>, vector<1x32xf32> -> vector<1x32xf32>
    %167 = arith.addf %165, %166 : vector<1x32xf32>
    %168 = math.tanh %167 : vector<1x32xf32>
    %c19 = arith.constant 19 : index
    %c0_97 = arith.constant 0 : index
    %169 = vector.load %arg6[%c19, %c0_97] : memref<32x32xf32, #tpu.memory_space<vmem>>, vector<1x32xf32>
    %c20 = arith.constant 20 : index
    %c0_98 = arith.constant 0 : index
    %170 = vector.load %arg6[%c20, %c0_98] : memref<32x32xf32, #tpu.memory_space<vmem>>, vector<1x32xf32>
    %171 = arith.select %27, %169, %170 : vector<1x32xi1>, vector<1x32xf32>
    %cst_99 = arith.constant dense<0.000000e+00> : vector<1x32xf32>
    %172 = tpu.matmul %154, %21, %cst_99 {dimension_numbers = #tpu.dot_dimension_numbers<[1], [0], [0], [1], [0, 0, 1, 1], [], []>} : vector<1x32xf32>, vector<32x32xf32>, vector<1x32xf32> -> vector<1x32xf32>
    %173 = arith.addf %171, %172 : vector<1x32xf32>
    %174 = math.tanh %173 : vector<1x32xf32>
    %c27 = arith.constant 27 : index
    %c0_100 = arith.constant 0 : index
    %175 = vector.load %arg6[%c27, %c0_100] : memref<32x32xf32, #tpu.memory_space<vmem>>, vector<1x32xf32>
    %c28 = arith.constant 28 : index
    %c0_101 = arith.constant 0 : index
    %176 = vector.load %arg6[%c28, %c0_101] : memref<32x32xf32, #tpu.memory_space<vmem>>, vector<1x32xf32>
    %177 = arith.select %27, %175, %176 : vector<1x32xi1>, vector<1x32xf32>
    %cst_102 = arith.constant dense<0.000000e+00> : vector<1x32xf32>
    %178 = tpu.matmul %154, %22, %cst_102 {dimension_numbers = #tpu.dot_dimension_numbers<[1], [0], [0], [1], [0, 0, 1, 1], [], []>} : vector<1x32xf32>, vector<32x32xf32>, vector<1x32xf32> -> vector<1x32xf32>
    %179 = arith.addf %177, %178 : vector<1x32xf32>
    %180 = math.tanh %179 : vector<1x32xf32>
    %cst_103 = arith.constant 5.000000e-01 : f32
    %181 = vector.broadcast %cst_103 : f32 to vector<1x32xf32>
    %182 = arith.mulf %181, %162 : vector<1x32xf32>
    %cst_104 = arith.constant 5.000000e-01 : f32
    %183 = vector.broadcast %cst_104 : f32 to vector<1x32xf32>
    %184 = arith.addf %182, %183 : vector<1x32xf32>
    %cst_105 = arith.constant 5.000000e-01 : f32
    %185 = vector.broadcast %cst_105 : f32 to vector<1x32xf32>
    %186 = arith.mulf %185, %168 : vector<1x32xf32>
    %cst_106 = arith.constant 5.000000e-01 : f32
    %187 = vector.broadcast %cst_106 : f32 to vector<1x32xf32>
    %188 = arith.addf %186, %187 : vector<1x32xf32>
    %cst_107 = arith.constant 5.000000e-01 : f32
    %189 = vector.broadcast %cst_107 : f32 to vector<1x32xf32>
    %190 = arith.mulf %189, %180 : vector<1x32xf32>
    %cst_108 = arith.constant 5.000000e-01 : f32
    %191 = vector.broadcast %cst_108 : f32 to vector<1x32xf32>
    %192 = arith.addf %190, %191 : vector<1x32xf32>
    %193 = arith.mulf %188, %152 : vector<1x32xf32>
    %194 = arith.mulf %184, %174 : vector<1x32xf32>
    %195 = arith.addf %193, %194 : vector<1x32xf32>
    %196 = math.tanh %195 : vector<1x32xf32>
    %197 = arith.mulf %192, %196 : vector<1x32xf32>
    %c3_109 = arith.constant 3 : index
    %c0_110 = arith.constant 0 : index
    %198 = vector.load %arg7[%c3_109, %c0_110] : memref<8x32xf32, #tpu.memory_space<vmem>>, vector<1x32xf32>
    tpu.vector_store %arg7[%c3_109, %c0_110], %197 {strides = array<i32>} : memref<8x32xf32, #tpu.memory_space<vmem>>, vector<1x32xf32>,
    %c4_111 = arith.constant 4 : index
    %c0_112 = arith.constant 0 : index
    %199 = vector.load %arg8[%c4_111, %c0_112] : memref<8x32xf32, #tpu.memory_space<vmem>>, vector<1x32xf32>
    tpu.vector_store %arg8[%c4_111, %c0_112], %197 {strides = array<i32>} : memref<8x32xf32, #tpu.memory_space<vmem>>, vector<1x32xf32>,
    %c4_113 = arith.constant 4 : index
    %c0_114 = arith.constant 0 : index
    %200 = vector.load %arg6[%c4_113, %c0_114] : memref<32x32xf32, #tpu.memory_space<vmem>>, vector<1x32xf32>
    %c3_115 = arith.constant 3 : index
    %c0_116 = arith.constant 0 : index
    %201 = vector.load %arg6[%c3_115, %c0_116] : memref<32x32xf32, #tpu.memory_space<vmem>>, vector<1x32xf32>
    %202 = arith.select %27, %200, %201 : vector<1x32xi1>, vector<1x32xf32>
    %cst_117 = arith.constant dense<0.000000e+00> : vector<1x32xf32>
    %203 = tpu.matmul %197, %19, %cst_117 {dimension_numbers = #tpu.dot_dimension_numbers<[1], [0], [0], [1], [0, 0, 1, 1], [], []>} : vector<1x32xf32>, vector<32x32xf32>, vector<1x32xf32> -> vector<1x32xf32>
    %204 = arith.addf %202, %203 : vector<1x32xf32>
    %205 = math.tanh %204 : vector<1x32xf32>
    %c12_118 = arith.constant 12 : index
    %c0_119 = arith.constant 0 : index
    %206 = vector.load %arg6[%c12_118, %c0_119] : memref<32x32xf32, #tpu.memory_space<vmem>>, vector<1x32xf32>
    %c11_120 = arith.constant 11 : index
    %c0_121 = arith.constant 0 : index
    %207 = vector.load %arg6[%c11_120, %c0_121] : memref<32x32xf32, #tpu.memory_space<vmem>>, vector<1x32xf32>
    %208 = arith.select %27, %206, %207 : vector<1x32xi1>, vector<1x32xf32>
    %cst_122 = arith.constant dense<0.000000e+00> : vector<1x32xf32>
    %209 = tpu.matmul %197, %20, %cst_122 {dimension_numbers = #tpu.dot_dimension_numbers<[1], [0], [0], [1], [0, 0, 1, 1], [], []>} : vector<1x32xf32>, vector<32x32xf32>, vector<1x32xf32> -> vector<1x32xf32>
    %210 = arith.addf %208, %209 : vector<1x32xf32>
    %211 = math.tanh %210 : vector<1x32xf32>
    %c20_123 = arith.constant 20 : index
    %c0_124 = arith.constant 0 : index
    %212 = vector.load %arg6[%c20_123, %c0_124] : memref<32x32xf32, #tpu.memory_space<vmem>>, vector<1x32xf32>
    %c19_125 = arith.constant 19 : index
    %c0_126 = arith.constant 0 : index
    %213 = vector.load %arg6[%c19_125, %c0_126] : memref<32x32xf32, #tpu.memory_space<vmem>>, vector<1x32xf32>
    %214 = arith.select %27, %212, %213 : vector<1x32xi1>, vector<1x32xf32>
    %cst_127 = arith.constant dense<0.000000e+00> : vector<1x32xf32>
    %215 = tpu.matmul %197, %21, %cst_127 {dimension_numbers = #tpu.dot_dimension_numbers<[1], [0], [0], [1], [0, 0, 1, 1], [], []>} : vector<1x32xf32>, vector<32x32xf32>, vector<1x32xf32> -> vector<1x32xf32>
    %216 = arith.addf %214, %215 : vector<1x32xf32>
    %217 = math.tanh %216 : vector<1x32xf32>
    %c28_128 = arith.constant 28 : index
    %c0_129 = arith.constant 0 : index
    %218 = vector.load %arg6[%c28_128, %c0_129] : memref<32x32xf32, #tpu.memory_space<vmem>>, vector<1x32xf32>
    %c27_130 = arith.constant 27 : index
    %c0_131 = arith.constant 0 : index
    %219 = vector.load %arg6[%c27_130, %c0_131] : memref<32x32xf32, #tpu.memory_space<vmem>>, vector<1x32xf32>
    %220 = arith.select %27, %218, %219 : vector<1x32xi1>, vector<1x32xf32>
    %cst_132 = arith.constant dense<0.000000e+00> : vector<1x32xf32>
    %221 = tpu.matmul %197, %22, %cst_132 {dimension_numbers = #tpu.dot_dimension_numbers<[1], [0], [0], [1], [0, 0, 1, 1], [], []>} : vector<1x32xf32>, vector<32x32xf32>, vector<1x32xf32> -> vector<1x32xf32>
    %222 = arith.addf %220, %221 : vector<1x32xf32>
    %223 = math.tanh %222 : vector<1x32xf32>
    %cst_133 = arith.constant 5.000000e-01 : f32
    %224 = vector.broadcast %cst_133 : f32 to vector<1x32xf32>
    %225 = arith.mulf %224, %205 : vector<1x32xf32>
    %cst_134 = arith.constant 5.000000e-01 : f32
    %226 = vector.broadcast %cst_134 : f32 to vector<1x32xf32>
    %227 = arith.addf %225, %226 : vector<1x32xf32>
    %cst_135 = arith.constant 5.000000e-01 : f32
    %228 = vector.broadcast %cst_135 : f32 to vector<1x32xf32>
    %229 = arith.mulf %228, %211 : vector<1x32xf32>
    %cst_136 = arith.constant 5.000000e-01 : f32
    %230 = vector.broadcast %cst_136 : f32 to vector<1x32xf32>
    %231 = arith.addf %229, %230 : vector<1x32xf32>
    %cst_137 = arith.constant 5.000000e-01 : f32
    %232 = vector.broadcast %cst_137 : f32 to vector<1x32xf32>
    %233 = arith.mulf %232, %223 : vector<1x32xf32>
    %cst_138 = arith.constant 5.000000e-01 : f32
    %234 = vector.broadcast %cst_138 : f32 to vector<1x32xf32>
    %235 = arith.addf %233, %234 : vector<1x32xf32>
    %236 = arith.mulf %231, %195 : vector<1x32xf32>
    %237 = arith.mulf %227, %217 : vector<1x32xf32>
    %238 = arith.addf %236, %237 : vector<1x32xf32>
    %239 = math.tanh %238 : vector<1x32xf32>
    %240 = arith.mulf %235, %239 : vector<1x32xf32>
    %c4_139 = arith.constant 4 : index
    %c0_140 = arith.constant 0 : index
    %241 = vector.load %arg7[%c4_139, %c0_140] : memref<8x32xf32, #tpu.memory_space<vmem>>, vector<1x32xf32>
    tpu.vector_store %arg7[%c4_139, %c0_140], %240 {strides = array<i32>} : memref<8x32xf32, #tpu.memory_space<vmem>>, vector<1x32xf32>,
    %c3_141 = arith.constant 3 : index
    %c0_142 = arith.constant 0 : index
    %242 = vector.load %arg8[%c3_141, %c0_142] : memref<8x32xf32, #tpu.memory_space<vmem>>, vector<1x32xf32>
    tpu.vector_store %arg8[%c3_141, %c0_142], %240 {strides = array<i32>} : memref<8x32xf32, #tpu.memory_space<vmem>>, vector<1x32xf32>,
    %c5_143 = arith.constant 5 : index
    %c0_144 = arith.constant 0 : index
    %243 = vector.load %arg6[%c5_143, %c0_144] : memref<32x32xf32, #tpu.memory_space<vmem>>, vector<1x32xf32>
    %c2_145 = arith.constant 2 : index
    %c0_146 = arith.constant 0 : index
    %244 = vector.load %arg6[%c2_145, %c0_146] : memref<32x32xf32, #tpu.memory_space<vmem>>, vector<1x32xf32>
    %245 = arith.select %27, %243, %244 : vector<1x32xi1>, vector<1x32xf32>
    %cst_147 = arith.constant dense<0.000000e+00> : vector<1x32xf32>
    %246 = tpu.matmul %240, %19, %cst_147 {dimension_numbers = #tpu.dot_dimension_numbers<[1], [0], [0], [1], [0, 0, 1, 1], [], []>} : vector<1x32xf32>, vector<32x32xf32>, vector<1x32xf32> -> vector<1x32xf32>
    %247 = arith.addf %245, %246 : vector<1x32xf32>
    %248 = math.tanh %247 : vector<1x32xf32>
    %c13_148 = arith.constant 13 : index
    %c0_149 = arith.constant 0 : index
    %249 = vector.load %arg6[%c13_148, %c0_149] : memref<32x32xf32, #tpu.memory_space<vmem>>, vector<1x32xf32>
    %c10_150 = arith.constant 10 : index
    %c0_151 = arith.constant 0 : index
    %250 = vector.load %arg6[%c10_150, %c0_151] : memref<32x32xf32, #tpu.memory_space<vmem>>, vector<1x32xf32>
    %251 = arith.select %27, %249, %250 : vector<1x32xi1>, vector<1x32xf32>
    %cst_152 = arith.constant dense<0.000000e+00> : vector<1x32xf32>
    %252 = tpu.matmul %240, %20, %cst_152 {dimension_numbers = #tpu.dot_dimension_numbers<[1], [0], [0], [1], [0, 0, 1, 1], [], []>} : vector<1x32xf32>, vector<32x32xf32>, vector<1x32xf32> -> vector<1x32xf32>
    %253 = arith.addf %251, %252 : vector<1x32xf32>
    %254 = math.tanh %253 : vector<1x32xf32>
    %c21_153 = arith.constant 21 : index
    %c0_154 = arith.constant 0 : index
    %255 = vector.load %arg6[%c21_153, %c0_154] : memref<32x32xf32, #tpu.memory_space<vmem>>, vector<1x32xf32>
    %c18_155 = arith.constant 18 : index
    %c0_156 = arith.constant 0 : index
    %256 = vector.load %arg6[%c18_155, %c0_156] : memref<32x32xf32, #tpu.memory_space<vmem>>, vector<1x32xf32>
    %257 = arith.select %27, %255, %256 : vector<1x32xi1>, vector<1x32xf32>
    %cst_157 = arith.constant dense<0.000000e+00> : vector<1x32xf32>
    %258 = tpu.matmul %240, %21, %cst_157 {dimension_numbers = #tpu.dot_dimension_numbers<[1], [0], [0], [1], [0, 0, 1, 1], [], []>} : vector<1x32xf32>, vector<32x32xf32>, vector<1x32xf32> -> vector<1x32xf32>
    %259 = arith.addf %257, %258 : vector<1x32xf32>
    %260 = math.tanh %259 : vector<1x32xf32>
    %c29_158 = arith.constant 29 : index
    %c0_159 = arith.constant 0 : index
    %261 = vector.load %arg6[%c29_158, %c0_159] : memref<32x32xf32, #tpu.memory_space<vmem>>, vector<1x32xf32>
    %c26_160 = arith.constant 26 : index
    %c0_161 = arith.constant 0 : index
    %262 = vector.load %arg6[%c26_160, %c0_161] : memref<32x32xf32, #tpu.memory_space<vmem>>, vector<1x32xf32>
    %263 = arith.select %27, %261, %262 : vector<1x32xi1>, vector<1x32xf32>
    %cst_162 = arith.constant dense<0.000000e+00> : vector<1x32xf32>
    %264 = tpu.matmul %240, %22, %cst_162 {dimension_numbers = #tpu.dot_dimension_numbers<[1], [0], [0], [1], [0, 0, 1, 1], [], []>} : vector<1x32xf32>, vector<32x32xf32>, vector<1x32xf32> -> vector<1x32xf32>
    %265 = arith.addf %263, %264 : vector<1x32xf32>
    %266 = math.tanh %265 : vector<1x32xf32>
    %cst_163 = arith.constant 5.000000e-01 : f32
    %267 = vector.broadcast %cst_163 : f32 to vector<1x32xf32>
    %268 = arith.mulf %267, %248 : vector<1x32xf32>
    %cst_164 = arith.constant 5.000000e-01 : f32
    %269 = vector.broadcast %cst_164 : f32 to vector<1x32xf32>
    %270 = arith.addf %268, %269 : vector<1x32xf32>
    %cst_165 = arith.constant 5.000000e-01 : f32
    %271 = vector.broadcast %cst_165 : f32 to vector<1x32xf32>
    %272 = arith.mulf %271, %254 : vector<1x32xf32>
    %cst_166 = arith.constant 5.000000e-01 : f32
    %273 = vector.broadcast %cst_166 : f32 to vector<1x32xf32>
    %274 = arith.addf %272, %273 : vector<1x32xf32>
    %cst_167 = arith.constant 5.000000e-01 : f32
    %275 = vector.broadcast %cst_167 : f32 to vector<1x32xf32>
    %276 = arith.mulf %275, %266 : vector<1x32xf32>
    %cst_168 = arith.constant 5.000000e-01 : f32
    %277 = vector.broadcast %cst_168 : f32 to vector<1x32xf32>
    %278 = arith.addf %276, %277 : vector<1x32xf32>
    %279 = arith.mulf %274, %238 : vector<1x32xf32>
    %280 = arith.mulf %270, %260 : vector<1x32xf32>
    %281 = arith.addf %279, %280 : vector<1x32xf32>
    %282 = math.tanh %281 : vector<1x32xf32>
    %283 = arith.mulf %278, %282 : vector<1x32xf32>
    %c5_169 = arith.constant 5 : index
    %c0_170 = arith.constant 0 : index
    %284 = vector.load %arg7[%c5_169, %c0_170] : memref<8x32xf32, #tpu.memory_space<vmem>>, vector<1x32xf32>
    tpu.vector_store %arg7[%c5_169, %c0_170], %283 {strides = array<i32>} : memref<8x32xf32, #tpu.memory_space<vmem>>, vector<1x32xf32>,
    %c2_171 = arith.constant 2 : index
    %c0_172 = arith.constant 0 : index
    %285 = vector.load %arg8[%c2_171, %c0_172] : memref<8x32xf32, #tpu.memory_space<vmem>>, vector<1x32xf32>
    tpu.vector_store %arg8[%c2_171, %c0_172], %283 {strides = array<i32>} : memref<8x32xf32, #tpu.memory_space<vmem>>, vector<1x32xf32>,
    %c6_173 = arith.constant 6 : index
    %c0_174 = arith.constant 0 : index
    %286 = vector.load %arg6[%c6_173, %c0_174] : memref<32x32xf32, #tpu.memory_space<vmem>>, vector<1x32xf32>
    %c1_175 = arith.constant 1 : index
    %c0_176 = arith.constant 0 : index
    %287 = vector.load %arg6[%c1_175, %c0_176] : memref<32x32xf32, #tpu.memory_space<vmem>>, vector<1x32xf32>
    %288 = arith.select %27, %286, %287 : vector<1x32xi1>, vector<1x32xf32>
    %cst_177 = arith.constant dense<0.000000e+00> : vector<1x32xf32>
    %289 = tpu.matmul %283, %19, %cst_177 {dimension_numbers = #tpu.dot_dimension_numbers<[1], [0], [0], [1], [0, 0, 1, 1], [], []>} : vector<1x32xf32>, vector<32x32xf32>, vector<1x32xf32> -> vector<1x32xf32>
    %290 = arith.addf %288, %289 : vector<1x32xf32>
    %291 = math.tanh %290 : vector<1x32xf32>
    %c14_178 = arith.constant 14 : index
    %c0_179 = arith.constant 0 : index
    %292 = vector.load %arg6[%c14_178, %c0_179] : memref<32x32xf32, #tpu.memory_space<vmem>>, vector<1x32xf32>
    %c9_180 = arith.constant 9 : index
    %c0_181 = arith.constant 0 : index
    %293 = vector.load %arg6[%c9_180, %c0_181] : memref<32x32xf32, #tpu.memory_space<vmem>>, vector<1x32xf32>
    %294 = arith.select %27, %292, %293 : vector<1x32xi1>, vector<1x32xf32>
    %cst_182 = arith.constant dense<0.000000e+00> : vector<1x32xf32>
    %295 = tpu.matmul %283, %20, %cst_182 {dimension_numbers = #tpu.dot_dimension_numbers<[1], [0], [0], [1], [0, 0, 1, 1], [], []>} : vector<1x32xf32>, vector<32x32xf32>, vector<1x32xf32> -> vector<1x32xf32>
    %296 = arith.addf %294, %295 : vector<1x32xf32>
    %297 = math.tanh %296 : vector<1x32xf32>
    %c22_183 = arith.constant 22 : index
    %c0_184 = arith.constant 0 : index
    %298 = vector.load %arg6[%c22_183, %c0_184] : memref<32x32xf32, #tpu.memory_space<vmem>>, vector<1x32xf32>
    %c17_185 = arith.constant 17 : index
    %c0_186 = arith.constant 0 : index
    %299 = vector.load %arg6[%c17_185, %c0_186] : memref<32x32xf32, #tpu.memory_space<vmem>>, vector<1x32xf32>
    %300 = arith.select %27, %298, %299 : vector<1x32xi1>, vector<1x32xf32>
    %cst_187 = arith.constant dense<0.000000e+00> : vector<1x32xf32>
    %301 = tpu.matmul %283, %21, %cst_187 {dimension_numbers = #tpu.dot_dimension_numbers<[1], [0], [0], [1], [0, 0, 1, 1], [], []>} : vector<1x32xf32>, vector<32x32xf32>, vector<1x32xf32> -> vector<1x32xf32>
    %302 = arith.addf %300, %301 : vector<1x32xf32>
    %303 = math.tanh %302 : vector<1x32xf32>
    %c30_188 = arith.constant 30 : index
    %c0_189 = arith.constant 0 : index
    %304 = vector.load %arg6[%c30_188, %c0_189] : memref<32x32xf32, #tpu.memory_space<vmem>>, vector<1x32xf32>
    %c25_190 = arith.constant 25 : index
    %c0_191 = arith.constant 0 : index
    %305 = vector.load %arg6[%c25_190, %c0_191] : memref<32x32xf32, #tpu.memory_space<vmem>>, vector<1x32xf32>
    %306 = arith.select %27, %304, %305 : vector<1x32xi1>, vector<1x32xf32>
    %cst_192 = arith.constant dense<0.000000e+00> : vector<1x32xf32>
    %307 = tpu.matmul %283, %22, %cst_192 {dimension_numbers = #tpu.dot_dimension_numbers<[1], [0], [0], [1], [0, 0, 1, 1], [], []>} : vector<1x32xf32>, vector<32x32xf32>, vector<1x32xf32> -> vector<1x32xf32>
    %308 = arith.addf %306, %307 : vector<1x32xf32>
    %309 = math.tanh %308 : vector<1x32xf32>
    %cst_193 = arith.constant 5.000000e-01 : f32
    %310 = vector.broadcast %cst_193 : f32 to vector<1x32xf32>
    %311 = arith.mulf %310, %291 : vector<1x32xf32>
    %cst_194 = arith.constant 5.000000e-01 : f32
    %312 = vector.broadcast %cst_194 : f32 to vector<1x32xf32>
    %313 = arith.addf %311, %312 : vector<1x32xf32>
    %cst_195 = arith.constant 5.000000e-01 : f32
    %314 = vector.broadcast %cst_195 : f32 to vector<1x32xf32>
    %315 = arith.mulf %314, %297 : vector<1x32xf32>
    %cst_196 = arith.constant 5.000000e-01 : f32
    %316 = vector.broadcast %cst_196 : f32 to vector<1x32xf32>
    %317 = arith.addf %315, %316 : vector<1x32xf32>
    %cst_197 = arith.constant 5.000000e-01 : f32
    %318 = vector.broadcast %cst_197 : f32 to vector<1x32xf32>
    %319 = arith.mulf %318, %309 : vector<1x32xf32>
    %cst_198 = arith.constant 5.000000e-01 : f32
    %320 = vector.broadcast %cst_198 : f32 to vector<1x32xf32>
    %321 = arith.addf %319, %320 : vector<1x32xf32>
    %322 = arith.mulf %317, %281 : vector<1x32xf32>
    %323 = arith.mulf %313, %303 : vector<1x32xf32>
    %324 = arith.addf %322, %323 : vector<1x32xf32>
    %325 = math.tanh %324 : vector<1x32xf32>
    %326 = arith.mulf %321, %325 : vector<1x32xf32>
    %c6_199 = arith.constant 6 : index
    %c0_200 = arith.constant 0 : index
    %327 = vector.load %arg7[%c6_199, %c0_200] : memref<8x32xf32, #tpu.memory_space<vmem>>, vector<1x32xf32>
    tpu.vector_store %arg7[%c6_199, %c0_200], %326 {strides = array<i32>} : memref<8x32xf32, #tpu.memory_space<vmem>>, vector<1x32xf32>,
    %c1_201 = arith.constant 1 : index
    %c0_202 = arith.constant 0 : index
    %328 = vector.load %arg8[%c1_201, %c0_202] : memref<8x32xf32, #tpu.memory_space<vmem>>, vector<1x32xf32>
    tpu.vector_store %arg8[%c1_201, %c0_202], %326 {strides = array<i32>} : memref<8x32xf32, #tpu.memory_space<vmem>>, vector<1x32xf32>,
    %c7_203 = arith.constant 7 : index
    %c0_204 = arith.constant 0 : index
    %329 = vector.load %arg6[%c7_203, %c0_204] : memref<32x32xf32, #tpu.memory_space<vmem>>, vector<1x32xf32>
    %c0_205 = arith.constant 0 : index
    %c0_206 = arith.constant 0 : index
    %330 = vector.load %arg6[%c0_205, %c0_206] : memref<32x32xf32, #tpu.memory_space<vmem>>, vector<1x32xf32>
    %331 = arith.select %27, %329, %330 : vector<1x32xi1>, vector<1x32xf32>
    %cst_207 = arith.constant dense<0.000000e+00> : vector<1x32xf32>
    %332 = tpu.matmul %326, %19, %cst_207 {dimension_numbers = #tpu.dot_dimension_numbers<[1], [0], [0], [1], [0, 0, 1, 1], [], []>} : vector<1x32xf32>, vector<32x32xf32>, vector<1x32xf32> -> vector<1x32xf32>
    %333 = arith.addf %331, %332 : vector<1x32xf32>
    %334 = math.tanh %333 : vector<1x32xf32>
    %c15_208 = arith.constant 15 : index
    %c0_209 = arith.constant 0 : index
    %335 = vector.load %arg6[%c15_208, %c0_209] : memref<32x32xf32, #tpu.memory_space<vmem>>, vector<1x32xf32>
    %c8_210 = arith.constant 8 : index
    %c0_211 = arith.constant 0 : index
    %336 = vector.load %arg6[%c8_210, %c0_211] : memref<32x32xf32, #tpu.memory_space<vmem>>, vector<1x32xf32>
    %337 = arith.select %27, %335, %336 : vector<1x32xi1>, vector<1x32xf32>
    %cst_212 = arith.constant dense<0.000000e+00> : vector<1x32xf32>
    %338 = tpu.matmul %326, %20, %cst_212 {dimension_numbers = #tpu.dot_dimension_numbers<[1], [0], [0], [1], [0, 0, 1, 1], [], []>} : vector<1x32xf32>, vector<32x32xf32>, vector<1x32xf32> -> vector<1x32xf32>
    %339 = arith.addf %337, %338 : vector<1x32xf32>
    %340 = math.tanh %339 : vector<1x32xf32>
    %c23_213 = arith.constant 23 : index
    %c0_214 = arith.constant 0 : index
    %341 = vector.load %arg6[%c23_213, %c0_214] : memref<32x32xf32, #tpu.memory_space<vmem>>, vector<1x32xf32>
    %c16_215 = arith.constant 16 : index
    %c0_216 = arith.constant 0 : index
    %342 = vector.load %arg6[%c16_215, %c0_216] : memref<32x32xf32, #tpu.memory_space<vmem>>, vector<1x32xf32>
    %343 = arith.select %27, %341, %342 : vector<1x32xi1>, vector<1x32xf32>
    %cst_217 = arith.constant dense<0.000000e+00> : vector<1x32xf32>
    %344 = tpu.matmul %326, %21, %cst_217 {dimension_numbers = #tpu.dot_dimension_numbers<[1], [0], [0], [1], [0, 0, 1, 1], [], []>} : vector<1x32xf32>, vector<32x32xf32>, vector<1x32xf32> -> vector<1x32xf32>
    %345 = arith.addf %343, %344 : vector<1x32xf32>
    %346 = math.tanh %345 : vector<1x32xf32>
    %c31_218 = arith.constant 31 : index
    %c0_219 = arith.constant 0 : index
    %347 = vector.load %arg6[%c31_218, %c0_219] : memref<32x32xf32, #tpu.memory_space<vmem>>, vector<1x32xf32>
    %c24_220 = arith.constant 24 : index
    %c0_221 = arith.constant 0 : index
    %348 = vector.load %arg6[%c24_220, %c0_221] : memref<32x32xf32, #tpu.memory_space<vmem>>, vector<1x32xf32>
    %349 = arith.select %27, %347, %348 : vector<1x32xi1>, vector<1x32xf32>
    %cst_222 = arith.constant dense<0.000000e+00> : vector<1x32xf32>
    %350 = tpu.matmul %326, %22, %cst_222 {dimension_numbers = #tpu.dot_dimension_numbers<[1], [0], [0], [1], [0, 0, 1, 1], [], []>} : vector<1x32xf32>, vector<32x32xf32>, vector<1x32xf32> -> vector<1x32xf32>
    %351 = arith.addf %349, %350 : vector<1x32xf32>
    %352 = math.tanh %351 : vector<1x32xf32>
    %cst_223 = arith.constant 5.000000e-01 : f32
    %353 = vector.broadcast %cst_223 : f32 to vector<1x32xf32>
    %354 = arith.mulf %353, %334 : vector<1x32xf32>
    %cst_224 = arith.constant 5.000000e-01 : f32
    %355 = vector.broadcast %cst_224 : f32 to vector<1x32xf32>
    %356 = arith.addf %354, %355 : vector<1x32xf32>
    %cst_225 = arith.constant 5.000000e-01 : f32
    %357 = vector.broadcast %cst_225 : f32 to vector<1x32xf32>
    %358 = arith.mulf %357, %340 : vector<1x32xf32>
    %cst_226 = arith.constant 5.000000e-01 : f32
    %359 = vector.broadcast %cst_226 : f32 to vector<1x32xf32>
    %360 = arith.addf %358, %359 : vector<1x32xf32>
    %cst_227 = arith.constant 5.000000e-01 : f32
    %361 = vector.broadcast %cst_227 : f32 to vector<1x32xf32>
    %362 = arith.mulf %361, %352 : vector<1x32xf32>
    %cst_228 = arith.constant 5.000000e-01 : f32
    %363 = vector.broadcast %cst_228 : f32 to vector<1x32xf32>
    %364 = arith.addf %362, %363 : vector<1x32xf32>
    %365 = arith.mulf %360, %324 : vector<1x32xf32>
    %366 = arith.mulf %356, %346 : vector<1x32xf32>
    %367 = arith.addf %365, %366 : vector<1x32xf32>
    %368 = math.tanh %367 : vector<1x32xf32>
    %369 = arith.mulf %364, %368 : vector<1x32xf32>
    %c7_229 = arith.constant 7 : index
    %c0_230 = arith.constant 0 : index
    %370 = vector.load %arg7[%c7_229, %c0_230] : memref<8x32xf32, #tpu.memory_space<vmem>>, vector<1x32xf32>
    tpu.vector_store %arg7[%c7_229, %c0_230], %369 {strides = array<i32>} : memref<8x32xf32, #tpu.memory_space<vmem>>, vector<1x32xf32>,
    %c0_231 = arith.constant 0 : index
    %c0_232 = arith.constant 0 : index
    %371 = vector.load %arg8[%c0_231, %c0_232] : memref<8x32xf32, #tpu.memory_space<vmem>>, vector<1x32xf32>
    tpu.vector_store %arg8[%c0_231, %c0_232], %369 {strides = array<i32>} : memref<8x32xf32, #tpu.memory_space<vmem>>, vector<1x32xf32>,
    %c8_233 = arith.constant 8 : index
    %c0_234 = arith.constant 0 : index
    %372 = vector.load %arg2[%c8_233, %c0_234] : memref<72x5xf32, #tpu.memory_space<vmem>>, vector<32x5xf32>
    %c40 = arith.constant 40 : index
    %c0_235 = arith.constant 0 : index
    %373 = vector.load %arg2[%c40, %c0_235] : memref<72x5xf32, #tpu.memory_space<vmem>>, vector<32x5xf32>
    %c6_236 = arith.constant 6 : index
    %c0_237 = arith.constant 0 : index
    %374 = vector.load %arg2[%c6_236, %c0_237] : memref<72x5xf32, #tpu.memory_space<vmem>>, vector<1x5xf32>
    %c0_238 = arith.constant 0 : index
    %c0_239 = arith.constant 0 : index
    %375 = vector.load %arg7[%c0_238, %c0_239] : memref<8x32xf32, #tpu.memory_space<vmem>>, vector<8x32xf32>
    %cst_240 = arith.constant dense<0.000000e+00> : vector<8x5xf32>
    %376 = tpu.matmul %375, %372, %cst_240 {dimension_numbers = #tpu.dot_dimension_numbers<[1], [0], [0], [1], [0, 0, 1, 1], [], []>} : vector<8x32xf32>, vector<32x5xf32>, vector<8x5xf32> -> vector<8x5xf32>
    %c0_241 = arith.constant 0 : index
    %c0_242 = arith.constant 0 : index
    %377 = vector.load %arg8[%c0_241, %c0_242] : memref<8x32xf32, #tpu.memory_space<vmem>>, vector<8x32xf32>
    %cst_243 = arith.constant dense<0.000000e+00> : vector<8x5xf32>
    %378 = tpu.matmul %377, %373, %cst_243 {dimension_numbers = #tpu.dot_dimension_numbers<[1], [0], [0], [1], [0, 0, 1, 1], [], []>} : vector<8x32xf32>, vector<32x5xf32>, vector<8x5xf32> -> vector<8x5xf32>
    %379 = arith.addf %376, %378 : vector<8x5xf32>
    %380 = vector.broadcast %374 : vector<1x5xf32> to vector<8x5xf32>
    %381 = arith.addf %379, %380 : vector<8x5xf32>
    %c0_244 = arith.constant 0 : index
    %c0_245 = arith.constant 0 : index
    %382 = vector.load %arg3[%c0_244, %c0_245] : memref<8x5xf32, #tpu.memory_space<vmem>>, vector<8x5xf32>
    tpu.vector_store %arg3[%c0_244, %c0_245], %381 {strides = array<i32>} : memref<8x5xf32, #tpu.memory_space<vmem>>, vector<8x5xf32>,
    %c0_246 = arith.constant 0 : index
    %c0_247 = arith.constant 0 : index
    %383 = vector.load %arg2[%c0_246, %c0_247] : memref<72x5xf32, #tpu.memory_space<vmem>>, vector<5x5xf32>
    %c5_248 = arith.constant 5 : index
    %c0_249 = arith.constant 0 : index
    %384 = vector.load %arg2[%c5_248, %c0_249] : memref<72x5xf32, #tpu.memory_space<vmem>>, vector<1x5xf32>
    %385 = tpu.iota {dimensions = array<i32: 0>} : vector<5x5xi32>
    %386 = tpu.iota {dimensions = array<i32: 1>} : vector<5x5xi32>
    %387 = tpu.iota {dimensions = array<i32: 1>} : vector<1x5xi32>
    %388 = tpu.iota {dimensions = array<i32: 0>} : vector<5x1xi32>
    %389 = arith.cmpi eq, %385, %386 : vector<5x5xi32>
    %c3_i32 = arith.constant 3 : i32
    %390 = vector.broadcast %c3_i32 : i32 to vector<5x1xi32>
    %391 = arith.cmpi eq, %388, %390 : vector<5x1xi32>
    %cst_250 = arith.constant 0.000000e+00 : f32
    %cst_251 = arith.constant -1.000000e+04 : f32
    %392 = vector.broadcast %cst_250 : f32 to vector<5x1xf32>
    %393 = vector.broadcast %cst_251 : f32 to vector<5x1xf32>
    %394 = arith.select %391, %392, %393 : vector<5x1xi1>, vector<5x1xf32>
    %395 = vector.broadcast %394 : vector<5x1xf32> to vector<5x5xf32>
    %396 = arith.addf %395, %383 : vector<5x5xf32>
    %cst_252 = arith.constant dense<0xFF800000> : vector<5xf32>
    %397 = vector.multi_reduction <maximumf>, %396, %cst_252 [0] : vector<5x5xf32> to vector<5xf32>
    %398 = vector.shape_cast %397 : vector<5xf32> to vector<1x5xf32>
    %c0_253 = arith.constant 0 : index
    %c0_254 = arith.constant 0 : index
    %399 = vector.load %arg3[%c0_253, %c0_254] : memref<8x5xf32, #tpu.memory_space<vmem>>, vector<1x5xf32>
    %400 = arith.addf %398, %399 : vector<1x5xf32>
    %cst_255 = arith.constant 0.000000e+00 : f32
    %401 = vector.shape_cast %400 : vector<1x5xf32> to vector<1x5xf32>
    %402 = vector.broadcast %401 : vector<1x5xf32> to vector<5x5xf32>
    %403 = vector.broadcast %cst_255 : f32 to vector<5x5xf32>
    %404 = arith.select %389, %402, %403 : vector<5x5xi1>, vector<5x5xf32>
    %cst_256 = arith.constant dense<0.000000e+00> : vector<5xf32>
    %405 = vector.multi_reduction <add>, %404, %cst_256 [1] : vector<5x5xf32> to vector<5xf32>
    %406 = vector.shape_cast %405 : vector<5xf32> to vector<5x1xf32>
    %407 = vector.broadcast %406 : vector<5x1xf32> to vector<5x5xf32>
    %408 = arith.addf %407, %383 : vector<5x5xf32>
    %cst_257 = arith.constant dense<0xFF800000> : vector<5xf32>
    %409 = vector.multi_reduction <maximumf>, %408, %cst_257 [0] : vector<5x5xf32> to vector<5xf32>
    %410 = vector.shape_cast %409 : vector<5xf32> to vector<1x5xf32>
    %411 = vector.broadcast %410 : vector<1x5xf32> to vector<5x5xf32>
    %412 = arith.cmpf oeq, %408, %411 : vector<5x5xf32>
    %c5_i32 = arith.constant 5 : i32
    %413 = vector.broadcast %c5_i32 : i32 to vector<5x5xi32>
    %414 = arith.select %412, %385, %413 : vector<5x5xi1>, vector<5x5xi32>
    %cst_258 = arith.constant dense<2147483647> : vector<5xi32>
    %415 = vector.multi_reduction <minsi>, %414, %cst_258 [0] : vector<5x5xi32> to vector<5xi32>
    %416 = vector.shape_cast %415 : vector<5xi32> to vector<1x5xi32>
    %c1_259 = arith.constant 1 : index
    %c0_260 = arith.constant 0 : index
    %417 = vector.load %arg3[%c1_259, %c0_260] : memref<8x5xf32, #tpu.memory_space<vmem>>, vector<1x5xf32>
    %418 = arith.addf %410, %417 : vector<1x5xf32>
    %cst_261 = arith.constant 0.000000e+00 : f32
    %419 = vector.shape_cast %418 : vector<1x5xf32> to vector<1x5xf32>
    %420 = vector.broadcast %419 : vector<1x5xf32> to vector<5x5xf32>
    %421 = vector.broadcast %cst_261 : f32 to vector<5x5xf32>
    %422 = arith.select %389, %420, %421 : vector<5x5xi1>, vector<5x5xf32>
    %cst_262 = arith.constant dense<0.000000e+00> : vector<5xf32>
    %423 = vector.multi_reduction <add>, %422, %cst_262 [1] : vector<5x5xf32> to vector<5xf32>
    %424 = vector.shape_cast %423 : vector<5xf32> to vector<5x1xf32>
    %425 = vector.broadcast %424 : vector<5x1xf32> to vector<5x5xf32>
    %426 = arith.addf %425, %383 : vector<5x5xf32>
    %cst_263 = arith.constant dense<0xFF800000> : vector<5xf32>
    %427 = vector.multi_reduction <maximumf>, %426, %cst_263 [0] : vector<5x5xf32> to vector<5xf32>
    %428 = vector.shape_cast %427 : vector<5xf32> to vector<1x5xf32>
    %429 = vector.broadcast %428 : vector<1x5xf32> to vector<5x5xf32>
    %430 = arith.cmpf oeq, %426, %429 : vector<5x5xf32>
    %c5_i32_264 = arith.constant 5 : i32
    %431 = vector.broadcast %c5_i32_264 : i32 to vector<5x5xi32>
    %432 = arith.select %430, %385, %431 : vector<5x5xi1>, vector<5x5xi32>
    %cst_265 = arith.constant dense<2147483647> : vector<5xi32>
    %433 = vector.multi_reduction <minsi>, %432, %cst_265 [0] : vector<5x5xi32> to vector<5xi32>
    %434 = vector.shape_cast %433 : vector<5xi32> to vector<1x5xi32>
    %c2_266 = arith.constant 2 : index
    %c0_267 = arith.constant 0 : index
    %435 = vector.load %arg3[%c2_266, %c0_267] : memref<8x5xf32, #tpu.memory_space<vmem>>, vector<1x5xf32>
    %436 = arith.addf %428, %435 : vector<1x5xf32>
    %cst_268 = arith.constant 0.000000e+00 : f32
    %437 = vector.shape_cast %436 : vector<1x5xf32> to vector<1x5xf32>
    %438 = vector.broadcast %437 : vector<1x5xf32> to vector<5x5xf32>
    %439 = vector.broadcast %cst_268 : f32 to vector<5x5xf32>
    %440 = arith.select %389, %438, %439 : vector<5x5xi1>, vector<5x5xf32>
    %cst_269 = arith.constant dense<0.000000e+00> : vector<5xf32>
    %441 = vector.multi_reduction <add>, %440, %cst_269 [1] : vector<5x5xf32> to vector<5xf32>
    %442 = vector.shape_cast %441 : vector<5xf32> to vector<5x1xf32>
    %443 = vector.broadcast %442 : vector<5x1xf32> to vector<5x5xf32>
    %444 = arith.addf %443, %383 : vector<5x5xf32>
    %cst_270 = arith.constant dense<0xFF800000> : vector<5xf32>
    %445 = vector.multi_reduction <maximumf>, %444, %cst_270 [0] : vector<5x5xf32> to vector<5xf32>
    %446 = vector.shape_cast %445 : vector<5xf32> to vector<1x5xf32>
    %447 = vector.broadcast %446 : vector<1x5xf32> to vector<5x5xf32>
    %448 = arith.cmpf oeq, %444, %447 : vector<5x5xf32>
    %c5_i32_271 = arith.constant 5 : i32
    %449 = vector.broadcast %c5_i32_271 : i32 to vector<5x5xi32>
    %450 = arith.select %448, %385, %449 : vector<5x5xi1>, vector<5x5xi32>
    %cst_272 = arith.constant dense<2147483647> : vector<5xi32>
    %451 = vector.multi_reduction <minsi>, %450, %cst_272 [0] : vector<5x5xi32> to vector<5xi32>
    %452 = vector.shape_cast %451 : vector<5xi32> to vector<1x5xi32>
    %c3_273 = arith.constant 3 : index
    %c0_274 = arith.constant 0 : index
    %453 = vector.load %arg3[%c3_273, %c0_274] : memref<8x5xf32, #tpu.memory_space<vmem>>, vector<1x5xf32>
    %454 = arith.addf %446, %453 : vector<1x5xf32>
    %cst_275 = arith.constant 0.000000e+00 : f32
    %455 = vector.shape_cast %454 : vector<1x5xf32> to vector<1x5xf32>
    %456 = vector.broadcast %455 : vector<1x5xf32> to vector<5x5xf32>
    %457 = vector.broadcast %cst_275 : f32 to vector<5x5xf32>
    %458 = arith.select %389, %456, %457 : vector<5x5xi1>, vector<5x5xf32>
    %cst_276 = arith.constant dense<0.000000e+00> : vector<5xf32>
    %459 = vector.multi_reduction <add>, %458, %cst_276 [1] : vector<5x5xf32> to vector<5xf32>
    %460 = vector.shape_cast %459 : vector<5xf32> to vector<5x1xf32>
    %461 = vector.broadcast %460 : vector<5x1xf32> to vector<5x5xf32>
    %462 = arith.addf %461, %383 : vector<5x5xf32>
    %cst_277 = arith.constant dense<0xFF800000> : vector<5xf32>
    %463 = vector.multi_reduction <maximumf>, %462, %cst_277 [0] : vector<5x5xf32> to vector<5xf32>
    %464 = vector.shape_cast %463 : vector<5xf32> to vector<1x5xf32>
    %465 = vector.broadcast %464 : vector<1x5xf32> to vector<5x5xf32>
    %466 = arith.cmpf oeq, %462, %465 : vector<5x5xf32>
    %c5_i32_278 = arith.constant 5 : i32
    %467 = vector.broadcast %c5_i32_278 : i32 to vector<5x5xi32>
    %468 = arith.select %466, %385, %467 : vector<5x5xi1>, vector<5x5xi32>
    %cst_279 = arith.constant dense<2147483647> : vector<5xi32>
    %469 = vector.multi_reduction <minsi>, %468, %cst_279 [0] : vector<5x5xi32> to vector<5xi32>
    %470 = vector.shape_cast %469 : vector<5xi32> to vector<1x5xi32>
    %c4_280 = arith.constant 4 : index
    %c0_281 = arith.constant 0 : index
    %471 = vector.load %arg3[%c4_280, %c0_281] : memref<8x5xf32, #tpu.memory_space<vmem>>, vector<1x5xf32>
    %472 = arith.addf %464, %471 : vector<1x5xf32>
    %cst_282 = arith.constant 0.000000e+00 : f32
    %473 = vector.shape_cast %472 : vector<1x5xf32> to vector<1x5xf32>
    %474 = vector.broadcast %473 : vector<1x5xf32> to vector<5x5xf32>
    %475 = vector.broadcast %cst_282 : f32 to vector<5x5xf32>
    %476 = arith.select %389, %474, %475 : vector<5x5xi1>, vector<5x5xf32>
    %cst_283 = arith.constant dense<0.000000e+00> : vector<5xf32>
    %477 = vector.multi_reduction <add>, %476, %cst_283 [1] : vector<5x5xf32> to vector<5xf32>
    %478 = vector.shape_cast %477 : vector<5xf32> to vector<5x1xf32>
    %479 = vector.broadcast %478 : vector<5x1xf32> to vector<5x5xf32>
    %480 = arith.addf %479, %383 : vector<5x5xf32>
    %cst_284 = arith.constant dense<0xFF800000> : vector<5xf32>
    %481 = vector.multi_reduction <maximumf>, %480, %cst_284 [0] : vector<5x5xf32> to vector<5xf32>
    %482 = vector.shape_cast %481 : vector<5xf32> to vector<1x5xf32>
    %483 = vector.broadcast %482 : vector<1x5xf32> to vector<5x5xf32>
    %484 = arith.cmpf oeq, %480, %483 : vector<5x5xf32>
    %c5_i32_285 = arith.constant 5 : i32
    %485 = vector.broadcast %c5_i32_285 : i32 to vector<5x5xi32>
    %486 = arith.select %484, %385, %485 : vector<5x5xi1>, vector<5x5xi32>
    %cst_286 = arith.constant dense<2147483647> : vector<5xi32>
    %487 = vector.multi_reduction <minsi>, %486, %cst_286 [0] : vector<5x5xi32> to vector<5xi32>
    %488 = vector.shape_cast %487 : vector<5xi32> to vector<1x5xi32>
    %c5_287 = arith.constant 5 : index
    %c0_288 = arith.constant 0 : index
    %489 = vector.load %arg3[%c5_287, %c0_288] : memref<8x5xf32, #tpu.memory_space<vmem>>, vector<1x5xf32>
    %490 = arith.addf %482, %489 : vector<1x5xf32>
    %cst_289 = arith.constant 0.000000e+00 : f32
    %491 = vector.shape_cast %490 : vector<1x5xf32> to vector<1x5xf32>
    %492 = vector.broadcast %491 : vector<1x5xf32> to vector<5x5xf32>
    %493 = vector.broadcast %cst_289 : f32 to vector<5x5xf32>
    %494 = arith.select %389, %492, %493 : vector<5x5xi1>, vector<5x5xf32>
    %cst_290 = arith.constant dense<0.000000e+00> : vector<5xf32>
    %495 = vector.multi_reduction <add>, %494, %cst_290 [1] : vector<5x5xf32> to vector<5xf32>
    %496 = vector.shape_cast %495 : vector<5xf32> to vector<5x1xf32>
    %497 = vector.broadcast %496 : vector<5x1xf32> to vector<5x5xf32>
    %498 = arith.addf %497, %383 : vector<5x5xf32>
    %cst_291 = arith.constant dense<0xFF800000> : vector<5xf32>
    %499 = vector.multi_reduction <maximumf>, %498, %cst_291 [0] : vector<5x5xf32> to vector<5xf32>
    %500 = vector.shape_cast %499 : vector<5xf32> to vector<1x5xf32>
    %501 = vector.broadcast %500 : vector<1x5xf32> to vector<5x5xf32>
    %502 = arith.cmpf oeq, %498, %501 : vector<5x5xf32>
    %c5_i32_292 = arith.constant 5 : i32
    %503 = vector.broadcast %c5_i32_292 : i32 to vector<5x5xi32>
    %504 = arith.select %502, %385, %503 : vector<5x5xi1>, vector<5x5xi32>
    %cst_293 = arith.constant dense<2147483647> : vector<5xi32>
    %505 = vector.multi_reduction <minsi>, %504, %cst_293 [0] : vector<5x5xi32> to vector<5xi32>
    %506 = vector.shape_cast %505 : vector<5xi32> to vector<1x5xi32>
    %c6_294 = arith.constant 6 : index
    %c0_295 = arith.constant 0 : index
    %507 = vector.load %arg3[%c6_294, %c0_295] : memref<8x5xf32, #tpu.memory_space<vmem>>, vector<1x5xf32>
    %508 = arith.addf %500, %507 : vector<1x5xf32>
    %cst_296 = arith.constant 0.000000e+00 : f32
    %509 = vector.shape_cast %508 : vector<1x5xf32> to vector<1x5xf32>
    %510 = vector.broadcast %509 : vector<1x5xf32> to vector<5x5xf32>
    %511 = vector.broadcast %cst_296 : f32 to vector<5x5xf32>
    %512 = arith.select %389, %510, %511 : vector<5x5xi1>, vector<5x5xf32>
    %cst_297 = arith.constant dense<0.000000e+00> : vector<5xf32>
    %513 = vector.multi_reduction <add>, %512, %cst_297 [1] : vector<5x5xf32> to vector<5xf32>
    %514 = vector.shape_cast %513 : vector<5xf32> to vector<5x1xf32>
    %515 = vector.broadcast %514 : vector<5x1xf32> to vector<5x5xf32>
    %516 = arith.addf %515, %383 : vector<5x5xf32>
    %cst_298 = arith.constant dense<0xFF800000> : vector<5xf32>
    %517 = vector.multi_reduction <maximumf>, %516, %cst_298 [0] : vector<5x5xf32> to vector<5xf32>
    %518 = vector.shape_cast %517 : vector<5xf32> to vector<1x5xf32>
    %519 = vector.broadcast %518 : vector<1x5xf32> to vector<5x5xf32>
    %520 = arith.cmpf oeq, %516, %519 : vector<5x5xf32>
    %c5_i32_299 = arith.constant 5 : i32
    %521 = vector.broadcast %c5_i32_299 : i32 to vector<5x5xi32>
    %522 = arith.select %520, %385, %521 : vector<5x5xi1>, vector<5x5xi32>
    %cst_300 = arith.constant dense<2147483647> : vector<5xi32>
    %523 = vector.multi_reduction <minsi>, %522, %cst_300 [0] : vector<5x5xi32> to vector<5xi32>
    %524 = vector.shape_cast %523 : vector<5xi32> to vector<1x5xi32>
    %c7_301 = arith.constant 7 : index
    %c0_302 = arith.constant 0 : index
    %525 = vector.load %arg3[%c7_301, %c0_302] : memref<8x5xf32, #tpu.memory_space<vmem>>, vector<1x5xf32>
    %526 = arith.addf %518, %525 : vector<1x5xf32>
    %527 = arith.addf %526, %384 : vector<1x5xf32>
    %cst_303 = arith.constant dense<0xFF800000> : vector<1xf32>
    %528 = vector.multi_reduction <maximumf>, %527, %cst_303 [1] : vector<1x5xf32> to vector<1xf32>
    %529 = vector.shape_cast %528 : vector<1xf32> to vector<1x1xf32>
    %530 = vector.broadcast %529 : vector<1x1xf32> to vector<1x5xf32>
    %531 = arith.cmpf oeq, %527, %530 : vector<1x5xf32>
    %c5_i32_304 = arith.constant 5 : i32
    %532 = vector.broadcast %c5_i32_304 : i32 to vector<1x5xi32>
    %533 = arith.select %531, %387, %532 : vector<1x5xi1>, vector<1x5xi32>
    %cst_305 = arith.constant dense<2147483647> : vector<1xi32>
    %534 = vector.multi_reduction <minsi>, %533, %cst_305 [1] : vector<1x5xi32> to vector<1xi32>
    %535 = vector.shape_cast %534 : vector<1xi32> to vector<1x1xi32>
    %536 = vector.shape_cast %529 : vector<1x1xf32> to vector<1x1xf32>
    %537 = vector.broadcast %536 : vector<1x1xf32> to vector<1x5xf32>
    %c0_306 = arith.constant 0 : index
    %c0_307 = arith.constant 0 : index
    %538 = vector.load %arg5[%c0_306, %c0_307] : memref<1x5xf32, #tpu.memory_space<vmem>>, vector<1x5xf32>
    tpu.vector_store %arg5[%c0_306, %c0_307], %537 {strides = array<i32>} : memref<1x5xf32, #tpu.memory_space<vmem>>, vector<1x5xf32>,
    %539 = vector.shape_cast %535 : vector<1x1xi32> to vector<1x1xi32>
    %540 = vector.broadcast %539 : vector<1x1xi32> to vector<1x5xi32>
    %c7_308 = arith.constant 7 : index
    %c0_309 = arith.constant 0 : index
    %541 = vector.load %arg4[%c7_308, %c0_309] : memref<8x5xi32, #tpu.memory_space<vmem>>, vector<1x5xi32>
    tpu.vector_store %arg4[%c7_308, %c0_309], %540 {strides = array<i32>} : memref<8x5xi32, #tpu.memory_space<vmem>>, vector<1x5xi32>,
    %542 = vector.broadcast %535 : vector<1x1xi32> to vector<1x5xi32>
    %543 = arith.cmpi eq, %387, %542 : vector<1x5xi32>
    %c0_i32 = arith.constant 0 : i32
    %544 = vector.broadcast %c0_i32 : i32 to vector<1x5xi32>
    %545 = arith.select %543, %524, %544 : vector<1x5xi1>, vector<1x5xi32>
    %cst_310 = arith.constant dense<-2147483648> : vector<1xi32>
    %546 = vector.multi_reduction <maxsi>, %545, %cst_310 [1] : vector<1x5xi32> to vector<1xi32>
    %547 = vector.shape_cast %546 : vector<1xi32> to vector<1x1xi32>
    %548 = vector.shape_cast %547 : vector<1x1xi32> to vector<1x1xi32>
    %549 = vector.broadcast %548 : vector<1x1xi32> to vector<1x5xi32>
    %c6_311 = arith.constant 6 : index
    %c0_312 = arith.constant 0 : index
    %550 = vector.load %arg4[%c6_311, %c0_312] : memref<8x5xi32, #tpu.memory_space<vmem>>, vector<1x5xi32>
    tpu.vector_store %arg4[%c6_311, %c0_312], %549 {strides = array<i32>} : memref<8x5xi32, #tpu.memory_space<vmem>>, vector<1x5xi32>,
    %551 = vector.broadcast %547 : vector<1x1xi32> to vector<1x5xi32>
    %552 = arith.cmpi eq, %387, %551 : vector<1x5xi32>
    %c0_i32_313 = arith.constant 0 : i32
    %553 = vector.broadcast %c0_i32_313 : i32 to vector<1x5xi32>
    %554 = arith.select %552, %506, %553 : vector<1x5xi1>, vector<1x5xi32>
    %cst_314 = arith.constant dense<-2147483648> : vector<1xi32>
    %555 = vector.multi_reduction <maxsi>, %554, %cst_314 [1] : vector<1x5xi32> to vector<1xi32>
    %556 = vector.shape_cast %555 : vector<1xi32> to vector<1x1xi32>
    %557 = vector.shape_cast %556 : vector<1x1xi32> to vector<1x1xi32>
    %558 = vector.broadcast %557 : vector<1x1xi32> to vector<1x5xi32>
    %c5_315 = arith.constant 5 : index
    %c0_316 = arith.constant 0 : index
    %559 = vector.load %arg4[%c5_315, %c0_316] : memref<8x5xi32, #tpu.memory_space<vmem>>, vector<1x5xi32>
    tpu.vector_store %arg4[%c5_315, %c0_316], %558 {strides = array<i32>} : memref<8x5xi32, #tpu.memory_space<vmem>>, vector<1x5xi32>,
    %560 = vector.broadcast %556 : vector<1x1xi32> to vector<1x5xi32>
    %561 = arith.cmpi eq, %387, %560 : vector<1x5xi32>
    %c0_i32_317 = arith.constant 0 : i32
    %562 = vector.broadcast %c0_i32_317 : i32 to vector<1x5xi32>
    %563 = arith.select %561, %488, %562 : vector<1x5xi1>, vector<1x5xi32>
    %cst_318 = arith.constant dense<-2147483648> : vector<1xi32>
    %564 = vector.multi_reduction <maxsi>, %563, %cst_318 [1] : vector<1x5xi32> to vector<1xi32>
    %565 = vector.shape_cast %564 : vector<1xi32> to vector<1x1xi32>
    %566 = vector.shape_cast %565 : vector<1x1xi32> to vector<1x1xi32>
    %567 = vector.broadcast %566 : vector<1x1xi32> to vector<1x5xi32>
    %c4_319 = arith.constant 4 : index
    %c0_320 = arith.constant 0 : index
    %568 = vector.load %arg4[%c4_319, %c0_320] : memref<8x5xi32, #tpu.memory_space<vmem>>, vector<1x5xi32>
    tpu.vector_store %arg4[%c4_319, %c0_320], %567 {strides = array<i32>} : memref<8x5xi32, #tpu.memory_space<vmem>>, vector<1x5xi32>,
    %569 = vector.broadcast %565 : vector<1x1xi32> to vector<1x5xi32>
    %570 = arith.cmpi eq, %387, %569 : vector<1x5xi32>
    %c0_i32_321 = arith.constant 0 : i32
    %571 = vector.broadcast %c0_i32_321 : i32 to vector<1x5xi32>
    %572 = arith.select %570, %470, %571 : vector<1x5xi1>, vector<1x5xi32>
    %cst_322 = arith.constant dense<-2147483648> : vector<1xi32>
    %573 = vector.multi_reduction <maxsi>, %572, %cst_322 [1] : vector<1x5xi32> to vector<1xi32>
    %574 = vector.shape_cast %573 : vector<1xi32> to vector<1x1xi32>
    %575 = vector.shape_cast %574 : vector<1x1xi32> to vector<1x1xi32>
    %576 = vector.broadcast %575 : vector<1x1xi32> to vector<1x5xi32>
    %c3_323 = arith.constant 3 : index
    %c0_324 = arith.constant 0 : index
    %577 = vector.load %arg4[%c3_323, %c0_324] : memref<8x5xi32, #tpu.memory_space<vmem>>, vector<1x5xi32>
    tpu.vector_store %arg4[%c3_323, %c0_324], %576 {strides = array<i32>} : memref<8x5xi32, #tpu.memory_space<vmem>>, vector<1x5xi32>,
    %578 = vector.broadcast %574 : vector<1x1xi32> to vector<1x5xi32>
    %579 = arith.cmpi eq, %387, %578 : vector<1x5xi32>
    %c0_i32_325 = arith.constant 0 : i32
    %580 = vector.broadcast %c0_i32_325 : i32 to vector<1x5xi32>
    %581 = arith.select %579, %452, %580 : vector<1x5xi1>, vector<1x5xi32>
    %cst_326 = arith.constant dense<-2147483648> : vector<1xi32>
    %582 = vector.multi_reduction <maxsi>, %581, %cst_326 [1] : vector<1x5xi32> to vector<1xi32>
    %583 = vector.shape_cast %582 : vector<1xi32> to vector<1x1xi32>
    %584 = vector.shape_cast %583 : vector<1x1xi32> to vector<1x1xi32>
    %585 = vector.broadcast %584 : vector<1x1xi32> to vector<1x5xi32>
    %c2_327 = arith.constant 2 : index
    %c0_328 = arith.constant 0 : index
    %586 = vector.load %arg4[%c2_327, %c0_328] : memref<8x5xi32, #tpu.memory_space<vmem>>, vector<1x5xi32>
    tpu.vector_store %arg4[%c2_327, %c0_328], %585 {strides = array<i32>} : memref<8x5xi32, #tpu.memory_space<vmem>>, vector<1x5xi32>,
    %587 = vector.broadcast %583 : vector<1x1xi32> to vector<1x5xi32>
    %588 = arith.cmpi eq, %387, %587 : vector<1x5xi32>
    %c0_i32_329 = arith.constant 0 : i32
    %589 = vector.broadcast %c0_i32_329 : i32 to vector<1x5xi32>
    %590 = arith.select %588, %434, %589 : vector<1x5xi1>, vector<1x5xi32>
    %cst_330 = arith.constant dense<-2147483648> : vector<1xi32>
    %591 = vector.multi_reduction <maxsi>, %590, %cst_330 [1] : vector<1x5xi32> to vector<1xi32>
    %592 = vector.shape_cast %591 : vector<1xi32> to vector<1x1xi32>
    %593 = vector.shape_cast %592 : vector<1x1xi32> to vector<1x1xi32>
    %594 = vector.broadcast %593 : vector<1x1xi32> to vector<1x5xi32>
    %c1_331 = arith.constant 1 : index
    %c0_332 = arith.constant 0 : index
    %595 = vector.load %arg4[%c1_331, %c0_332] : memref<8x5xi32, #tpu.memory_space<vmem>>, vector<1x5xi32>
    tpu.vector_store %arg4[%c1_331, %c0_332], %594 {strides = array<i32>} : memref<8x5xi32, #tpu.memory_space<vmem>>, vector<1x5xi32>,
    %596 = vector.broadcast %592 : vector<1x1xi32> to vector<1x5xi32>
    %597 = arith.cmpi eq, %387, %596 : vector<1x5xi32>
    %c0_i32_333 = arith.constant 0 : i32
    %598 = vector.broadcast %c0_i32_333 : i32 to vector<1x5xi32>
    %599 = arith.select %597, %416, %598 : vector<1x5xi1>, vector<1x5xi32>
    %cst_334 = arith.constant dense<-2147483648> : vector<1xi32>
    %600 = vector.multi_reduction <maxsi>, %599, %cst_334 [1] : vector<1x5xi32> to vector<1xi32>
    %601 = vector.shape_cast %600 : vector<1xi32> to vector<1x1xi32>
    %602 = vector.shape_cast %601 : vector<1x1xi32> to vector<1x1xi32>
    %603 = vector.broadcast %602 : vector<1x1xi32> to vector<1x5xi32>
    %c0_335 = arith.constant 0 : index
    %c0_336 = arith.constant 0 : index
    %604 = vector.load %arg4[%c0_335, %c0_336] : memref<8x5xi32, #tpu.memory_space<vmem>>, vector<1x5xi32>
    tpu.vector_store %arg4[%c0_335, %c0_336], %603 {strides = array<i32>} : memref<8x5xi32, #tpu.memory_space<vmem>>, vector<1x5xi32>,
    return
  }
}

</mosaic_0001>

<bundles_post_ra>
// kernel: bilstm_crf_forward.1
= control target key start
LH: loop header
LB: loop body
LE: loop exit
PB: predicated region body
PF: predicated region fallthrough
CT: control target
= control target key end

     0   :  { %11 = vsyncpa [#allocation6], 0  ;;  %vm35_vm0 = vcmask 1043456   ;;  %v4251_v2 = vmov 0   ;;  %v4252_v3 = vmov 0.0   ;;  %s5209_s0 = inlined_call_operand.vmem [shape: s32[8,1], index: 0, kind: input, shape index: {}]   ;;  %s5210_s1 = inlined_call_operand.vmem [shape: f32[226,32], index: 1, kind: input, shape index: {}]   ;;  %s5211_s2 = inlined_call_operand.vmem [shape: f32[72,5], index: 2, kind: input, shape index: {}]   ;;  %s5212_s3 = inlined_call_operand.hbm [shape: f32[8,5], index: 3, kind: output, shape index: {0}]   ;;  %s5213_s4 = inlined_call_operand.vmem [shape: s32[8,5], index: 4, kind: output, shape index: {1}]   ;;  %s5214_s5 = inlined_call_operand.hbm [shape: f32[1,5], index: 5, kind: output, shape index: {2}]  }
   0x1   :  { %v19_v0 = vld [vmem:[%s5209_s0] sm:$0xff]  ;;  %v30_v1 = vld [vmem:[%s5210_s1 + $0x10] sm:$0xf]  ;;  %4110 = vset.pattern.permute.xlu0 %v4251_v2  ;;  %3694 = vmatprep.subr.mxu0 %v4252_v3  ;;  %v113_v4 = vld [vmem:[%s5210_s1 + $0x28] sm:$0xf] }
   0x2   :  { %23 = vperm.xlu0 %4110, %v19_v0   ;;  %3703 = vmatprep.subr.mxu1 %v4252_v3  ;;  %v29_v5 = vld [vmem:[%s5210_s1 + $0x8] sm:$0xff]  ;;  %v112_v6 = vld [vmem:[%s5210_s1 + $0x20] sm:$0xff]  ;;  %v111_v8 = vld [vmem:[%s5210_s1 + $0x18] sm:$0xff] }
   0x3   :  { %3695 = vmatpush3.msk.msra.mxu0 %vm35_vm0, %v30_v1  ;;  %3704 = vmatpush3.msk.msra.mxu1 %vm35_vm0, %v113_v4  ;;  %v28_v7 = vld [vmem:[%s5210_s1] sm:$0xff] }
   0x4   :  { %3696 = vmatprep.subr.mxu0 %v4252_v3  ;;  %3705 = vmatprep.subr.mxu1 %v4252_v3 }
   0x5   :  { %12 = vsyncpa [#allocation8], 0  ;;  %3697 = vmatpush3.msra.mxu0 %v29_v5  ;;  %3706 = vmatpush3.msra.mxu1 %v112_v6  ;;  %vm4253_vm1 = vmmov 0   ;;  %v20_v9 = vlaneseq  ;;  %vm31_vm2 = vcmask 162816   ;;  %v190_v12 = vld [vmem:[%s5210_s1 + $0x40] sm:$0xf] }
   0x6   :  { %3698 = vmatprep.subr.mxu0 %v4252_v3  ;;  %3707 = vmatprep.subr.mxu1 %v4252_v3  ;;  %v267_v13 = vld [vmem:[%s5210_s1 + $0x58] sm:$0xf]  ;;  %v266_v16 = vld [vmem:[%s5210_s1 + $0x50] sm:$0xff]  ;;  %v265_v18 = vld [vmem:[%s5210_s1 + $0x48] sm:$0xff]  ;;  %vm109_vm4 = vcmask 261120   ;;  %vm675_vm6 = vcmask 253952  }
   0x7   :  { %3699 = vmatpush3.msra.mxu0 %v28_v7  ;;  %3708 = vmatpush3.msra.mxu1 %v111_v8  ;;  %v4323_v10 = vand.u32 127, %v20_v9  ;;  %v189_v15 = vld [vmem:[%s5210_s1 + $0x38] sm:$0xff]  ;;  %v188_v17 = vld [vmem:[%s5210_s1 + $0x30] sm:$0xff]  ;;  %v4388_v23 = vld [vmem:[%s5210_s1 + $0x68] sm:$0xff]  ;;  %vm3062_vm8 = vcmask 36864   ;;  %vm3052_vm9 = vcmask 39936  }
   0x8   :  { %3700 = vmatprep.mubr.msk.f32.mxu0 %vm4253_vm1, %v4252_v3  ;;  %3709 = vmatprep.mubr.msk.f32.mxu1 %vm4253_vm1, %v4252_v3  ;;  %v4360_v19 = vld [vmem:[%s5210_s1 + $0x78] sm:$0xff]  ;;  %v4374_v21 = vld [vmem:[%s5210_s1 + $0x70] sm:$0xff]  ;;  %v4393_v24 = vld [vmem:[%s5210_s1 + $0x88] sm:$0xff]  ;;  %s4255_s15 = smov [#allocation5]   ;;  %s4256_s17 = smov [#allocation7]  }
   0x9   :  { %3712 = vmatprep.subr.mxu0 %v4252_v3  ;;  %3721 = vmatprep.subr.mxu1 %v4252_v3  ;;  %v4365_v20 = vld [vmem:[%s5210_s1 + $0x98] sm:$0xff]  ;;  %v4379_v22 = vld [vmem:[%s5210_s1 + $0x90] sm:$0xff]  ;;  %v4402_v25 = vld [vmem:[%s5210_s1 + $0x60] sm:$0xff]  ;;  %vm360_vm5 = vcmp.lt.s32.totalorder %v4323_v10, 16  ;;  %s3438_s16 = sshll.u32 %s4255_s15, 4  ;;  %s3450_s18 = sshll.u32 %s4256_s17, 4  ;;  %s3439_s16 = int_to_ptr.vmem [resolvable:$true] %s3438_s16  ;;  %s3451_s18 = int_to_ptr.vmem [resolvable:$true] %s3450_s18 }
   0xa   :  { %v4409_v26 = vld [vmem:[%s5210_s1 + $0x80] sm:$0xff]  ;;  %v4425_v28 = vld [vmem:[%s5210_s1 + $0xb8] sm:$0xff]  ;;  %v4439_v30 = vld [vmem:[%s5210_s1 + $0xb0] sm:$0xff]  ;;  %s4207_s19 = scalar_lea.vmem %s3439_s16, 128  ;;  %p4212_p1 = scmp.lt.s32.totalorder %s3439_s16, %s3439_s16 }
   0xb   :  { %v358_v27 = vld [vmem:[%s5210_s1 + $0xe0] sm:$0x1]  ;;  %v4430_v29 = vld [vmem:[%s5210_s1 + $0xd8] sm:$0xff]  ;;  %v4444_v31 = vld [vmem:[%s5210_s1 + $0xd0] sm:$0xff]  ;;  %p4208_p0 = scmp.ne.s32.totalorder %s3439_s16, %s4207_s19  ;;  %p4213_p2 = scmp.lt.s32.totalorder %s4207_s19, %s4207_s19 }
   0xc   :  { %v4453_v32 = vld [vmem:[%s5210_s1 + $0xa8] sm:$0xff]  ;;  %v4467_v34 = vld [vmem:[%s5210_s1 + $0xa0] sm:$0xff] }
   0xd   :  { %v4458_v33 = vld [vmem:[%s5210_s1 + $0xc8] sm:$0xff]  ;;  %v4474_v35 = vld [vmem:[%s5210_s1 + $0xc0] sm:$0xff]  ;;  %p4214_p3 = por %p4213_p2, %p4212_p1 }
   0xf   :  { %p4215_p4 = pnand %p4214_p3, %p4208_p0 }
  0x7d   :  { %v24_v11 = vpop.permute.xlu0 %23 }
  0x7e   :  { %vm25_vm3 = vcmp.eq.s32.totalorder %v24_v11, %v4323_v10 }
  0x7f   :  { %v3464_v14 = vsel %vm25_vm3, 1.0, %v4252_v3 }
  0x80   :  { %3701 = vmatmul.mubr.msk.f32.vlgmr.msra.gmra.mxu0 %vm31_vm2, %v3464_v14  ;;  %3710 = vmatmul.mubr.msk.f32.vlgmr.msra.gmra.mxu1 %vm31_vm2, %v3464_v14 }
  0x81   :  { %3713 = vmatpush3.msk.msra.mxu0 %vm35_vm0, %v190_v12  ;;  %3722 = vmatpush3.msk.msra.mxu1 %vm35_vm0, %v267_v13  ;;  %v359_v12 = vld [vmem:[%s5210_s1 + $0xe1] sm:$0x1] }
  0x82   :  { %3714 = vmatprep.subr.mxu0 %v4252_v3  ;;  %3723 = vmatprep.subr.mxu1 %v4252_v3 }
  0x83   :  { %3715 = vmatpush3.msra.mxu0 %v189_v15  ;;  %3724 = vmatpush3.msra.mxu1 %v266_v16 }
  0x84   :  { %3716 = vmatprep.subr.mxu0 %v4252_v3  ;;  %3725 = vmatprep.subr.mxu1 %v4252_v3 }
  0x85   :  { %3717 = vmatpush3.msra.mxu0 %v188_v17  ;;  %3718 = vmatprep.mubr.msk.f32.mxu0 %vm4253_vm1, %v4252_v3 }
  0x86   :  { %3726 = vmatpush3.msra.mxu1 %v265_v18  ;;  %3727 = vmatprep.mubr.msk.f32.mxu1 %vm4253_vm1, %v4252_v3 }
  0x87   :  { %3719 = vmatmul.mubr.msk.f32.vlgmr.msra.gmra.mxu0 %vm31_vm2, %v3464_v14  ;;  %3728 = vmatmul.mubr.msk.f32.vlgmr.msra.gmra.mxu1 %vm31_vm2, %v3464_v14  ;;  %vm3283_vm2 = vcmask 32768  }
  0x88   :  { %3730 = vmatprep.subr.mxu0 %v4252_v3  ;;  %3741 = vmatprep.subr.mxu1 %v4252_v3 }
  0x89   :  { %3731 = vmatpush3.msra.mxu0 %v4360_v19  ;;  %3742 = vmatpush3.msra.mxu1 %v4365_v20 }
  0x8a   :  { %3732 = vmatprep.subr.mxu0 %v4252_v3  ;;  %3743 = vmatprep.subr.mxu1 %v4252_v3 }
  0x8b   :  { %3733 = vmatpush3.msra.mxu0 %v4374_v21  ;;  %3744 = vmatpush3.msra.mxu1 %v4379_v22 }
  0x8c   :  { %3734 = vmatprep.subr.mxu0 %v4252_v3  ;;  %3745 = vmatprep.subr.mxu1 %v4252_v3 }
  0x8d   :  { %3735 = vmatpush3.msra.mxu0 %v4388_v23  ;;  %3746 = vmatpush3.msra.mxu1 %v4393_v24 }
  0x8e   :  { %3736 = vmatprep.subr.mxu0 %v4252_v3  ;;  %3747 = vmatprep.subr.mxu1 %v4252_v3 }
  0x8f   :  { %3737 = vmatpush3.msra.mxu0 %v4402_v25  ;;  %3738 = vmatprep.mubr.msk.f32.mxu0 %vm4253_vm1, %v4252_v3 }
  0x90   :  { %3748 = vmatpush3.msra.mxu1 %v4409_v26  ;;  %3749 = vmatprep.mubr.msk.f32.mxu1 %vm4253_vm1, %v4252_v3 }
  0x91   :  { %3739 = vmatmul.mubr.msk.f32.vlgmr.msra.gmra.mxu0 %vm109_vm4, %v358_v27  ;;  %3750 = vmatmul.mubr.msk.f32.vlgmr.msra.gmra.mxu1 %vm109_vm4, %v358_v27 }
  0x92   :  { %3752 = vmatprep.subr.mxu0 %v4252_v3  ;;  %3763 = vmatprep.subr.mxu1 %v4252_v3 }
  0x93   :  { %3753 = vmatpush3.msra.mxu0 %v4425_v28  ;;  %3764 = vmatpush3.msra.mxu1 %v4430_v29 }
  0x94   :  { %3754 = vmatprep.subr.mxu0 %v4252_v3  ;;  %3765 = vmatprep.subr.mxu1 %v4252_v3 }
  0x95   :  { %3755 = vmatpush3.msra.mxu0 %v4439_v30  ;;  %3766 = vmatpush3.msra.mxu1 %v4444_v31 }
  0x96   :  { %3756 = vmatprep.subr.mxu0 %v4252_v3  ;;  %3767 = vmatprep.subr.mxu1 %v4252_v3 }
  0x97   :  { %3757 = vmatpush3.msra.mxu0 %v4453_v32  ;;  %3768 = vmatpush3.msra.mxu1 %v4458_v33 }
  0x98   :  { %3758 = vmatprep.subr.mxu0 %v4252_v3  ;;  %3769 = vmatprep.subr.mxu1 %v4252_v3 }
  0x99   :  { %3759 = vmatpush3.msra.mxu0 %v4467_v34  ;;  %3760 = vmatprep.mubr.msk.f32.mxu0 %vm4253_vm1, %v4252_v3 }
  0x9a   :  { %3770 = vmatpush3.msra.mxu1 %v4474_v35  ;;  %3771 = vmatprep.mubr.msk.f32.mxu1 %vm4253_vm1, %v4252_v3 }
  0x9b   :  { %3761 = vmatmul.mubr.msk.f32.vlgmr.msra.gmra.mxu0 %vm109_vm4, %v358_v27  ;;  %3772 = vmatmul.mubr.msk.f32.vlgmr.msra.gmra.mxu1 %vm109_vm4, %v358_v27 }
  0x9c   :  { %3774 = vmatprep.subr.mxu0 %v4252_v3  ;;  %3785 = vmatprep.subr.mxu1 %v4252_v3 }
  0x9d   :  { %3775 = vmatpush3.msra.mxu0 %v4360_v19  ;;  %3786 = vmatpush3.msra.mxu1 %v4365_v20 }
  0x9e   :  { %3776 = vmatprep.subr.mxu0 %v4252_v3  ;;  %3787 = vmatprep.subr.mxu1 %v4252_v3 }
  0x9f   :  { %3777 = vmatpush3.msra.mxu0 %v4374_v21  ;;  %3788 = vmatpush3.msra.mxu1 %v4379_v22 }
  0xa0   :  { %3778 = vmatprep.subr.mxu0 %v4252_v3  ;;  %3789 = vmatprep.subr.mxu1 %v4252_v3 }
  0xa1   :  { %3779 = vmatpush3.msra.mxu0 %v4388_v23  ;;  %3790 = vmatpush3.msra.mxu1 %v4393_v24 }
  0xa2   :  { %3780 = vmatprep.subr.mxu0 %v4252_v3  ;;  %3791 = vmatprep.subr.mxu1 %v4252_v3 }
  0xa3   :  { %3781 = vmatpush3.msra.mxu0 %v4402_v25  ;;  %3792 = vmatpush3.msra.mxu1 %v4409_v26 }
  0xa4   :  { %3782 = vmatprep.mubr.msk.f32.mxu0 %vm4253_vm1, %v4252_v3  ;;  %3793 = vmatprep.mubr.msk.f32.mxu1 %vm4253_vm1, %v4252_v3 }
  0xa5   :  { %3796 = vmatprep.subr.mxu0 %v4252_v3  ;;  %3807 = vmatprep.subr.mxu1 %v4252_v3 }
 0x140   :  { %v105_v36 = vpop.f32.mrf.mxu0  ;;  %v183_v37 = vpop.f32.mrf.mxu1 }
 0x141   :  { %110 = vst.msk [vmem:[#allocation2] sm:$0xff] %vm109_vm4, %v105_v36  ;;  %187 = vst.msk [vmem:[#allocation2 + $0x8] sm:$0xff] %vm109_vm4, %v183_v37 }
 0x142   :  { %v3702_v38 = vpop.f32.mrf.mxu0  ;;  %v3711_v39 = vpop.f32.mrf.mxu1 }
 0x147   :  { %v260_v40 = vpop.f32.mrf.mxu0  ;;  %v337_v41 = vpop.f32.mrf.mxu1 }
 0x148   :  { %264 = vst.msk [vmem:[#allocation2 + $0x10] sm:$0xff] %vm109_vm4, %v260_v40  ;;  %341 = vst.msk [vmem:[#allocation2 + $0x18] sm:$0xff] %vm109_vm4, %v337_v41  ;;  %v361_v44 = vld [vmem:[#allocation2] sm:$0x1]  ;;  %v362_v45 = vld [vmem:[#allocation2 + $0x7] sm:$0x1] }
 0x149   :  { %v3720_v42 = vpop.f32.mrf.mxu0  ;;  %v3729_v43 = vpop.f32.mrf.mxu1  ;;  %v439_v46 = vld [vmem:[#allocation2 + $0x8] sm:$0x1]  ;;  %v440_v47 = vld [vmem:[#allocation2 + $0xf] sm:$0x1]  ;;  %v363_v48 = vsel %vm360_vm5, %v361_v44, %v362_v45  ;;  %v678_v39 = vld [vmem:[#allocation2 + $0x1] sm:$0x1] }
 0x14a   :  { %v441_v50 = vsel %vm360_vm5, %v439_v46, %v440_v47  ;;  %v679_v40 = vld [vmem:[#allocation2 + $0x6] sm:$0x1]  ;;  %v756_v41 = vld [vmem:[#allocation2 + $0x9] sm:$0x1]  ;;  %v757_v42 = vld [vmem:[#allocation2 + $0xe] sm:$0x1] }
 0x14b   :  { %v680_v43 = vsel %vm360_vm5, %v678_v39, %v679_v40  ;;  %v758_v45 = vsel %vm360_vm5, %v756_v41, %v757_v42 }
 0x14f   :  { %v514_v56 = vld [vmem:[#allocation2 + $0x10] sm:$0x1]  ;;  %v515_v57 = vld [vmem:[#allocation2 + $0x17] sm:$0x1]  ;;  %v589_v0 = vld [vmem:[#allocation2 + $0x18] sm:$0x1] }
 0x150   :  { %v516_v58 = vsel %vm360_vm5, %v514_v56, %v515_v57  ;;  %v590_v1 = vld [vmem:[#allocation2 + $0x1f] sm:$0x1] }
 0x151   :  { %v433_v49 = vpop.f32.mrf.mxu0  ;;  %v508_v51 = vpop.f32.mrf.mxu1  ;;  %v591_v5 = vsel %vm360_vm5, %v589_v0, %v590_v1 }
 0x152   :  { %v437_v52 = vadd.f32 %v433_v49, %v363_v48  ;;  %v512_v53 = vadd.f32 %v508_v51, %v441_v50  ;;  %v831_v51 = vld [vmem:[#allocation2 + $0x11] sm:$0x1] }
 0x153   :  { %v3740_v54 = vpop.f32.mrf.mxu0  ;;  %v3751_v55 = vpop.f32.mrf.mxu1 }
 0x154   :  { %4111 = vtanh.f32 %v512_v53 }
 0x155   :  { %4113 = vtanh.f32 %v437_v52  ;;  %v832_v52 = vld [vmem:[#allocation2 + $0x16] sm:$0x1] }
 0x156   :  { %v833_v53 = vsel %vm360_vm5, %v831_v51, %v832_v52 }
 0x15b   :  { %v583_v59 = vpop.f32.mrf.mxu0  ;;  %v658_v60 = vpop.f32.mrf.mxu1 }
 0x15c   :  { %v587_v61 = vadd.f32 %v583_v59, %v516_v58  ;;  %v662_v7 = vadd.f32 %v658_v60, %v591_v5  ;;  %v906_v59 = vld [vmem:[#allocation2 + $0x19] sm:$0x1]  ;;  %v907_v60 = vld [vmem:[#allocation2 + $0x1e] sm:$0x1] }
 0x15d   :  { %v3762_v62 = vpop.f32.mrf.mxu0  ;;  %v3773_v63 = vpop.f32.mrf.mxu1 }
 0x15e   :  { %4115 = vtanh.f32 %v587_v61  ;;  %v908_v63 = vsel %vm360_vm5, %v906_v59, %v907_v60 }
 0x15f   :  { %4117 = vtanh.f32 %v662_v7 }
 0x161   :  { %v4112_v2 = vpop.eup %4111 }
 0x162   :  { %v4114_v4 = vpop.eup %4113  ;;  %v666_v6 = vmul.f32 0.5, %v4112_v2 }
 0x163   :  { %v664_v8 = vmul.f32 0.5, %v4114_v4 }
 0x164   :  { %v667_v11 = vadd.f32 0.5, %v666_v6 }
 0x165   :  { %v665_v13 = vadd.f32 0.5, %v664_v8 }
 0x166   :  { %v670_v15 = vmul.f32 %v667_v11, %v359_v12 }
 0x16b   :  { %v4116_v14 = vpop.eup %4115 }
 0x16c   :  { %v671_v16 = vmul.f32 %v4116_v14, %v665_v13  ;;  %v4118_v18 = vpop.eup %4117 }
 0x16d   :  { %v668_v27 = vmul.f32 0.5, %v4118_v18  ;;  %v995_v18 = vld [vmem:[#allocation2 + $0x5] sm:$0x1] }
 0x16e   :  { %v4524_v17 = vadd.f32 %v671_v16, %v670_v15 }
 0x16f   :  { %v669_v36 = vadd.f32 0.5, %v668_v27  ;;  %v1072_v27 = vld [vmem:[#allocation2 + $0xa] sm:$0x1] }
 0x170   :  { %4119 = vtanh.f32 %v4524_v17 }
 0x17d   :  { %v4120_v37 = vpop.eup %4119 }
 0x17e   :  { %v674_v38 = vmul.f32 %v4120_v37, %v669_v36  ;;  %v1073_v36 = vld [vmem:[#allocation2 + $0xd] sm:$0x1] }
 0x17f   :  { %v1074_v39 = vsel %vm360_vm5, %v1072_v27, %v1073_v36 }
 0x180   :  { %676 = vst.msk [vmem:[#allocation3] sm:$0x1] %vm675_vm6, %v674_v38  ;;  %677 = vst.msk [vmem:[#allocation4 + $0x7] sm:$0x1] %vm675_vm6, %v674_v38  ;;  %3783 = vmatmul.mubr.msk.f32.vlgmr.msra.gmra.mxu0 %vm109_vm4, %v674_v38  ;;  %3794 = vmatmul.mubr.msk.f32.vlgmr.msra.gmra.mxu1 %vm109_vm4, %v674_v38 }
 0x181   :  { %3797 = vmatpush3.msra.mxu0 %v4425_v28  ;;  %3808 = vmatpush3.msra.mxu1 %v4430_v29 }
 0x182   :  { %3798 = vmatprep.subr.mxu0 %v4252_v3  ;;  %3809 = vmatprep.subr.mxu1 %v4252_v3 }
 0x183   :  { %3799 = vmatpush3.msra.mxu0 %v4439_v30  ;;  %3810 = vmatpush3.msra.mxu1 %v4444_v31 }
 0x184   :  { %3800 = vmatprep.subr.mxu0 %v4252_v3  ;;  %3811 = vmatprep.subr.mxu1 %v4252_v3 }
 0x185   :  { %3801 = vmatpush3.msra.mxu0 %v4453_v32  ;;  %3812 = vmatpush3.msra.mxu1 %v4458_v33 }
 0x186   :  { %3802 = vmatprep.subr.mxu0 %v4252_v3  ;;  %3813 = vmatprep.subr.mxu1 %v4252_v3 }
 0x187   :  { %3803 = vmatpush3.msra.mxu0 %v4467_v34  ;;  %3804 = vmatprep.mubr.msk.f32.mxu0 %vm4253_vm1, %v4252_v3 }
 0x188   :  { %3814 = vmatpush3.msra.mxu1 %v4474_v35  ;;  %3815 = vmatprep.mubr.msk.f32.mxu1 %vm4253_vm1, %v4252_v3 }
 0x189   :  { %3805 = vmatmul.mubr.msk.f32.vlgmr.msra.gmra.mxu0 %vm109_vm4, %v674_v38  ;;  %3816 = vmatmul.mubr.msk.f32.vlgmr.msra.gmra.mxu1 %vm109_vm4, %v674_v38 }
 0x18a   :  { %3818 = vmatprep.subr.mxu0 %v4252_v3  ;;  %3829 = vmatprep.subr.mxu1 %v4252_v3 }
 0x18b   :  { %3819 = vmatpush3.msra.mxu0 %v4360_v19  ;;  %3830 = vmatpush3.msra.mxu1 %v4365_v20 }
 0x18c   :  { %3820 = vmatprep.subr.mxu0 %v4252_v3  ;;  %3831 = vmatprep.subr.mxu1 %v4252_v3 }
 0x18d   :  { %3821 = vmatpush3.msra.mxu0 %v4374_v21  ;;  %3832 = vmatpush3.msra.mxu1 %v4379_v22 }
 0x18e   :  { %3822 = vmatprep.subr.mxu0 %v4252_v3  ;;  %3833 = vmatprep.subr.mxu1 %v4252_v3 }
 0x18f   :  { %3823 = vmatpush3.msra.mxu0 %v4388_v23  ;;  %3834 = vmatpush3.msra.mxu1 %v4393_v24 }
 0x190   :  { %3824 = vmatprep.subr.mxu0 %v4252_v3  ;;  %3835 = vmatprep.subr.mxu1 %v4252_v3 }
 0x191   :  { %3825 = vmatpush3.msra.mxu0 %v4402_v25  ;;  %3836 = vmatpush3.msra.mxu1 %v4409_v26 }
 0x192   :  { %3826 = vmatprep.mubr.msk.f32.mxu0 %vm4253_vm1, %v4252_v3  ;;  %3837 = vmatprep.mubr.msk.f32.mxu1 %vm4253_vm1, %v4252_v3 }
 0x193   :  { %3840 = vmatprep.subr.mxu0 %v4252_v3  ;;  %3851 = vmatprep.subr.mxu1 %v4252_v3 }
 0x240   :  { %v750_v44 = vpop.f32.mrf.mxu0  ;;  %v825_v46 = vpop.f32.mrf.mxu1 }
 0x241   :  { %v754_v47 = vadd.f32 %v750_v44, %v680_v43  ;;  %v829_v48 = vadd.f32 %v825_v46, %v758_v45  ;;  %v1147_v45 = vld [vmem:[#allocation2 + $0x12] sm:$0x1]  ;;  %v1148_v46 = vld [vmem:[#allocation2 + $0x15] sm:$0x1] }
 0x242   :  { %v3784_v49 = vpop.f32.mrf.mxu0  ;;  %v3795_v50 = vpop.f32.mrf.mxu1 }
 0x243   :  { %4121 = vtanh.f32 %v754_v47  ;;  %v1149_v47 = vsel %vm360_vm5, %v1147_v45, %v1148_v46 }
 0x244   :  { %4123 = vtanh.f32 %v829_v48 }
 0x249   :  { %v900_v54 = vpop.f32.mrf.mxu0  ;;  %v975_v55 = vpop.f32.mrf.mxu1 }
 0x24a   :  { %v904_v56 = vadd.f32 %v900_v54, %v833_v53  ;;  %v979_v1 = vadd.f32 %v975_v55, %v908_v63  ;;  %v1222_v53 = vld [vmem:[#allocation2 + $0x1a] sm:$0x1]  ;;  %v1223_v54 = vld [vmem:[#allocation2 + $0x1d] sm:$0x1] }
 0x24b   :  { %v3806_v57 = vpop.f32.mrf.mxu0  ;;  %v3817_v58 = vpop.f32.mrf.mxu1 }
 0x24c   :  { %4125 = vtanh.f32 %v904_v56  ;;  %v1224_v57 = vsel %vm360_vm5, %v1222_v53, %v1223_v54 }
 0x24d   :  { %4127 = vtanh.f32 %v979_v1 }
 0x250   :  { %v4122_v61 = vpop.eup %4121 }
 0x251   :  { %v4124_v62 = vpop.eup %4123  ;;  %v981_v2 = vmul.f32 0.5, %v4122_v61 }
 0x252   :  { %v983_v0 = vmul.f32 0.5, %v4124_v62 }
 0x253   :  { %v982_v5 = vadd.f32 0.5, %v981_v2 }
 0x254   :  { %v984_v4 = vadd.f32 0.5, %v983_v0 }
 0x256   :  { %v987_v7 = vmul.f32 %v984_v4, %v4524_v17  ;;  %v994_v17 = vld [vmem:[#allocation2 + $0x2] sm:$0x1] }
 0x257   :  { %v996_v37 = vsel %vm360_vm5, %v994_v17, %v995_v18 }
 0x259   :  { %v4126_v6 = vpop.eup %4125 }
 0x25a   :  { %v988_v8 = vmul.f32 %v4126_v6, %v982_v5  ;;  %v4128_v12 = vpop.eup %4127 }
 0x25b   :  { %v985_v13 = vmul.f32 0.5, %v4128_v12  ;;  %v1311_v12 = vld [vmem:[#allocation2 + $0x4] sm:$0x1] }
 0x25c   :  { %v4582_v11 = vadd.f32 %v988_v8, %v987_v7 }
 0x25d   :  { %v986_v14 = vadd.f32 0.5, %v985_v13  ;;  %v1388_v13 = vld [vmem:[#allocation2 + $0xb] sm:$0x1] }
 0x25e   :  { %4129 = vtanh.f32 %v4582_v11 }
 0x26b   :  { %v4130_v15 = vpop.eup %4129 }
 0x26c   :  { %v991_v16 = vmul.f32 %v4130_v15, %v986_v14  ;;  %v1389_v14 = vld [vmem:[#allocation2 + $0xc] sm:$0x1] }
 0x26d   :  { %v1390_v17 = vsel %vm360_vm5, %v1388_v13, %v1389_v14 }
 0x26e   :  { %992 = vst.msk [vmem:[#allocation3 + $0x1] sm:$0x1] %vm675_vm6, %v991_v16  ;;  %993 = vst.msk [vmem:[#allocation4 + $0x6] sm:$0x1] %vm675_vm6, %v991_v16  ;;  %3827 = vmatmul.mubr.msk.f32.vlgmr.msra.gmra.mxu0 %vm109_vm4, %v991_v16  ;;  %3838 = vmatmul.mubr.msk.f32.vlgmr.msra.gmra.mxu1 %vm109_vm4, %v991_v16 }
 0x26f   :  { %3841 = vmatpush3.msra.mxu0 %v4425_v28  ;;  %3852 = vmatpush3.msra.mxu1 %v4430_v29 }
 0x270   :  { %3842 = vmatprep.subr.mxu0 %v4252_v3  ;;  %3853 = vmatprep.subr.mxu1 %v4252_v3 }
 0x271   :  { %3843 = vmatpush3.msra.mxu0 %v4439_v30  ;;  %3854 = vmatpush3.msra.mxu1 %v4444_v31 }
 0x272   :  { %3844 = vmatprep.subr.mxu0 %v4252_v3  ;;  %3855 = vmatprep.subr.mxu1 %v4252_v3 }
 0x273   :  { %3845 = vmatpush3.msra.mxu0 %v4453_v32  ;;  %3856 = vmatpush3.msra.mxu1 %v4458_v33 }
 0x274   :  { %3846 = vmatprep.subr.mxu0 %v4252_v3  ;;  %3857 = vmatprep.subr.mxu1 %v4252_v3 }
 0x275   :  { %3847 = vmatpush3.msra.mxu0 %v4467_v34  ;;  %3848 = vmatprep.mubr.msk.f32.mxu0 %vm4253_vm1, %v4252_v3 }
 0x276   :  { %3858 = vmatpush3.msra.mxu1 %v4474_v35  ;;  %3859 = vmatprep.mubr.msk.f32.mxu1 %vm4253_vm1, %v4252_v3 }
 0x277   :  { %3849 = vmatmul.mubr.msk.f32.vlgmr.msra.gmra.mxu0 %vm109_vm4, %v991_v16  ;;  %3860 = vmatmul.mubr.msk.f32.vlgmr.msra.gmra.mxu1 %vm109_vm4, %v991_v16 }
 0x278   :  { %3862 = vmatprep.subr.mxu0 %v4252_v3  ;;  %3873 = vmatprep.subr.mxu1 %v4252_v3 }
 0x279   :  { %3863 = vmatpush3.msra.mxu0 %v4360_v19  ;;  %3874 = vmatpush3.msra.mxu1 %v4365_v20 }
 0x27a   :  { %3864 = vmatprep.subr.mxu0 %v4252_v3  ;;  %3875 = vmatprep.subr.mxu1 %v4252_v3 }
 0x27b   :  { %3865 = vmatpush3.msra.mxu0 %v4374_v21  ;;  %3876 = vmatpush3.msra.mxu1 %v4379_v22 }
 0x27c   :  { %3866 = vmatprep.subr.mxu0 %v4252_v3  ;;  %3877 = vmatprep.subr.mxu1 %v4252_v3 }
 0x27d   :  { %3867 = vmatpush3.msra.mxu0 %v4388_v23  ;;  %3878 = vmatpush3.msra.mxu1 %v4393_v24 }
 0x27e   :  { %3868 = vmatprep.subr.mxu0 %v4252_v3  ;;  %3879 = vmatprep.subr.mxu1 %v4252_v3 }
 0x27f   :  { %3869 = vmatpush3.msra.mxu0 %v4402_v25  ;;  %3880 = vmatpush3.msra.mxu1 %v4409_v26 }
 0x280   :  { %3870 = vmatprep.mubr.msk.f32.mxu0 %vm4253_vm1, %v4252_v3  ;;  %3881 = vmatprep.mubr.msk.f32.mxu1 %vm4253_vm1, %v4252_v3 }
 0x281   :  { %3884 = vmatprep.subr.mxu0 %v4252_v3  ;;  %3895 = vmatprep.subr.mxu1 %v4252_v3 }
 0x32e   :  { %v1066_v38 = vpop.f32.mrf.mxu0  ;;  %v1141_v40 = vpop.f32.mrf.mxu1 }
 0x32f   :  { %v1070_v41 = vadd.f32 %v1066_v38, %v996_v37  ;;  %v1145_v42 = vadd.f32 %v1141_v40, %v1074_v39  ;;  %v1463_v39 = vld [vmem:[#allocation2 + $0x13] sm:$0x1]  ;;  %v1464_v40 = vld [vmem:[#allocation2 + $0x14] sm:$0x1] }
 0x330   :  { %v3828_v43 = vpop.f32.mrf.mxu0  ;;  %v3839_v44 = vpop.f32.mrf.mxu1 }
 0x331   :  { %4131 = vtanh.f32 %v1070_v41  ;;  %v1465_v41 = vsel %vm360_vm5, %v1463_v39, %v1464_v40 }
 0x332   :  { %4133 = vtanh.f32 %v1145_v42 }
 0x337   :  { %v1216_v48 = vpop.f32.mrf.mxu0  ;;  %v1291_v49 = vpop.f32.mrf.mxu1 }
 0x338   :  { %v1220_v50 = vadd.f32 %v1216_v48, %v1149_v47  ;;  %v1295_v59 = vadd.f32 %v1291_v49, %v1224_v57  ;;  %v1538_v47 = vld [vmem:[#allocation2 + $0x1b] sm:$0x1]  ;;  %v1539_v48 = vld [vmem:[#allocation2 + $0x1c] sm:$0x1] }
 0x339   :  { %v3850_v51 = vpop.f32.mrf.mxu0  ;;  %v3861_v52 = vpop.f32.mrf.mxu1 }
 0x33a   :  { %4135 = vtanh.f32 %v1220_v50  ;;  %v1540_v51 = vsel %vm360_vm5, %v1538_v47, %v1539_v48 }
 0x33b   :  { %4137 = vtanh.f32 %v1295_v59 }
 0x33e   :  { %v4132_v55 = vpop.eup %4131 }
 0x33f   :  { %v4134_v56 = vpop.eup %4133  ;;  %v1297_v60 = vmul.f32 0.5, %v4132_v55 }
 0x340   :  { %v1299_v58 = vmul.f32 0.5, %v4134_v56 }
 0x341   :  { %v1298_v62 = vadd.f32 0.5, %v1297_v60 }
 0x342   :  { %v1300_v61 = vadd.f32 0.5, %v1299_v58 }
 0x344   :  { %v1303_v0 = vmul.f32 %v1300_v61, %v4582_v11  ;;  %v1310_v11 = vld [vmem:[#allocation2 + $0x3] sm:$0x1] }
 0x345   :  { %v1312_v15 = vsel %vm360_vm5, %v1310_v11, %v1311_v12 }
 0x347   :  { %v4136_v63 = vpop.eup %4135 }
 0x348   :  { %v1304_v1 = vmul.f32 %v4136_v63, %v1298_v62  ;;  %v4138_v4 = vpop.eup %4137 }
 0x349   :  { %v1301_v5 = vmul.f32 0.5, %v4138_v4  ;;  %v1627_v4 = vld [vmem:[#allocation2 + $0x3] sm:$0x1] }
 0x34a   :  { %v4640_v2 = vadd.f32 %v1304_v1, %v1303_v0 }
 0x34b   :  { %v1302_v6 = vadd.f32 0.5, %v1301_v5  ;;  %v1704_v5 = vld [vmem:[#allocation2 + $0xc] sm:$0x1] }
 0x34c   :  { %4139 = vtanh.f32 %v4640_v2 }
 0x359   :  { %v4140_v7 = vpop.eup %4139 }
 0x35a   :  { %v1307_v8 = vmul.f32 %v4140_v7, %v1302_v6  ;;  %v1705_v6 = vld [vmem:[#allocation2 + $0xb] sm:$0x1] }
 0x35b   :  { %v1706_v11 = vsel %vm360_vm5, %v1704_v5, %v1705_v6 }
 0x35c   :  { %1308 = vst.msk [vmem:[#allocation3 + $0x2] sm:$0x1] %vm675_vm6, %v1307_v8  ;;  %1309 = vst.msk [vmem:[#allocation4 + $0x5] sm:$0x1] %vm675_vm6, %v1307_v8  ;;  %3871 = vmatmul.mubr.msk.f32.vlgmr.msra.gmra.mxu0 %vm109_vm4, %v1307_v8  ;;  %3882 = vmatmul.mubr.msk.f32.vlgmr.msra.gmra.mxu1 %vm109_vm4, %v1307_v8 }
 0x35d   :  { %3885 = vmatpush3.msra.mxu0 %v4425_v28  ;;  %3896 = vmatpush3.msra.mxu1 %v4430_v29 }
 0x35e   :  { %3886 = vmatprep.subr.mxu0 %v4252_v3  ;;  %3897 = vmatprep.subr.mxu1 %v4252_v3 }
 0x35f   :  { %3887 = vmatpush3.msra.mxu0 %v4439_v30  ;;  %3898 = vmatpush3.msra.mxu1 %v4444_v31 }
 0x360   :  { %3888 = vmatprep.subr.mxu0 %v4252_v3  ;;  %3899 = vmatprep.subr.mxu1 %v4252_v3 }
 0x361   :  { %3889 = vmatpush3.msra.mxu0 %v4453_v32  ;;  %3900 = vmatpush3.msra.mxu1 %v4458_v33 }
 0x362   :  { %3890 = vmatprep.subr.mxu0 %v4252_v3  ;;  %3901 = vmatprep.subr.mxu1 %v4252_v3 }
 0x363   :  { %3891 = vmatpush3.msra.mxu0 %v4467_v34  ;;  %3892 = vmatprep.mubr.msk.f32.mxu0 %vm4253_vm1, %v4252_v3 }
 0x364   :  { %3902 = vmatpush3.msra.mxu1 %v4474_v35  ;;  %3903 = vmatprep.mubr.msk.f32.mxu1 %vm4253_vm1, %v4252_v3 }
 0x365   :  { %3893 = vmatmul.mubr.msk.f32.vlgmr.msra.gmra.mxu0 %vm109_vm4, %v1307_v8  ;;  %3904 = vmatmul.mubr.msk.f32.vlgmr.msra.gmra.mxu1 %vm109_vm4, %v1307_v8 }
 0x366   :  { %3906 = vmatprep.subr.mxu0 %v4252_v3  ;;  %3917 = vmatprep.subr.mxu1 %v4252_v3 }
 0x367   :  { %3907 = vmatpush3.msra.mxu0 %v4360_v19  ;;  %3918 = vmatpush3.msra.mxu1 %v4365_v20 }
 0x368   :  { %3908 = vmatprep.subr.mxu0 %v4252_v3  ;;  %3919 = vmatprep.subr.mxu1 %v4252_v3 }
 0x369   :  { %3909 = vmatpush3.msra.mxu0 %v4374_v21  ;;  %3920 = vmatpush3.msra.mxu1 %v4379_v22 }
 0x36a   :  { %3910 = vmatprep.subr.mxu0 %v4252_v3  ;;  %3921 = vmatprep.subr.mxu1 %v4252_v3 }
 0x36b   :  { %3911 = vmatpush3.msra.mxu0 %v4388_v23  ;;  %3922 = vmatpush3.msra.mxu1 %v4393_v24 }
 0x36c   :  { %3912 = vmatprep.subr.mxu0 %v4252_v3  ;;  %3923 = vmatprep.subr.mxu1 %v4252_v3 }
 0x36d   :  { %3913 = vmatpush3.msra.mxu0 %v4402_v25  ;;  %3924 = vmatpush3.msra.mxu1 %v4409_v26 }
 0x36e   :  { %3914 = vmatprep.mubr.msk.f32.mxu0 %vm4253_vm1, %v4252_v3  ;;  %3925 = vmatprep.mubr.msk.f32.mxu1 %vm4253_vm1, %v4252_v3 }
 0x36f   :  { %3928 = vmatprep.subr.mxu0 %v4252_v3  ;;  %3939 = vmatprep.subr.mxu1 %v4252_v3 }
 0x41c   :  { %v1382_v16 = vpop.f32.mrf.mxu0  ;;  %v1457_v18 = vpop.f32.mrf.mxu1 }
 0x41d   :  { %v1386_v27 = vadd.f32 %v1382_v16, %v1312_v15  ;;  %v1461_v36 = vadd.f32 %v1457_v18, %v1390_v17  ;;  %v1779_v17 = vld [vmem:[#allocation2 + $0x14] sm:$0x1]  ;;  %v1780_v18 = vld [vmem:[#allocation2 + $0x13] sm:$0x1] }
 0x41e   :  { %v3872_v37 = vpop.f32.mrf.mxu0  ;;  %v3883_v38 = vpop.f32.mrf.mxu1 }
 0x41f   :  { %4141 = vtanh.f32 %v1386_v27  ;;  %v1781_v27 = vsel %vm360_vm5, %v1779_v17, %v1780_v18 }
 0x420   :  { %4143 = vtanh.f32 %v1461_v36 }
 0x425   :  { %v1532_v42 = vpop.f32.mrf.mxu0  ;;  %v1607_v43 = vpop.f32.mrf.mxu1 }
 0x426   :  { %v1536_v44 = vadd.f32 %v1532_v42, %v1465_v41  ;;  %v1611_v53 = vadd.f32 %v1607_v43, %v1540_v51  ;;  %v1854_v41 = vld [vmem:[#allocation2 + $0x1c] sm:$0x1]  ;;  %v1855_v42 = vld [vmem:[#allocation2 + $0x1b] sm:$0x1] }
 0x427   :  { %v3894_v45 = vpop.f32.mrf.mxu0  ;;  %v3905_v46 = vpop.f32.mrf.mxu1 }
 0x428   :  { %4145 = vtanh.f32 %v1536_v44  ;;  %v1856_v45 = vsel %vm360_vm5, %v1854_v41, %v1855_v42  ;;  %v4844_v41 = vld [vmem:[%s5210_s1 + $0xd0] sm:$0xff]  ;;  %v4852_v42 = vld [vmem:[%s5210_s1 + $0xa8] sm:$0xff] }
 0x429   :  { %4147 = vtanh.f32 %v1611_v53 }
 0x42c   :  { %v4142_v49 = vpop.eup %4141 }
 0x42d   :  { %v4144_v50 = vpop.eup %4143  ;;  %v1613_v54 = vmul.f32 0.5, %v4142_v49 }
 0x42e   :  { %v1615_v52 = vmul.f32 0.5, %v4144_v50 }
 0x42f   :  { %v1614_v56 = vadd.f32 0.5, %v1613_v54 }
 0x430   :  { %v1616_v55 = vadd.f32 0.5, %v1615_v52 }
 0x432   :  { %v1619_v58 = vmul.f32 %v1616_v55, %v4640_v2  ;;  %v1626_v2 = vld [vmem:[#allocation2 + $0x4] sm:$0x1] }
 0x433   :  { %v1628_v7 = vsel %vm360_vm5, %v1626_v2, %v1627_v4 }
 0x435   :  { %v4146_v57 = vpop.eup %4145 }
 0x436   :  { %v1620_v59 = vmul.f32 %v4146_v57, %v1614_v56  ;;  %v4148_v61 = vpop.eup %4147 }
 0x437   :  { %v1617_v62 = vmul.f32 0.5, %v4148_v61 }
 0x438   :  { %v4698_v60 = vadd.f32 %v1620_v59, %v1619_v58 }
 0x439   :  { %v1618_v63 = vadd.f32 0.5, %v1617_v62 }
 0x43a   :  { %4149 = vtanh.f32 %v4698_v60 }
 0x447   :  { %v4150_v0 = vpop.eup %4149 }
 0x448   :  { %v1623_v1 = vmul.f32 %v4150_v0, %v1618_v63  ;;  %v2170_v0 = vld [vmem:[#allocation2 + $0x1d] sm:$0x1] }
 0x44a   :  { %1624 = vst.msk [vmem:[#allocation3 + $0x3] sm:$0x1] %vm675_vm6, %v1623_v1  ;;  %1625 = vst.msk [vmem:[#allocation4 + $0x4] sm:$0x1] %vm675_vm6, %v1623_v1  ;;  %3915 = vmatmul.mubr.msk.f32.vlgmr.msra.gmra.mxu0 %vm109_vm4, %v1623_v1  ;;  %3926 = vmatmul.mubr.msk.f32.vlgmr.msra.gmra.mxu1 %vm109_vm4, %v1623_v1 }
 0x44b   :  { %3929 = vmatpush3.msra.mxu0 %v4425_v28  ;;  %3940 = vmatpush3.msra.mxu1 %v4430_v29 }
 0x44c   :  { %3930 = vmatprep.subr.mxu0 %v4252_v3  ;;  %3941 = vmatprep.subr.mxu1 %v4252_v3 }
 0x44d   :  { %3931 = vmatpush3.msra.mxu0 %v4439_v30  ;;  %3942 = vmatpush3.msra.mxu1 %v4444_v31 }
 0x44e   :  { %3932 = vmatprep.subr.mxu0 %v4252_v3  ;;  %3943 = vmatprep.subr.mxu1 %v4252_v3 }
 0x44f   :  { %3933 = vmatpush3.msra.mxu0 %v4453_v32  ;;  %3944 = vmatpush3.msra.mxu1 %v4458_v33 }
 0x450   :  { %3934 = vmatprep.subr.mxu0 %v4252_v3  ;;  %3945 = vmatprep.subr.mxu1 %v4252_v3 }
 0x451   :  { %3935 = vmatpush3.msra.mxu0 %v4467_v34  ;;  %3936 = vmatprep.mubr.msk.f32.mxu0 %vm4253_vm1, %v4252_v3 }
 0x452   :  { %3946 = vmatpush3.msra.mxu1 %v4474_v35  ;;  %3947 = vmatprep.mubr.msk.f32.mxu1 %vm4253_vm1, %v4252_v3 }
 0x453   :  { %3937 = vmatmul.mubr.msk.f32.vlgmr.msra.gmra.mxu0 %vm109_vm4, %v1623_v1  ;;  %3948 = vmatmul.mubr.msk.f32.vlgmr.msra.gmra.mxu1 %vm109_vm4, %v1623_v1  ;;  %v2171_v1 = vld [vmem:[#allocation2 + $0x1a] sm:$0x1] }
 0x454   :  { %3950 = vmatprep.subr.mxu0 %v4252_v3  ;;  %3961 = vmatprep.subr.mxu1 %v4252_v3  ;;  %v2172_v5 = vsel %vm360_vm5, %v2170_v0, %v2171_v1 }
 0x455   :  { %3951 = vmatpush3.msra.mxu0 %v4360_v19  ;;  %3962 = vmatpush3.msra.mxu1 %v4365_v20 }
 0x456   :  { %3952 = vmatprep.subr.mxu0 %v4252_v3  ;;  %3963 = vmatprep.subr.mxu1 %v4252_v3 }
 0x457   :  { %3953 = vmatpush3.msra.mxu0 %v4374_v21  ;;  %3964 = vmatpush3.msra.mxu1 %v4379_v22 }
 0x458   :  { %3954 = vmatprep.subr.mxu0 %v4252_v3  ;;  %3965 = vmatprep.subr.mxu1 %v4252_v3 }
 0x459   :  { %3955 = vmatpush3.msra.mxu0 %v4388_v23  ;;  %3966 = vmatpush3.msra.mxu1 %v4393_v24 }
 0x45a   :  { %3956 = vmatprep.subr.mxu0 %v4252_v3  ;;  %3967 = vmatprep.subr.mxu1 %v4252_v3 }
 0x45b   :  { %3957 = vmatpush3.msra.mxu0 %v4402_v25  ;;  %3968 = vmatpush3.msra.mxu1 %v4409_v26 }
 0x45c   :  { %3958 = vmatprep.mubr.msk.f32.mxu0 %vm4253_vm1, %v4252_v3  ;;  %3969 = vmatprep.mubr.msk.f32.mxu1 %vm4253_vm1, %v4252_v3 }
 0x45d   :  { %3972 = vmatprep.subr.mxu0 %v4252_v3  ;;  %3983 = vmatprep.subr.mxu1 %v4252_v3 }
 0x50a   :  { %v1698_v8 = vpop.f32.mrf.mxu0  ;;  %v1773_v12 = vpop.f32.mrf.mxu1 }
 0x50b   :  { %v1702_v13 = vadd.f32 %v1698_v8, %v1628_v7  ;;  %v1777_v14 = vadd.f32 %v1773_v12, %v1706_v11 }
 0x50c   :  { %v3916_v15 = vpop.f32.mrf.mxu0  ;;  %v3927_v16 = vpop.f32.mrf.mxu1 }
 0x50d   :  { %4151 = vtanh.f32 %v1702_v13 }
 0x50e   :  { %4153 = vtanh.f32 %v1777_v14 }
 0x513   :  { %v1848_v36 = vpop.f32.mrf.mxu0  ;;  %v1923_v37 = vpop.f32.mrf.mxu1 }
 0x514   :  { %v1852_v38 = vadd.f32 %v1848_v36, %v1781_v27  ;;  %v1927_v47 = vadd.f32 %v1923_v37, %v1856_v45  ;;  %v4874_v45 = vld [vmem:[%s5210_s1 + $0xc0] sm:$0xff] }
 0x515   :  { %v3938_v39 = vpop.f32.mrf.mxu0  ;;  %v3949_v40 = vpop.f32.mrf.mxu1 }
 0x516   :  { %4155 = vtanh.f32 %v1852_v38  ;;  %v4824_v38 = vld [vmem:[%s5210_s1 + $0xb8] sm:$0xff]  ;;  %v4838_v40 = vld [vmem:[%s5210_s1 + $0xb0] sm:$0xff] }
 0x517   :  { %4157 = vtanh.f32 %v1927_v47  ;;  %v4830_v39 = vld [vmem:[%s5210_s1 + $0xd8] sm:$0xff] }
 0x518   :  { %v4200_v47 = vld [vmem:[%s5210_s1 + $0x98] sm:$0xff] }
 0x51a   :  { %v4152_v43 = vpop.eup %4151 }
 0x51b   :  { %v4154_v44 = vpop.eup %4153  ;;  %v1929_v48 = vmul.f32 0.5, %v4152_v43  ;;  %v4858_v43 = vld [vmem:[%s5210_s1 + $0xc8] sm:$0xff] }
 0x51c   :  { %v1931_v46 = vmul.f32 0.5, %v4154_v44  ;;  %v4866_v44 = vld [vmem:[%s5210_s1 + $0xa0] sm:$0xff] }
 0x51d   :  { %v1930_v50 = vadd.f32 0.5, %v1929_v48  ;;  %v4201_v48 = vld [vmem:[%s5210_s1 + $0x70] sm:$0xff] }
 0x51e   :  { %v1932_v49 = vadd.f32 0.5, %v1931_v46  ;;  %v4199_v46 = vld [vmem:[%s5210_s1 + $0x78] sm:$0xff] }
 0x520   :  { %v1935_v52 = vmul.f32 %v1932_v49, %v4698_v60  ;;  %v4202_v49 = vld [vmem:[%s5210_s1 + $0x90] sm:$0xff] }
 0x523   :  { %v4156_v51 = vpop.eup %4155 }
 0x524   :  { %v1936_v53 = vmul.f32 %v4156_v51, %v1930_v50  ;;  %v4158_v55 = vpop.eup %4157  ;;  %v4203_v50 = vld [vmem:[%s5210_s1 + $0x68] sm:$0xff] }
 0x525   :  { %v1933_v56 = vmul.f32 0.5, %v4158_v55  ;;  %v4204_v51 = vld [vmem:[%s5210_s1 + $0x88] sm:$0xff]  ;;  %v2259_v55 = vld [vmem:[#allocation2 + $0x1] sm:$0x1] }
 0x526   :  { %v4756_v54 = vadd.f32 %v1936_v53, %v1935_v52  ;;  %v4205_v52 = vld [vmem:[%s5210_s1 + $0x60] sm:$0xff] }
 0x527   :  { %v1934_v57 = vadd.f32 0.5, %v1933_v56  ;;  %v4206_v53 = vld [vmem:[%s5210_s1 + $0x80] sm:$0xff]  ;;  %v2336_v56 = vld [vmem:[#allocation2 + $0xe] sm:$0x1] }
 0x528   :  { %4159 = vtanh.f32 %v4756_v54 }
 0x535   :  { %v4160_v58 = vpop.eup %4159 }
 0x536   :  { %v1939_v59 = vmul.f32 %v4160_v58, %v1934_v57  ;;  %v2337_v57 = vld [vmem:[#allocation2 + $0x9] sm:$0x1] }
 0x538   :  { %1940 = vst.msk [vmem:[#allocation3 + $0x4] sm:$0x1] %vm675_vm6, %v1939_v59  ;;  %1941 = vst.msk [vmem:[#allocation4 + $0x3] sm:$0x1] %vm675_vm6, %v1939_v59  ;;  %3959 = vmatmul.mubr.msk.f32.vlgmr.msra.gmra.mxu0 %vm109_vm4, %v1939_v59  ;;  %3970 = vmatmul.mubr.msk.f32.vlgmr.msra.gmra.mxu1 %vm109_vm4, %v1939_v59 }
 0x539   :  { %3973 = vmatpush3.msra.mxu0 %v4425_v28  ;;  %3984 = vmatpush3.msra.mxu1 %v4430_v29 }
 0x53a   :  { %3974 = vmatprep.subr.mxu0 %v4252_v3  ;;  %3985 = vmatprep.subr.mxu1 %v4252_v3 }
 0x53b   :  { %3975 = vmatpush3.msra.mxu0 %v4439_v30  ;;  %3986 = vmatpush3.msra.mxu1 %v4444_v31 }
 0x53c   :  { %3976 = vmatprep.subr.mxu0 %v4252_v3  ;;  %3987 = vmatprep.subr.mxu1 %v4252_v3 }
 0x53d   :  { %3977 = vmatpush3.msra.mxu0 %v4453_v32  ;;  %3988 = vmatpush3.msra.mxu1 %v4458_v33  ;;  %v2095_v32 = vld [vmem:[#allocation2 + $0x15] sm:$0x1]  ;;  %v2096_v33 = vld [vmem:[#allocation2 + $0x12] sm:$0x1] }
 0x53e   :  { %3978 = vmatprep.subr.mxu0 %v4252_v3  ;;  %3989 = vmatprep.subr.mxu1 %v4252_v3 }
 0x53f   :  { %3979 = vmatpush3.msra.mxu0 %v4467_v34  ;;  %3980 = vmatprep.mubr.msk.f32.mxu0 %vm4253_vm1, %v4252_v3  ;;  %v2097_v34 = vsel %vm360_vm5, %v2095_v32, %v2096_v33 }
 0x540   :  { %3990 = vmatpush3.msra.mxu1 %v4474_v35  ;;  %3991 = vmatprep.mubr.msk.f32.mxu1 %vm4253_vm1, %v4252_v3 }
 0x541   :  { %3981 = vmatmul.mubr.msk.f32.vlgmr.msra.gmra.mxu0 %vm109_vm4, %v1939_v59  ;;  %3992 = vmatmul.mubr.msk.f32.vlgmr.msra.gmra.mxu1 %vm109_vm4, %v1939_v59 }
 0x542   :  { %3994 = vmatprep.subr.mxu0 %v4252_v3  ;;  %4005 = vmatprep.subr.mxu1 %v4252_v3 }
 0x543   :  { %3995 = vmatpush3.msra.mxu0 %v4360_v19  ;;  %4006 = vmatpush3.msra.mxu1 %v4365_v20  ;;  %v1942_v19 = vld [vmem:[#allocation2 + $0x5] sm:$0x1]  ;;  %v1943_v20 = vld [vmem:[#allocation2 + $0x2] sm:$0x1] }
 0x544   :  { %3996 = vmatprep.subr.mxu0 %v4252_v3  ;;  %4007 = vmatprep.subr.mxu1 %v4252_v3 }
 0x545   :  { %3997 = vmatpush3.msra.mxu0 %v4374_v21  ;;  %4008 = vmatpush3.msra.mxu1 %v4379_v22  ;;  %v2020_v21 = vld [vmem:[#allocation2 + $0xd] sm:$0x1]  ;;  %v2021_v22 = vld [vmem:[#allocation2 + $0xa] sm:$0x1] }
 0x546   :  { %3998 = vmatprep.subr.mxu0 %v4252_v3  ;;  %4009 = vmatprep.subr.mxu1 %v4252_v3 }
 0x547   :  { %3999 = vmatpush3.msra.mxu0 %v4388_v23  ;;  %4010 = vmatpush3.msra.mxu1 %v4393_v24  ;;  %v1944_v23 = vsel %vm360_vm5, %v1942_v19, %v1943_v20  ;;  %v2338_v19 = vsel %vm360_vm5, %v2336_v56, %v2337_v57 }
 0x548   :  { %4000 = vmatprep.subr.mxu0 %v4252_v3  ;;  %4011 = vmatprep.subr.mxu1 %v4252_v3 }
 0x549   :  { %4001 = vmatpush3.msra.mxu0 %v4402_v25  ;;  %4012 = vmatpush3.msra.mxu1 %v4409_v26  ;;  %v2022_v25 = vsel %vm360_vm5, %v2020_v21, %v2021_v22 }
 0x54a   :  { %4002 = vmatprep.mubr.msk.f32.mxu0 %vm4253_vm1, %v4252_v3  ;;  %4013 = vmatprep.mubr.msk.f32.mxu1 %vm4253_vm1, %v4252_v3 }
 0x54b   :  { %4016 = vmatprep.subr.mxu0 %v4252_v3  ;;  %4027 = vmatprep.subr.mxu1 %v4252_v3 }
 0x5f8   :  { %v2014_v24 = vpop.f32.mrf.mxu0  ;;  %v2089_v26 = vpop.f32.mrf.mxu1 }
 0x5f9   :  { %v2018_v28 = vadd.f32 %v2014_v24, %v1944_v23  ;;  %v2093_v29 = vadd.f32 %v2089_v26, %v2022_v25  ;;  %v2411_v25 = vld [vmem:[#allocation2 + $0x16] sm:$0x1]  ;;  %v2412_v26 = vld [vmem:[#allocation2 + $0x11] sm:$0x1] }
 0x5fa   :  { %v3960_v30 = vpop.f32.mrf.mxu0  ;;  %v3971_v31 = vpop.f32.mrf.mxu1 }
 0x5fb   :  { %4161 = vtanh.f32 %v2018_v28  ;;  %v2413_v28 = vsel %vm360_vm5, %v2411_v25, %v2412_v26 }
 0x5fc   :  { %4163 = vtanh.f32 %v2093_v29 }
 0x601   :  { %v2164_v35 = vpop.f32.mrf.mxu0  ;;  %v2239_v60 = vpop.f32.mrf.mxu1 }
 0x602   :  { %v2168_v61 = vadd.f32 %v2164_v35, %v2097_v34  ;;  %v2243_v7 = vadd.f32 %v2239_v60, %v2172_v5  ;;  %v2486_v34 = vld [vmem:[#allocation2 + $0x1e] sm:$0x1]  ;;  %v2487_v35 = vld [vmem:[#allocation2 + $0x19] sm:$0x1] }
 0x603   :  { %v3982_v62 = vpop.f32.mrf.mxu0  ;;  %v3993_v63 = vpop.f32.mrf.mxu1 }
 0x604   :  { %4165 = vtanh.f32 %v2168_v61  ;;  %v2488_v62 = vsel %vm360_vm5, %v2486_v34, %v2487_v35 }
 0x605   :  { %4167 = vtanh.f32 %v2243_v7 }
 0x608   :  { %v4162_v2 = vpop.eup %4161 }
 0x609   :  { %v4164_v4 = vpop.eup %4163  ;;  %v2245_v8 = vmul.f32 0.5, %v4162_v2 }
 0x60a   :  { %v2247_v6 = vmul.f32 0.5, %v4164_v4 }
 0x60b   :  { %v2246_v12 = vadd.f32 0.5, %v2245_v8 }
 0x60c   :  { %v2248_v11 = vadd.f32 0.5, %v2247_v6 }
 0x60e   :  { %v2251_v14 = vmul.f32 %v2248_v11, %v4756_v54  ;;  %v2258_v54 = vld [vmem:[#allocation2 + $0x6] sm:$0x1] }
 0x60f   :  { %v2260_v58 = vsel %vm360_vm5, %v2258_v54, %v2259_v55 }
 0x611   :  { %v4166_v13 = vpop.eup %4165 }
 0x612   :  { %v2252_v15 = vmul.f32 %v4166_v13, %v2246_v12  ;;  %v4168_v17 = vpop.eup %4167 }
 0x613   :  { %v2249_v18 = vmul.f32 0.5, %v4168_v17  ;;  %v2893_v17 = vld [vmem:[%s5211_s2 + $0x20] sm:$0xff] }
 0x614   :  { %v4814_v16 = vadd.f32 %v2252_v15, %v2251_v14 }
 0x615   :  { %v2250_v27 = vadd.f32 0.5, %v2249_v18  ;;  %v2896_v18 = vld [vmem:[%s5211_s2 + $0x38] sm:$0xff] }
 0x616   :  { %4169 = vtanh.f32 %v4814_v16 }
 0x623   :  { %v4170_v36 = vpop.eup %4169 }
 0x624   :  { %v2255_v37 = vmul.f32 %v4170_v36, %v2250_v27  ;;  %v2892_v27 = vld [vmem:[%s5211_s2 + $0x18] sm:$0xff]  ;;  %v2895_v36 = vld [vmem:[%s5211_s2 + $0x30] sm:$0xff] }
 0x626   :  { %2256 = vst.msk [vmem:[#allocation3 + $0x5] sm:$0x1] %vm675_vm6, %v2255_v37  ;;  %2257 = vst.msk [vmem:[#allocation4 + $0x2] sm:$0x1] %vm675_vm6, %v2255_v37  ;;  %4003 = vmatmul.mubr.msk.f32.vlgmr.msra.gmra.mxu0 %vm109_vm4, %v2255_v37  ;;  %4014 = vmatmul.mubr.msk.f32.vlgmr.msra.gmra.mxu1 %vm109_vm4, %v2255_v37 }
 0x627   :  { %4017 = vmatpush3.msra.mxu0 %v4824_v38  ;;  %4028 = vmatpush3.msra.mxu1 %v4830_v39 }
 0x628   :  { %4018 = vmatprep.subr.mxu0 %v4252_v3  ;;  %4029 = vmatprep.subr.mxu1 %v4252_v3 }
 0x629   :  { %4019 = vmatpush3.msra.mxu0 %v4838_v40  ;;  %4030 = vmatpush3.msra.mxu1 %v4844_v41 }
 0x62a   :  { %4020 = vmatprep.subr.mxu0 %v4252_v3  ;;  %4031 = vmatprep.subr.mxu1 %v4252_v3 }
 0x62b   :  { %4021 = vmatpush3.msra.mxu0 %v4852_v42  ;;  %4032 = vmatpush3.msra.mxu1 %v4858_v43 }
 0x62c   :  { %4022 = vmatprep.subr.mxu0 %v4252_v3  ;;  %4033 = vmatprep.subr.mxu1 %v4252_v3 }
 0x62d   :  { %4023 = vmatpush3.msra.mxu0 %v4866_v44  ;;  %4024 = vmatprep.mubr.msk.f32.mxu0 %vm4253_vm1, %v4252_v3 }
 0x62e   :  { %4034 = vmatpush3.msra.mxu1 %v4874_v45  ;;  %4035 = vmatprep.mubr.msk.f32.mxu1 %vm4253_vm1, %v4252_v3 }
 0x62f   :  { %4025 = vmatmul.mubr.msk.f32.vlgmr.msra.gmra.mxu0 %vm109_vm4, %v2255_v37  ;;  %4036 = vmatmul.mubr.msk.f32.vlgmr.msra.gmra.mxu1 %vm109_vm4, %v2255_v37  ;;  %v2891_v37 = vld [vmem:[%s5211_s2 + $0x10] sm:$0xff] }
 0x630   :  { %4038 = vmatprep.subr.mxu0 %v4252_v3  ;;  %4049 = vmatprep.subr.mxu1 %v4252_v3 }
 0x631   :  { %4039 = vmatpush3.msra.mxu0 %v4199_v46  ;;  %4050 = vmatpush3.msra.mxu1 %v4200_v47 }
 0x632   :  { %4040 = vmatprep.subr.mxu0 %v4252_v3  ;;  %4051 = vmatprep.subr.mxu1 %v4252_v3 }
 0x633   :  { %4041 = vmatpush3.msra.mxu0 %v4201_v48  ;;  %4052 = vmatpush3.msra.mxu1 %v4202_v49 }
 0x634   :  { %4042 = vmatprep.subr.mxu0 %v4252_v3  ;;  %4053 = vmatprep.subr.mxu1 %v4252_v3 }
 0x635   :  { %4043 = vmatpush3.msra.mxu0 %v4203_v50  ;;  %4054 = vmatpush3.msra.mxu1 %v4204_v51 }
 0x636   :  { %4044 = vmatprep.subr.mxu0 %v4252_v3  ;;  %4055 = vmatprep.subr.mxu1 %v4252_v3 }
 0x637   :  { %4045 = vmatpush3.msra.mxu0 %v4205_v52  ;;  %4056 = vmatpush3.msra.mxu1 %v4206_v53  ;;  %v2728_v52 = vld [vmem:[#allocation2 + $0x10] sm:$0x1] }
 0x638   :  { %4046 = vmatprep.mubr.msk.f32.mxu0 %vm4253_vm1, %v4252_v3  ;;  %4057 = vmatprep.mubr.msk.f32.mxu1 %vm4253_vm1, %v4252_v3 }
 0x639   :  { %4060 = vmatprep.subr.mxu0 %v4252_v3  ;;  %4071 = vmatprep.subr.mxu1 %v4252_v3 }
 0x6e6   :  { %v2330_v59 = vpop.f32.mrf.mxu0  ;;  %v2405_v20 = vpop.f32.mrf.mxu1 }
 0x6e7   :  { %v2334_v21 = vadd.f32 %v2330_v59, %v2260_v58  ;;  %v2409_v22 = vadd.f32 %v2405_v20, %v2338_v19  ;;  %v2802_v59 = vld [vmem:[#allocation2 + $0x1f] sm:$0x1]  ;;  %v2803_v19 = vld [vmem:[#allocation2 + $0x18] sm:$0x1] }
 0x6e8   :  { %v4004_v23 = vpop.f32.mrf.mxu0  ;;  %v4015_v24 = vpop.f32.mrf.mxu1 }
 0x6e9   :  { %4171 = vtanh.f32 %v2334_v21 }
 0x6ea   :  { %4173 = vtanh.f32 %v2409_v22  ;;  %v2804_v22 = vsel %vm360_vm5, %v2802_v59, %v2803_v19 }
 0x6ef   :  { %v2480_v29 = vpop.f32.mrf.mxu0  ;;  %v2555_v30 = vpop.f32.mrf.mxu1 }
 0x6f0   :  { %v2484_v31 = vadd.f32 %v2480_v29, %v2413_v28  ;;  %v2559_v0 = vadd.f32 %v2555_v30, %v2488_v62 }
 0x6f1   :  { %v4026_v32 = vpop.f32.mrf.mxu0  ;;  %v4037_v33 = vpop.f32.mrf.mxu1 }
 0x6f2   :  { %4175 = vtanh.f32 %v2484_v31 }
 0x6f3   :  { %4177 = vtanh.f32 %v2559_v0  ;;  %v5005_v0 = vshrl.u32 %v20_v9, 7  ;;  %v3507_v9 = vld [vmem:[%s5211_s2 + $0x6] ss:$0 sm:$0xff] }
 0x6f5   :  { %vm3059_vm7 = vcmp.eq.s32.totalorder %v5005_v0, 3  ;;  %vm5023_vm10 = vcmp.eq.s32.totalorder %v5005_v0, %v4323_v10 }
 0x6f6   :  { %v4172_v60 = vpop.eup %4171 }
 0x6f7   :  { %v4174_v61 = vpop.eup %4173  ;;  %v2561_v1 = vmul.f32 0.5, %v4172_v60 }
 0x6f8   :  { %v2563_v63 = vmul.f32 0.5, %v4174_v61 }
 0x6f9   :  { %v2562_v4 = vadd.f32 0.5, %v2561_v1  ;;  %v5011_v1 = vld [vmem:[%s5211_s2] sm:$0x1f] }
 0x6fa   :  { %v2564_v2 = vadd.f32 0.5, %v2563_v63 }
 0x6fc   :  { %v2567_v6 = vmul.f32 %v2564_v2, %v4814_v16  ;;  %v2897_v16 = vld [vmem:[%s5211_s2 + $0x40] sm:$0xff]  ;;  %v4254_v2 = vmov -10000.0  }
 0x6ff   :  { %v4176_v5 = vpop.eup %4175 }
 0x700   :  { %v2568_v7 = vmul.f32 %v4176_v5, %v2562_v4  ;;  %v4178_v11 = vpop.eup %4177  ;;  %v3060_v4 = vsel %vm3059_vm7, 0.0, %v4254_v2 }
 0x701   :  { %v2565_v12 = vmul.f32 0.5, %v4178_v11  ;;  %v3061_v5 = vadd.f32 %v3060_v4, %v5011_v1 }
 0x702   :  { %v4928_v8 = vadd.f32 %v2568_v7, %v2567_v6 }
 0x703   :  { %v2566_v13 = vadd.f32 0.5, %v2565_v12  ;;  %v3063_v6 = vsel %vm3062_vm8, %v3061_v5, -inf }
 0x704   :  { %4179 = vtanh.f32 %v4928_v8  ;;  %v3064_v7 = vrot.slane %v3063_v6, 4 }
 0x711   :  { %v4180_v14 = vpop.eup %4179 }
 0x712   :  { %v2571_v15 = vmul.f32 %v4180_v14, %v2566_v13 }
 0x714   :  { %2572 = vst.msk [vmem:[#allocation3 + $0x6] sm:$0x1] %vm675_vm6, %v2571_v15  ;;  %2573 = vst.msk [vmem:[#allocation4 + $0x1] sm:$0x1] %vm675_vm6, %v2571_v15  ;;  %4047 = vmatmul.mubr.msk.f32.vlgmr.msra.gmra.mxu0 %vm109_vm4, %v2571_v15  ;;  %4058 = vmatmul.mubr.msk.f32.vlgmr.msra.gmra.mxu1 %vm109_vm4, %v2571_v15 }
 0x715   :  { %4061 = vmatpush3.msra.mxu0 %v4824_v38  ;;  %4072 = vmatpush3.msra.mxu1 %v4830_v39  ;;  %v2894_v38 = vld [vmem:[%s5211_s2 + $0x28] sm:$0xff] }
 0x716   :  { %4062 = vmatprep.subr.mxu0 %v4252_v3  ;;  %4073 = vmatprep.subr.mxu1 %v4252_v3  ;;  %v2890_v39 = vld [vmem:[%s5211_s2 + $0x8] sm:$0xff] }
 0x717   :  { %4063 = vmatpush3.msra.mxu0 %v4838_v40  ;;  %4074 = vmatpush3.msra.mxu1 %v4844_v41  ;;  %v2574_v40 = vld [vmem:[#allocation2 + $0x7] sm:$0x1]  ;;  %v2575_v41 = vld [vmem:[#allocation2] sm:$0x1] }
 0x718   :  { %4064 = vmatprep.subr.mxu0 %v4252_v3  ;;  %4075 = vmatprep.subr.mxu1 %v4252_v3 }
 0x719   :  { %4065 = vmatpush3.msra.mxu0 %v4852_v42  ;;  %4076 = vmatpush3.msra.mxu1 %v4858_v43  ;;  %v2652_v42 = vld [vmem:[#allocation2 + $0xf] sm:$0x1]  ;;  %v2653_v43 = vld [vmem:[#allocation2 + $0x8] sm:$0x1] }
 0x71a   :  { %4066 = vmatprep.subr.mxu0 %v4252_v3  ;;  %4077 = vmatprep.subr.mxu1 %v4252_v3  ;;  %v2654_v46 = vsel %vm360_vm5, %v2652_v42, %v2653_v43 }
 0x71b   :  { %4067 = vmatpush3.msra.mxu0 %v4866_v44  ;;  %4068 = vmatprep.mubr.msk.f32.mxu0 %vm4253_vm1, %v4252_v3  ;;  %v2576_v44 = vsel %vm360_vm5, %v2574_v40, %v2575_v41 }
 0x71c   :  { %4078 = vmatpush3.msra.mxu1 %v4874_v45  ;;  %4079 = vmatprep.mubr.msk.f32.mxu1 %vm4253_vm1, %v4252_v3 }
 0x71d   :  { %4069 = vmatmul.mubr.msk.f32.vlgmr.msra.gmra.mxu0 %vm109_vm4, %v2571_v15  ;;  %4080 = vmatmul.mubr.msk.f32.vlgmr.msra.gmra.mxu1 %vm109_vm4, %v2571_v15 }
 0x71e   :  { %4082 = vmatprep.subr.mxu0 %v4252_v3  ;;  %4093 = vmatprep.subr.mxu1 %v4252_v3 }
 0x71f   :  { %4090 = vmatprep.mubr.msk.f32.mxu0 %vm4253_vm1, %v4252_v3  ;;  %4101 = vmatprep.mubr.msk.f32.mxu1 %vm4253_vm1, %v4252_v3 }
 0x720   :  { %4083 = vmatpush3.msra.mxu0 %v2897_v16  ;;  %4094 = vmatpush3.msra.mxu1 %v2893_v17 }
 0x721   :  { %4084 = vmatprep.subr.mxu0 %v4252_v3  ;;  %4095 = vmatprep.subr.mxu1 %v4252_v3 }
 0x722   :  { %4085 = vmatpush3.msra.mxu0 %v2896_v18  ;;  %4096 = vmatpush3.msra.mxu1 %v2892_v27 }
 0x723   :  { %4086 = vmatprep.subr.mxu0 %v4252_v3  ;;  %4097 = vmatprep.subr.mxu1 %v4252_v3 }
 0x724   :  { %4087 = vmatpush3.msra.mxu0 %v2895_v36  ;;  %4098 = vmatpush3.msra.mxu1 %v2891_v37  ;;  %v5019_v37 = vsub.s32 0, %v5005_v0 }
 0x725   :  { %4088 = vmatprep.subr.mxu0 %v4252_v3  ;;  %4099 = vmatprep.subr.mxu1 %v4252_v3  ;;  %v2727_v3 = vld [vmem:[#allocation2 + $0x17] sm:$0x1] }
 0x726   :  { %4089 = vmatpush3.msra.mxu0 %v2894_v38  ;;  %4100 = vmatpush3.msra.mxu1 %v2890_v39  ;;  %v2729_v53 = vsel %vm360_vm5, %v2727_v3, %v2728_v52 }
 0x7d4   :  { %v2646_v45 = vpop.f32.mrf.mxu0  ;;  %v2721_v47 = vpop.f32.mrf.mxu1 }
 0x7d5   :  { %v2650_v48 = vadd.f32 %v2646_v45, %v2576_v44  ;;  %v2725_v49 = vadd.f32 %v2721_v47, %v2654_v46 }
 0x7d6   :  { %v4048_v50 = vpop.f32.mrf.mxu0  ;;  %v4059_v51 = vpop.f32.mrf.mxu1 }
 0x7d7   :  { %4181 = vtanh.f32 %v2650_v48 }
 0x7d8   :  { %4183 = vtanh.f32 %v2725_v49 }
 0x7dd   :  { %v2796_v54 = vpop.f32.mrf.mxu0  ;;  %v2871_v55 = vpop.f32.mrf.mxu1 }
 0x7de   :  { %v2800_v56 = vadd.f32 %v2796_v54, %v2729_v53  ;;  %v2875_v24 = vadd.f32 %v2871_v55, %v2804_v22 }
 0x7df   :  { %v4070_v57 = vpop.f32.mrf.mxu0  ;;  %v4081_v58 = vpop.f32.mrf.mxu1 }
 0x7e0   :  { %4185 = vtanh.f32 %v2800_v56 }
 0x7e1   :  { %4187 = vtanh.f32 %v2875_v24 }
 0x7e4   :  { %v4182_v20 = vpop.eup %4181 }
 0x7e5   :  { %v4184_v21 = vpop.eup %4183  ;;  %v2877_v25 = vmul.f32 0.5, %v4182_v20 }
 0x7e6   :  { %v2879_v23 = vmul.f32 0.5, %v4184_v21 }
 0x7e7   :  { %v2878_v28 = vadd.f32 0.5, %v2877_v25 }
 0x7e8   :  { %v2880_v26 = vadd.f32 0.5, %v2879_v23 }
 0x7ea   :  { %v2883_v30 = vmul.f32 %v2880_v26, %v4928_v8  ;;  %v3065_v8 = vmax.f32 %v3063_v6, %v3064_v7 }
 0x7ec   :  { %v3066_v11 = vrot.slane %v3065_v8, 2 }
 0x7ed   :  { %v4186_v29 = vpop.eup %4185 }
 0x7ee   :  { %v2884_v31 = vmul.f32 %v4186_v29, %v2878_v28  ;;  %v4188_v33 = vpop.eup %4187  ;;  %v3067_v15 = vmax.f32 %v3065_v8, %v3066_v11 }
 0x7ef   :  { %v2881_v34 = vmul.f32 0.5, %v4188_v33 }
 0x7f0   :  { %v2885_v32 = vadd.f32 %v2884_v31, %v2883_v30  ;;  %v3068_v27 = vrot.slane %v3067_v15, 1 }
 0x7f1   :  { %v2882_v35 = vadd.f32 0.5, %v2881_v34 }
 0x7f2   :  { %4189 = vtanh.f32 %v2885_v32  ;;  %v3069_v36 = vmax.f32 %v3067_v15, %v3068_v27 }
 0x7ff   :  { %v4190_v60 = vpop.eup %4189 }
 0x800   :  { %v2887_v61 = vmul.f32 %v4190_v60, %v2882_v35 }
 0x802   :  { %2888 = vst.msk [vmem:[#allocation3 + $0x7] sm:$0x1] %vm675_vm6, %v2887_v61  ;;  %2889 = vst.msk [vmem:[#allocation4] sm:$0x1] %vm675_vm6, %v2887_v61 }
 0x809   :  { %v2900_v62 = vld [vmem:[#allocation4] sm:$0xff]  ;;  %v2899_v63 = vld [vmem:[#allocation3] sm:$0xff] }
 0x80a   :  { %4091 = vmatmul.mubr.msk.f32.vlgmr.msra.gmra.mxu0 %vm109_vm4, %v2900_v62  ;;  %4102 = vmatmul.mubr.msk.f32.vlgmr.msra.gmra.mxu1 %vm109_vm4, %v2899_v63 }
 0x8ca   :  { %v2970_v12 = vpop.f32.mrf.mxu0  ;;  %v3043_v13 = vpop.f32.mrf.mxu1 }
 0x8cb   :  { %v3044_v14 = vadd.f32 %v3043_v13, %v2970_v12 }
 0x8cc   :  { %v4092_v16 = vpop.f32.mrf.mxu0  ;;  %v4103_v17 = vpop.f32.mrf.mxu1 }
 0x8cd   :  { %v3051_v18 = vadd.f32 %v3507_v9, %v3044_v14 }
 0x8cf   :  { %3053 = vst.msk [vmem:[#allocation5] sm:$0xff] %vm3052_vm9, %v3051_v18 }
 0x8d6   :  { %v3070_v38 = vld [vmem:[#allocation5] sm:$0x1]  ;;  %v3100_v52 = vld [vmem:[#allocation5 + $0x1] sm:$0x1]  ;;  %v3130_v25 = vld [vmem:[#allocation5 + $0x2] sm:$0x1] }
 0x8d7   :  { %v3071_v39 = vadd.f32 %v3070_v38, %v3069_v36  ;;  %v3160_v2 = vld [vmem:[#allocation5 + $0x3] sm:$0x1]  ;;  %v3190_v18 = vld [vmem:[#allocation5 + $0x4] sm:$0x1]  ;;  %v3280_v40 = vld [vmem:[#allocation5 + $0x7] sm:$0x1] }
 0x8d9   :  { %v3075_v41 = vrot.slane %v3071_v39, %v5019_v37 }
 0x8db   :  { %v3076_v42 = vsel %vm5023_vm10, %v3075_v41, 0.0 }
 0x8dc   :  { %v3077_v43 = vsel %vm3062_vm8, %v3076_v42, 0.0 }
 0x8dd   :  { %3078 = vadd.xlane.f32.xlu0 %v3077_v43 }
 0x966   :  { %v3079_v44 = vpop.xlane.xlu0 %3078 }
 0x967   :  { %v5032_v45 = vadd.f32 %v3079_v44, %v5011_v1 }
 0x969   :  { %v3081_v46 = vsel %vm3062_vm8, %v5032_v45, -inf }
 0x96a   :  { %v3082_v47 = vrot.slane %v3081_v46, 4 }
 0x96c   :  { %v3083_v48 = vmax.f32 %v3081_v46, %v3082_v47 }
 0x96e   :  { %v3084_v49 = vrot.slane %v3083_v48, 2 }
 0x970   :  { %v3085_v50 = vmax.f32 %v3083_v48, %v3084_v49 }
 0x972   :  { %v3086_v51 = vrot.slane %v3085_v50, 1 }
 0x974   :  { %v5036_v3 = vmax.f32 %v3085_v50, %v3086_v51  ;;  %v3220_v51 = vld [vmem:[#allocation5 + $0x5] sm:$0x1] }
 0x976   :  { %vm3088_vm11 = vcmp.eq.f32.partialorder %v5032_v45, %v5036_v3  ;;  %v3101_v53 = vadd.f32 %v3100_v52, %v5036_v3 }
 0x978   :  { %v3105_v54 = vrot.slane %v3101_v53, %v5019_v37 }
 0x97a   :  { %v3106_v55 = vsel %vm5023_vm10, %v3105_v54, 0.0 }
 0x97b   :  { %v3107_v56 = vsel %vm3062_vm8, %v3106_v55, 0.0 }
 0x97c   :  { %3108 = vadd.xlane.f32.xlu1 %v3107_v56 }
 0xa05   :  { %v3109_v57 = vpop.xlane.xlu1 %3108 }
 0xa06   :  { %v5046_v58 = vadd.f32 %v3109_v57, %v5011_v1 }
 0xa08   :  { %v3111_v59 = vsel %vm3062_vm8, %v5046_v58, -inf }
 0xa09   :  { %v3112_v19 = vrot.slane %v3111_v59, 4 }
 0xa0b   :  { %v3113_v20 = vmax.f32 %v3111_v59, %v3112_v19 }
 0xa0d   :  { %v3114_v21 = vrot.slane %v3113_v20, 2 }
 0xa0f   :  { %v3115_v22 = vmax.f32 %v3113_v20, %v3114_v21 }
 0xa11   :  { %v3116_v23 = vrot.slane %v3115_v22, 1 }
 0xa13   :  { %v5050_v24 = vmax.f32 %v3115_v22, %v3116_v23 }
 0xa15   :  { %vm3118_vm12 = vcmp.eq.f32.partialorder %v5046_v58, %v5050_v24  ;;  %v3131_v26 = vadd.f32 %v3130_v25, %v5050_v24 }
 0xa17   :  { %v3135_v28 = vrot.slane %v3131_v26, %v5019_v37  ;;  %v3250_v26 = vld [vmem:[#allocation5 + $0x6] sm:$0x1] }
 0xa19   :  { %v3136_v29 = vsel %vm5023_vm10, %v3135_v28, 0.0 }
 0xa1a   :  { %v3137_v30 = vsel %vm3062_vm8, %v3136_v29, 0.0 }
 0xa1b   :  { %3138 = vadd.xlane.f32.xlu1 %v3137_v30 }
 0xaa4   :  { %v3139_v31 = vpop.xlane.xlu1 %3138 }
 0xaa5   :  { %v5060_v32 = vadd.f32 %v3139_v31, %v5011_v1 }
 0xaa7   :  { %v3141_v33 = vsel %vm3062_vm8, %v5060_v32, -inf }
 0xaa8   :  { %v3142_v34 = vrot.slane %v3141_v33, 4 }
 0xaaa   :  { %v3143_v35 = vmax.f32 %v3141_v33, %v3142_v34 }
 0xaac   :  { %v3144_v60 = vrot.slane %v3143_v35, 2 }
 0xaae   :  { %v3145_v61 = vmax.f32 %v3143_v35, %v3144_v60 }
 0xab0   :  { %v3146_v62 = vrot.slane %v3145_v61, 1 }
 0xab2   :  { %v5064_v63 = vmax.f32 %v3145_v61, %v3146_v62 }
 0xab4   :  { %vm3148_vm13 = vcmp.eq.f32.partialorder %v5060_v32, %v5064_v63  ;;  %v3161_v4 = vadd.f32 %v3160_v2, %v5064_v63 }
 0xab6   :  { %v3165_v5 = vrot.slane %v3161_v4, %v5019_v37 }
 0xab8   :  { %v3166_v6 = vsel %vm5023_vm10, %v3165_v5, 0.0 }
 0xab9   :  { %v3167_v7 = vsel %vm3062_vm8, %v3166_v6, 0.0 }
 0xaba   :  { %3168 = vadd.xlane.f32.xlu1 %v3167_v7 }
 0xb43   :  { %v3169_v8 = vpop.xlane.xlu1 %3168 }
 0xb44   :  { %v5074_v11 = vadd.f32 %v3169_v8, %v5011_v1 }
 0xb46   :  { %v3171_v12 = vsel %vm3062_vm8, %v5074_v11, -inf }
 0xb47   :  { %v3172_v9 = vrot.slane %v3171_v12, 4 }
 0xb49   :  { %v3173_v13 = vmax.f32 %v3171_v12, %v3172_v9 }
 0xb4b   :  { %v3174_v14 = vrot.slane %v3173_v13, 2 }
 0xb4d   :  { %v3175_v15 = vmax.f32 %v3173_v13, %v3174_v14 }
 0xb4f   :  { %v3176_v16 = vrot.slane %v3175_v15, 1 }
 0xb51   :  { %v5078_v17 = vmax.f32 %v3175_v15, %v3176_v16 }
 0xb53   :  { %vm3178_vm14 = vcmp.eq.f32.partialorder %v5074_v11, %v5078_v17  ;;  %v3191_v27 = vadd.f32 %v3190_v18, %v5078_v17 }
 0xb55   :  { %v3195_v36 = vrot.slane %v3191_v27, %v5019_v37 }
 0xb57   :  { %v3196_v38 = vsel %vm5023_vm10, %v3195_v36, 0.0 }
 0xb58   :  { %v3197_v39 = vsel %vm3062_vm8, %v3196_v38, 0.0 }
 0xb59   :  { %3198 = vadd.xlane.f32.xlu1 %v3197_v39 }
 0xbe2   :  { %v3199_v41 = vpop.xlane.xlu1 %3198 }
 0xbe3   :  { %v5088_v42 = vadd.f32 %v3199_v41, %v5011_v1 }
 0xbe5   :  { %v3201_v43 = vsel %vm3062_vm8, %v5088_v42, -inf }
 0xbe6   :  { %v3202_v44 = vrot.slane %v3201_v43, 4 }
 0xbe8   :  { %v3203_v46 = vmax.f32 %v3201_v43, %v3202_v44 }
 0xbea   :  { %v3204_v47 = vrot.slane %v3203_v46, 2 }
 0xbec   :  { %v3205_v48 = vmax.f32 %v3203_v46, %v3204_v47 }
 0xbee   :  { %v3206_v49 = vrot.slane %v3205_v48, 1 }
 0xbf0   :  { %v5092_v50 = vmax.f32 %v3205_v48, %v3206_v49 }
 0xbf2   :  { %vm3208_vm15 = vcmp.eq.f32.partialorder %v5088_v42, %v5092_v50  ;;  %v3221_v52 = vadd.f32 %v3220_v51, %v5092_v50 }
 0xbf4   :  { %v3225_v53 = vrot.slane %v3221_v52, %v5019_v37 }
 0xbf6   :  { %v3226_v54 = vsel %vm5023_vm10, %v3225_v53, 0.0 }
 0xbf7   :  { %v3227_v55 = vsel %vm3062_vm8, %v3226_v54, 0.0 }
 0xbf8   :  { %3228 = vadd.xlane.f32.xlu1 %v3227_v55 }
 0xc81   :  { %v3229_v56 = vpop.xlane.xlu1 %3228 }
 0xc82   :  { %v5102_v57 = vadd.f32 %v3229_v56, %v5011_v1 }
 0xc84   :  { %v3231_v59 = vsel %vm3062_vm8, %v5102_v57, -inf }
 0xc85   :  { %v3232_v19 = vrot.slane %v3231_v59, 4 }
 0xc87   :  { %v3233_v20 = vmax.f32 %v3231_v59, %v3232_v19 }
 0xc89   :  { %v3234_v21 = vrot.slane %v3233_v20, 2 }
 0xc8b   :  { %v3235_v22 = vmax.f32 %v3233_v20, %v3234_v21 }
 0xc8d   :  { %v3236_v23 = vrot.slane %v3235_v22, 1 }
 0xc8f   :  { %v5106_v25 = vmax.f32 %v3235_v22, %v3236_v23 }
 0xc91   :  { %vm3238_vm0 = vcmp.eq.f32.partialorder %v5102_v57, %v5106_v25  ;;  %v3251_v28 = vadd.f32 %v3250_v26, %v5106_v25 }
 0xc92   :  { %v3239_v23 = vsel %vm3238_vm0, %v5005_v0, 5 }
 0xc93   :  { %v3255_v29 = vrot.slane %v3251_v28, %v5019_v37  ;;  %v3055_v37 = vld [vmem:[%s5211_s2 + $0x5] sm:$0x1]  ;;  %v3240_v26 = vsel %vm3062_vm8, %v3239_v23, 2147483647 }
 0xc94   :  { %v3241_v28 = vrot.slane %v3240_v26, 4 }
 0xc95   :  { %v3256_v30 = vsel %vm5023_vm10, %v3255_v29, 0.0 }
 0xc96   :  { %v3257_v31 = vsel %vm3062_vm8, %v3256_v30, 0.0 }
 0xc97   :  { %3258 = vadd.xlane.f32.xlu1 %v3257_v31 }
 0xd20   :  { %v3259_v33 = vpop.xlane.xlu1 %3258 }
 0xd21   :  { %v3260_v34 = vadd.f32 %v3259_v33, %v5011_v1 }
 0xd23   :  { %v3261_v35 = vsel %vm3062_vm8, %v3260_v34, -inf }
 0xd24   :  { %v3262_v60 = vrot.slane %v3261_v35, 4 }
 0xd26   :  { %v3263_v61 = vmax.f32 %v3261_v35, %v3262_v60 }
 0xd28   :  { %v3264_v62 = vrot.slane %v3263_v61, 2 }
 0xd2a   :  { %v3265_v2 = vmax.f32 %v3263_v61, %v3264_v62 }
 0xd2c   :  { %v3266_v4 = vrot.slane %v3265_v2, 1 }
 0xd2e   :  { %v3267_v5 = vmax.f32 %v3265_v2, %v3266_v4 }
 0xd30   :  { %vm3268_vm1 = vcmp.eq.f32.partialorder %v3260_v34, %v3267_v5  ;;  %v3281_v6 = vadd.f32 %v3280_v40, %v3267_v5 }
 0xd31   :  { %v3269_v36 = vsel %vm3268_vm1, %v5005_v0, 5  ;;  %vm3242_vm1 = vcmp.lt.s32.totalorder %v3240_v26, %v3241_v28 }
 0xd32   :  { %v3282_v7 = vadd.f32 %v3281_v6, %v3055_v37  ;;  %v3270_v38 = vsel %vm3062_vm8, %v3269_v36, 2147483647  ;;  %v3243_v29 = vsel %vm3242_vm1, %v3240_v26, %v3241_v28 }
 0xd33   :  { %v3271_v39 = vrot.slane %v3270_v38, 4  ;;  %v3244_v30 = vrot.slane %v3243_v29, 2 }
 0xd34   :  { %v3284_v8 = vsel %vm3283_vm2, %v3282_v7, -inf }
 0xd35   :  { %3285 = vmax.xlane.f32.xlu1 %v3284_v8  ;;  %vm3272_vm5 = vcmp.lt.s32.totalorder %v3270_v38, %v3271_v39  ;;  %v3209_v8 = vsel %vm3208_vm15, %v5005_v0, 5 }
 0xd36   :  { %v3273_v41 = vsel %vm3272_vm5, %v3270_v38, %v3271_v39 }
 0xd37   :  { %v3274_v43 = vrot.slane %v3273_v41, 2 }
 0xd39   :  { %vm3275_vm6 = vcmp.lt.s32.totalorder %v3273_v41, %v3274_v43 }
 0xd3a   :  { %v3276_v44 = vsel %vm3275_vm6, %v3273_v41, %v3274_v43 }
 0xd3b   :  { %v3277_v47 = vrot.slane %v3276_v44, 1 }
 0xd3d   :  { %vm3278_vm7 = vcmp.lt.s32.totalorder %v3276_v44, %v3277_v47 }
 0xd3e   :  { %v3279_v53 = vsel %vm3278_vm7, %v3276_v44, %v3277_v47 }
 0xdbe   :  { %v3286_v1 = vpop.xlane.xlu1 %3285 }
 0xdbf   :  { %vm3287_vm3 = vcmp.eq.f32.partialorder %v3282_v7, %v3286_v1  ;;  %3304 = vst.msk [vmem:[#allocation7] sm:$0x1] %vm3283_vm2, %v3286_v1  ;;  %v3210_v1 = vsel %vm3062_vm8, %v3209_v8, 2147483647 }
 0xdc0   :  { %v3288_v12 = vsel %vm3287_vm3, %v4323_v10, 5  ;;  %vm3245_vm3 = vcmp.lt.s32.totalorder %v3243_v29, %v3244_v30 }
 0xdc1   :  { %v3289_v9 = vsel %vm3283_vm2, %v3288_v12, 2147483647  ;;  %v3246_v31 = vsel %vm3245_vm3, %v3243_v29, %v3244_v30  ;;  %v3211_v12 = vrot.slane %v3210_v1, 4 }
 0xdc2   :  { %v3291_v13 = vshra.s32 %v3289_v9, 16  ;;  %v3290_v15 = vand.u32 65535, %v3289_v9  ;;  %v3247_v34 = vrot.slane %v3246_v31, 1 }
 0xdc3   :  { %vm3212_vm6 = vcmp.lt.s32.totalorder %v3210_v1, %v3211_v12 }
 0xdc4   :  { %v3293_v14 = vcvt.s32.f32 %v3291_v13  ;;  %v3292_v18 = vcvt.s32.f32 %v3290_v15  ;;  %v3213_v9 = vsel %vm3212_vm6, %v3210_v1, %v3211_v12 }
 0xdc5   :  { %v3214_v13 = vrot.slane %v3213_v9, 2 }
 0xdc6   :  { %3294 = vmin.xlane.f32.xlu1 %v3293_v14 }
 0xdc7   :  { %vm3215_vm7 = vcmp.lt.s32.totalorder %v3213_v9, %v3214_v13 }
 0xe4f   :  { %v3295_v16 = vpop.xlane.xlu1 %3294 }
 0xe50   :  { %vm3296_vm4 = vcmp.eq.f32.partialorder %v3293_v14, %v3295_v16  ;;  %v3301_v46 = vcvt.f32.s32 %v3295_v16  ;;  %v3216_v14 = vsel %vm3215_vm7, %v3213_v9, %v3214_v13 }
 0xe51   :  { %v3297_v27 = vsel %vm3296_vm4, %v3292_v18, inf  ;;  %vm3248_vm4 = vcmp.lt.s32.totalorder %v3246_v31, %v3247_v34  ;;  %v3217_v16 = vrot.slane %v3216_v14, 1 }
 0xe52   :  { %3298 = vmin.xlane.f32.xlu1 %v3297_v27  ;;  %v3302_v49 = vshll.u32 %v3301_v46, 16  ;;  %v3249_v57 = vsel %vm3248_vm4, %v3246_v31, %v3247_v34  ;;  %v3149_v34 = vsel %vm3148_vm13, %v5005_v0, 5 }
 0xedb   :  { %v3299_v48 = vpop.xlane.xlu1 %3298 }
 0xedc   :  { %v3300_v51 = vcvt.f32.s32 %v3299_v48 }
 0xede   :  { %v3303_v52 = vadd.s32 %v3302_v49, %v3300_v51  ;;  %v3179_v49 = vsel %vm3178_vm14, %v5005_v0, 5 }
 0xedf   :  { %v3180_v51 = vsel %vm3062_vm8, %v3179_v49, 2147483647 }
 0xee0   :  { %3305 = vst.msk [vmem:[%s5213_s4 + $0x7] sm:$0x1] %vm3283_vm2, %v3303_v52  ;;  %vm3306_vm9 = vcmp.eq.s32.totalorder %v4323_v10, %v3303_v52  ;;  %v3181_v52 = vrot.slane %v3180_v51, 4 }
 0xee1   :  { %v3307_v54 = vsel %vm3306_vm9, %v3279_v53, 0  ;;  %vm3218_vm9 = vcmp.lt.s32.totalorder %v3216_v14, %v3217_v16 }
 0xee2   :  { %v3308_v55 = vsel %vm3283_vm2, %v3307_v54, 2147483648  ;;  %v3219_v42 = vsel %vm3218_vm9, %v3216_v14, %v3217_v16  ;;  %vm3182_vm1 = vcmp.lt.s32.totalorder %v3180_v51, %v3181_v52  ;;  %v3119_v14 = vsel %vm3118_vm12, %v5005_v0, 5 }
 0xee3   :  { %v3310_v56 = vshra.s32 %v3308_v55, 16  ;;  %v3309_v19 = vand.u32 65535, %v3308_v55  ;;  %v3183_v53 = vsel %vm3182_vm1, %v3180_v51, %v3181_v52 }
 0xee4   :  { %v3184_v54 = vrot.slane %v3183_v53, 2 }
 0xee5   :  { %v3312_v59 = vcvt.s32.f32 %v3310_v56  ;;  %v3311_v21 = vcvt.s32.f32 %v3309_v19 }
 0xee6   :  { %vm3185_vm3 = vcmp.lt.s32.totalorder %v3183_v53, %v3184_v54 }
 0xee7   :  { %3313 = vmax.xlane.f32.xlu0 %v3312_v59  ;;  %v3186_v55 = vsel %vm3185_vm3, %v3183_v53, %v3184_v54  ;;  %v3089_v53 = vsel %vm3088_vm11, %v5005_v0, 5 }
 0xee8   :  { %v3090_v54 = vsel %vm3062_vm8, %v3089_v53, 2147483647 }
 0xf70   :  { %v3314_v20 = vpop.xlane.xlu0 %3313 }
 0xf71   :  { %vm3315_vm10 = vcmp.eq.f32.partialorder %v3312_v59, %v3314_v20  ;;  %v3320_v33 = vcvt.f32.s32 %v3314_v20  ;;  %v3187_v59 = vrot.slane %v3186_v55, 1 }
 0xf72   :  { %v3316_v22 = vsel %vm3315_vm10, %v3311_v21, -inf }
 0xf73   :  { %3317 = vmax.xlane.f32.xlu1 %v3316_v22  ;;  %v3321_v60 = vshll.u32 %v3320_v33, 16  ;;  %vm3188_vm4 = vcmp.lt.s32.totalorder %v3186_v55, %v3187_v59 }
 0xf74   :  { %v3189_v11 = vsel %vm3188_vm4, %v3186_v55, %v3187_v59  ;;  %v3091_v55 = vrot.slane %v3090_v54, 4 }
 0xf76   :  { %vm3092_vm4 = vcmp.lt.s32.totalorder %v3090_v54, %v3091_v55 }
 0xffc   :  { %v3318_v35 = vpop.xlane.xlu1 %3317 }
 0xffd   :  { %v3319_v61 = vcvt.f32.s32 %v3318_v35  ;;  %v3150_v35 = vsel %vm3062_vm8, %v3149_v34, 2147483647 }
 0xfff   :  { %v3322_v62 = vadd.s32 %v3321_v60, %v3319_v61  ;;  %v3151_v60 = vrot.slane %v3150_v35, 4 }
0x1001   :  { %3323 = vst.msk [vmem:[%s5213_s4 + $0x6] sm:$0x1] %vm3283_vm2, %v3322_v62  ;;  %vm3324_vm0 = vcmp.eq.s32.totalorder %v4323_v10, %v3322_v62 }
0x1002   :  { %v3325_v25 = vsel %vm3324_vm0, %v3249_v57, 0 }
0x1003   :  { %v3326_v2 = vsel %vm3283_vm2, %v3325_v25, 2147483648 }
0x1004   :  { %v3328_v4 = vshra.s32 %v3326_v2, 16  ;;  %v3327_v37 = vand.u32 65535, %v3326_v2 }
0x1006   :  { %v3330_v5 = vcvt.s32.f32 %v3328_v4  ;;  %v3329_v6 = vcvt.s32.f32 %v3327_v37 }
0x1008   :  { %3331 = vmax.xlane.f32.xlu0 %v3330_v5 }
0x1091   :  { %v3332_v40 = vpop.xlane.xlu0 %3331 }
0x1092   :  { %vm3333_vm5 = vcmp.eq.f32.partialorder %v3330_v5, %v3332_v40  ;;  %v3338_v15 = vcvt.f32.s32 %v3332_v40 }
0x1093   :  { %v3334_v7 = vsel %vm3333_vm5, %v3329_v6, -inf  ;;  %vm3152_vm5 = vcmp.lt.s32.totalorder %v3150_v35, %v3151_v60 }
0x1094   :  { %3335 = vmax.xlane.f32.xlu1 %v3334_v7  ;;  %v3339_v27 = vshll.u32 %v3338_v15, 16  ;;  %v3153_v61 = vsel %vm3152_vm5, %v3150_v35, %v3151_v60  ;;  %v3120_v15 = vsel %vm3062_vm8, %v3119_v14, 2147483647 }
0x1095   :  { %v3154_v62 = vrot.slane %v3153_v61, 2  ;;  %v3121_v16 = vrot.slane %v3120_v15, 4 }
0x1097   :  { %vm3155_vm6 = vcmp.lt.s32.totalorder %v3153_v61, %v3154_v62 }
0x1098   :  { %v3156_v57 = vsel %vm3155_vm6, %v3153_v61, %v3154_v62 }
0x1099   :  { %v3157_v2 = vrot.slane %v3156_v57, 1 }
0x109b   :  { %vm3158_vm7 = vcmp.lt.s32.totalorder %v3156_v57, %v3157_v2 }
0x109c   :  { %v3159_v32 = vsel %vm3158_vm7, %v3156_v57, %v3157_v2 }
0x111d   :  { %v3336_v18 = vpop.xlane.xlu1 %3335 }
0x111e   :  { %v3337_v36 = vcvt.f32.s32 %v3336_v18 }
0x1120   :  { %v3340_v38 = vadd.s32 %v3339_v27, %v3337_v36 }
0x1122   :  { %3341 = vst.msk [vmem:[%s5213_s4 + $0x5] sm:$0x1] %vm3283_vm2, %v3340_v38  ;;  %vm3342_vm15 = vcmp.eq.s32.totalorder %v4323_v10, %v3340_v38 }
0x1123   :  { %v3343_v50 = vsel %vm3342_vm15, %v3219_v42, 0  ;;  %vm3122_vm15 = vcmp.lt.s32.totalorder %v3120_v15, %v3121_v16 }
0x1124   :  { %v3344_v39 = vsel %vm3283_vm2, %v3343_v50, 2147483648  ;;  %v3123_v18 = vsel %vm3122_vm15, %v3120_v15, %v3121_v16 }
0x1125   :  { %v3346_v41 = vshra.s32 %v3344_v39, 16  ;;  %v3345_v44 = vand.u32 65535, %v3344_v39  ;;  %v3124_v27 = vrot.slane %v3123_v18, 2 }
0x1127   :  { %v3348_v43 = vcvt.s32.f32 %v3346_v41  ;;  %v3347_v47 = vcvt.s32.f32 %v3345_v44 }
0x1129   :  { %3349 = vmax.xlane.f32.xlu0 %v3348_v43 }
0x11b2   :  { %v3350_v46 = vpop.xlane.xlu0 %3349 }
0x11b3   :  { %vm3351_vm10 = vcmp.eq.f32.partialorder %v3348_v43, %v3350_v46  ;;  %v3356_v56 = vcvt.f32.s32 %v3350_v46 }
0x11b4   :  { %v3352_v48 = vsel %vm3351_vm10, %v3347_v47, -inf  ;;  %vm3125_vm10 = vcmp.lt.s32.totalorder %v3123_v18, %v3124_v27 }
0x11b5   :  { %3353 = vmax.xlane.f32.xlu1 %v3352_v48  ;;  %v3357_v20 = vshll.u32 %v3356_v56, 16  ;;  %v3126_v36 = vsel %vm3125_vm10, %v3123_v18, %v3124_v27  ;;  %v3093_v56 = vsel %vm3092_vm4, %v3090_v54, %v3091_v55 }
0x11b6   :  { %v3127_v42 = vrot.slane %v3126_v36, 1  ;;  %v3094_v59 = vrot.slane %v3093_v56, 2 }
0x11b8   :  { %vm3128_vm1 = vcmp.lt.s32.totalorder %v3126_v36, %v3127_v42 }
0x11b9   :  { %v3129_v58 = vsel %vm3128_vm1, %v3126_v36, %v3127_v42 }
0x123e   :  { %v3354_v19 = vpop.xlane.xlu1 %3353 }
0x123f   :  { %v3355_v21 = vcvt.f32.s32 %v3354_v19 }
0x1241   :  { %v3358_v22 = vadd.s32 %v3357_v20, %v3355_v21 }
0x1243   :  { %3359 = vst.msk [vmem:[%s5213_s4 + $0x4] sm:$0x1] %vm3283_vm2, %v3358_v22  ;;  %vm3360_vm14 = vcmp.eq.s32.totalorder %v4323_v10, %v3358_v22 }
0x1244   :  { %v3361_v17 = vsel %vm3360_vm14, %v3189_v11, 0  ;;  %vm3095_vm14 = vcmp.lt.s32.totalorder %v3093_v56, %v3094_v59 }
0x1245   :  { %v3362_v23 = vsel %vm3283_vm2, %v3361_v17, 2147483648  ;;  %v3096_v19 = vsel %vm3095_vm14, %v3093_v56, %v3094_v59 }
0x1246   :  { %v3364_v26 = vshra.s32 %v3362_v23, 16  ;;  %v3363_v29 = vand.u32 65535, %v3362_v23  ;;  %v3097_v21 = vrot.slane %v3096_v19, 1 }
0x1248   :  { %v3366_v28 = vcvt.s32.f32 %v3364_v26  ;;  %v3365_v31 = vcvt.s32.f32 %v3363_v29 }
0x124a   :  { %3367 = vmax.xlane.f32.xlu0 %v3366_v28 }
0x12d3   :  { %v3368_v30 = vpop.xlane.xlu0 %3367 }
0x12d4   :  { %vm3369_vm0 = vcmp.eq.f32.partialorder %v3366_v28, %v3368_v30  ;;  %v3374_v25 = vcvt.f32.s32 %v3368_v30 }
0x12d5   :  { %v3370_v33 = vsel %vm3369_vm0, %v3365_v31, -inf  ;;  %vm3098_vm0 = vcmp.lt.s32.totalorder %v3096_v19, %v3097_v21 }
0x12d6   :  { %3371 = vmax.xlane.f32.xlu1 %v3370_v33  ;;  %v3375_v5 = vshll.u32 %v3374_v25, 16  ;;  %v3099_v0 = vsel %vm3098_vm0, %v3096_v19, %v3097_v21 }
0x135f   :  { %v3372_v4 = vpop.xlane.xlu1 %3371 }
0x1360   :  { %v3373_v37 = vcvt.f32.s32 %v3372_v4 }
0x1362   :  { %v3376_v40 = vadd.s32 %v3375_v5, %v3373_v37 }
0x1364   :  { %3377 = vst.msk [vmem:[%s5213_s4 + $0x3] sm:$0x1] %vm3283_vm2, %v3376_v40  ;;  %vm3378_vm13 = vcmp.eq.s32.totalorder %v4323_v10, %v3376_v40 }
0x1365   :  { %v3379_v63 = vsel %vm3378_vm13, %v3159_v32, 0 }
0x1366   :  { %v3380_v6 = vsel %vm3283_vm2, %v3379_v63, 2147483648 }
0x1367   :  { %v3382_v7 = vshra.s32 %v3380_v6, 16  ;;  %v3381_v1 = vand.u32 65535, %v3380_v6 }
0x1369   :  { %v3384_v8 = vcvt.s32.f32 %v3382_v7  ;;  %v3383_v9 = vcvt.s32.f32 %v3381_v1 }
0x136b   :  { %3385 = vmax.xlane.f32.xlu0 %v3384_v8 }
0x13f4   :  { %v3386_v12 = vpop.xlane.xlu0 %3385 }
0x13f5   :  { %vm3387_vm9 = vcmp.eq.f32.partialorder %v3384_v8, %v3386_v12  ;;  %v3392_v38 = vcvt.f32.s32 %v3386_v12 }
0x13f6   :  { %v3388_v13 = vsel %vm3387_vm9, %v3383_v9, -inf }
0x13f7   :  { %3389 = vmax.xlane.f32.xlu1 %v3388_v13  ;;  %v3393_v39 = vshll.u32 %v3392_v38, 16 }
0x1480   :  { %v3390_v50 = vpop.xlane.xlu1 %3389 }
0x1481   :  { %v3391_v41 = vcvt.f32.s32 %v3390_v50 }
0x1483   :  { %v3394_v43 = vadd.s32 %v3393_v39, %v3391_v41 }
0x1485   :  { %3395 = vst.msk [vmem:[%s5213_s4 + $0x2] sm:$0x1] %vm3283_vm2, %v3394_v43  ;;  %vm3396_vm12 = vcmp.eq.s32.totalorder %v4323_v10, %v3394_v43 }
0x1486   :  { %v3397_v24 = vsel %vm3396_vm12, %v3129_v58, 0 }
0x1487   :  { %v3398_v44 = vsel %vm3283_vm2, %v3397_v24, 2147483648 }
0x1488   :  { %v3400_v46 = vshra.s32 %v3398_v44, 16  ;;  %v3399_v48 = vand.u32 65535, %v3398_v44 }
0x148a   :  { %v3402_v47 = vcvt.s32.f32 %v3400_v46  ;;  %v3401_v51 = vcvt.s32.f32 %v3399_v48 }
0x148c   :  { %3403 = vmax.xlane.f32.xlu0 %v3402_v47 }
0x1515   :  { %v3404_v49 = vpop.xlane.xlu0 %3403 }
0x1516   :  { %vm3405_vm3 = vcmp.eq.f32.partialorder %v3402_v47, %v3404_v49  ;;  %v3410_v20 = vcvt.f32.s32 %v3404_v49 }
0x1517   :  { %v3406_v52 = vsel %vm3405_vm3, %v3401_v51, -inf }
0x1518   :  { %3407 = vmax.xlane.f32.xlu1 %v3406_v52  ;;  %v3411_v11 = vshll.u32 %v3410_v20, 16 }
0x15a1   :  { %v3408_v22 = vpop.xlane.xlu1 %3407 }
0x15a2   :  { %v3409_v17 = vcvt.f32.s32 %v3408_v22 }
0x15a4   :  { %v3412_v23 = vadd.s32 %v3411_v11, %v3409_v17 }
0x15a6   :  { %3413 = vst.msk [vmem:[%s5213_s4 + $0x1] sm:$0x1] %vm3283_vm2, %v3412_v23  ;;  %vm3414_vm8 = vcmp.eq.s32.totalorder %v4323_v10, %v3412_v23 }
0x15a7   :  { %v3415_v45 = vsel %vm3414_vm8, %v3099_v0, 0 }
0x15a8   :  { %v3416_v3 = vsel %vm3283_vm2, %v3415_v45, 2147483648 }
0x15a9   :  { %v3418_v26 = vshra.s32 %v3416_v3, 16  ;;  %v3417_v29 = vand.u32 65535, %v3416_v3 }
0x15ab   :  { %v3420_v28 = vcvt.s32.f32 %v3418_v26  ;;  %v3419_v31 = vcvt.s32.f32 %v3417_v29 }
0x15ad   :  { %3421 = vmax.xlane.f32.xlu0 %v3420_v28 }
0x1636   :  { %v3422_v30 = vpop.xlane.xlu0 %3421 }
0x1637   :  { %vm3423_vm11 = vcmp.eq.f32.partialorder %v3420_v28, %v3422_v30 }
0x1638   :  { %v3424_v33 = vsel %vm3423_vm11, %v3419_v31, -inf }
0x1639   :  { %3425 = vmax.xlane.f32.xlu1 %v3424_v33 }
0x163a   :  { %4218 = shalt.err (!%p4215_p4)
}
0x163b   :  { %3441 = dma.vmem_to_hbm [thread:$0]  %s3439_s16, 128, %s5212_s3, [#allocation6]  }
0x163c   :  { %s4227_s22 = scalar_lea.vmem %s3451_s18, 16  ;;  %s4231_s23 = scalar_lea.vmem %s3451_s18, 32 }
0x163d   :  { %p4228_p5 = scmp.ne.s32.totalorder %s3451_s18, %s4227_s22  ;;  %p4232_p6 = scmp.lt.s32.totalorder %s3451_s18, %s3451_s18 }
0x163e   :  { %p4233_p7 = scmp.lt.s32.totalorder %s4231_s23, %s4227_s22 }
0x1640   :  { %p4234_p8 = por %p4233_p7, %p4232_p6 }
0x1642   :  { %p4235_p9 = pnand %p4234_p8, %p4228_p5 }
0x1644   :  { %4238 = shalt.err (!%p4235_p9)
}
0x1645   :  { %3453 = dma.vmem_to_hbm [thread:$0]  %s3451_s18, 16, %s5214_s5, [#allocation8]   ;;  %v3428_v10 = vcvt.f32.s32 %v3422_v30 }
0x1647   :  { %v3429_v35 = vshll.u32 %v3428_v10, 16 }
0x16c2   :  { %v3426_v34 = vpop.xlane.xlu1 %3425 }
0x16c3   :  { %v3427_v60 = vcvt.f32.s32 %v3426_v34 }
0x16c5   :  { %v3430_v61 = vadd.s32 %v3429_v35, %v3427_v60 }
0x16c7   :  { %3431 = vst.msk [vmem:[%s5213_s4] sm:$0x1] %vm3283_vm2, %v3430_v61 }
0x16c8   :  { %4247 = dma.done.wait [#allocation6], 128  }
0x16c9   :  { %4248 = vsyncadd [#allocation6], 4294967168 }
0x16ca   :  { %4249 = dma.done.wait [#allocation8], 16  }
0x16cb   :  { %4250 = vsyncadd [#allocation8], 4294967280 }
0x16cc   :  { %3462 = vsyncpa [#allocation6], 1 }
0x16cd   :  { %3463 = vsyncpa [#allocation8], 1 }

</bundles_post_ra>
